<compile_context>
chip_gen: v5e
topology: v5e:2x2
jax: 0.10.0
libtpu: 0.0.40
codegen_flags: <defaults>
</compile_context>

<pallas_src>
import functools

import jax
import jax.numpy as jnp
from jax import lax
from jax.experimental import pallas as pl
from jax.experimental.pallas import tpu as pltpu


# ---------------------------------------------------------------------------
# Shared GRU cell (PyTorch nn.GRU gate ordering: r, z, n)
# ---------------------------------------------------------------------------
def _gru_step(x, h, w_ih, w_hh, b_ih, b_hh, H):
    # MXU dots in the weight dtype (bf16 on v6e/v7x), f32 accumulation,
    # f32 elementwise math (v5e VPU has no bf16).
    gi = jnp.dot(x.astype(w_ih.dtype), w_ih,
                 preferred_element_type=jnp.float32) + b_ih          # (B, 3H)
    gh = jnp.dot(h.astype(w_hh.dtype), w_hh,
                 preferred_element_type=jnp.float32) + b_hh          # (B, 3H)
    # H % 128 == 0, so these lane-axis gate slices are tile-aligned (no relayout).
    i_r, i_z, i_n = gi[:, :H], gi[:, H:2 * H], gi[:, 2 * H:]
    h_r, h_z, h_n = gh[:, :H], gh[:, H:2 * H], gh[:, 2 * H:]
    r = jax.nn.sigmoid(i_r + h_r)
    z = jax.nn.sigmoid(i_z + h_z)
    n = jnp.tanh(i_n + r * h_n)
    return (1.0 - z) * n + z * h


# ---------------------------------------------------------------------------
# Encoder kernel: GRU over the embedded input sequence -> final hidden state.
# Grid: (batch_tiles,), "parallel".  No encoder_outputs (decoder has no attention).
# ---------------------------------------------------------------------------
def encoder_kernel(x_ref, wih_ref, whh_ref, bih_ref, bhh_ref, h_out_ref,
                   *, T_in, TB, H):
    w_ih = wih_ref[...]
    w_hh = whh_ref[...]
    # Hoist bias broadcasts out of the recurrent loop (JAX does not CSE them).
    b_ih = jnp.broadcast_to(bih_ref[...], (TB, 3 * H))
    b_hh = jnp.broadcast_to(bhh_ref[...], (TB, 3 * H))

    def body(t, h):
        x_t = x_ref[t]                      # (TB, E): one timestep read from the ref
        return _gru_step(x_t, h, w_ih, w_hh, b_ih, b_hh, H)

    h_final = lax.fori_loop(0, T_in, body, jnp.zeros((TB, H), jnp.float32),
                            unroll=True)
    h_out_ref[...] = h_final


# ---------------------------------------------------------------------------
# Decoder kernel: one greedy decode step per grid point (batch_tile, t).
# logp is streamed to HBM per step; seq / len blocks are resident per batch tile;
# h / prev-symbol are carried across the time axis in VMEM scratch.
# ---------------------------------------------------------------------------
def decoder_kernel(h0_ref, emb_ref, wih_ref, whh_ref, bih_ref, bhh_ref,
                   wout_ref, bout_ref,
                   logp_ref, seq_ref, len_ref,
                   h_scratch, sym_scratch,
                   *, TB, T_out, H, V, sos_id, eos_id):
    t = pl.program_id(1)

    @pl.when(t == 0)
    def _():
        h_scratch[...] = h0_ref[...]
        sym_scratch[...] = jnp.full((TB, 1), sos_id, jnp.int32)
        len_ref[...] = jnp.full((TB, 1), T_out, jnp.int32)

    h = h_scratch[...]                       # (TB, H) f32
    sym = sym_scratch[...]                   # (TB, 1) i32

    vocab_iota = lax.broadcasted_iota(jnp.int32, (TB, V), 1)

    # embedding lookup of the previous symbol via one-hot matmul (MXU-friendly).
    # TODO(synk): for realistic vocab sizes replace with a scalar-addressed DMA
    #             gather of TB rows from an HBM-resident embedding table.
    emb = emb_ref[...]
    onehot = (vocab_iota == sym).astype(emb.dtype)                    # (TB, V)
    x_t = jnp.dot(onehot, emb, preferred_element_type=jnp.float32)    # (TB, E)

    h_new = _gru_step(x_t, h, wih_ref[...], whh_ref[...],
                      bih_ref[...], bhh_ref[...], H)

    # output projection + log_softmax (decode_function = F.log_softmax)
    # TODO(synk): for large V, tile w_out over the vocab (emit_pipeline) with an
    #             online log-softmax / argmax instead of full (TB, V) logits.
    w_out = wout_ref[...]
    logits = jnp.dot(h_new.astype(w_out.dtype), w_out,
                     preferred_element_type=jnp.float32) + bout_ref[...]   # (TB, V)

    m = jnp.max(logits, axis=-1, keepdims=True)
    shifted = logits - m
    lse = jnp.log(jnp.sum(jnp.exp(shifted), axis=-1, keepdims=True))
    logp_ref[...] = shifted - lse            # (TB, V) block, streamed to HBM

    # greedy symbol (first max index, like torch.topk(1)); reuses the softmax max
    # and clamps the no-match fallback to V-1 (stays in-vocab even for NaN logits).
    new_sym = jnp.min(jnp.where(logits == m, vocab_iota, V - 1),
                      axis=-1, keepdims=True).astype(jnp.int32)       # (TB, 1)
    seq_ref[pl.ds(t, 1), :] = jnp.transpose(new_sym)                  # row t of (T_out, TB)

    # length update: first <eos> sets length = t+1 (matches DecoderRNN.decode)
    prev_len = len_ref[...]
    is_eos = new_sym == eos_id
    len_ref[...] = jnp.where(jnp.logical_and(is_eos, prev_len > t), t + 1, prev_len)

    h_scratch[...] = h_new
    sym_scratch[...] = new_sym


# ---------------------------------------------------------------------------
# Wrapper (plain-JAX glue around the pallas_calls)
# ---------------------------------------------------------------------------
def reinforce_generator_forward(input_ids, params, *, max_len, sos_id, eos_id,
                                batch_tile=8, compute_dtype=jnp.bfloat16):
    """Returns (out_seqs (B, max_len) i32, out_lengths (B,) i32,
                step_probs (max_len, B, V) f32 log-probabilities)."""
    B, T_in = input_ids.shape
    H = params["enc_w_hh"].shape[0]
    V, E = params["emb_dec"].shape
    TB = min(batch_tile, B)
    n_b = B // TB
    # lane/sublane alignment: 128-wide MXU operands, unmasked stores
    assert B % TB == 0 and TB % 8 == 0, "batch must be a multiple of the 8-aligned tile"
    assert H % 128 == 0 and E % 128 == 0 and V % 128 == 0, "H/E/V must be multiples of 128"

    f32 = jnp.float32
    cd = compute_dtype
    vmem_limit = 32 * 1024 * 1024

    # ---- encoder -----------------------------------------------------------
    x_tbe = params["emb_enc"].astype(cd)[input_ids.T]          # (T_in, B, E) glue gather

    enc_hidden = pl.pallas_call(
        functools.partial(encoder_kernel, T_in=T_in, TB=TB, H=H),
        out_shape=jax.ShapeDtypeStruct((B, H), f32),
        grid=(n_b,),
        in_specs=[
            pl.BlockSpec((T_in, TB, E), lambda b: (0, b, 0)),
            pl.BlockSpec((E, 3 * H), lambda b: (0, 0)),
            pl.BlockSpec((H, 3 * H), lambda b: (0, 0)),
            pl.BlockSpec((1, 3 * H), lambda b: (0, 0)),
            pl.BlockSpec((1, 3 * H), lambda b: (0, 0)),
        ],
        out_specs=pl.BlockSpec((TB, H), lambda b: (b, 0)),
        compiler_params=pltpu.CompilerParams(
            dimension_semantics=("parallel",), vmem_limit_bytes=vmem_limit),
    )(x_tbe,
      params["enc_w_ih"].astype(cd), params["enc_w_hh"].astype(cd),
      params["enc_b_ih"].astype(f32), params["enc_b_hh"].astype(f32))

    # ---- decoder (greedy, teacher_forcing_ratio = 0) -----------------------
    step_logp, seq_btile, lens = pl.pallas_call(
        functools.partial(decoder_kernel, TB=TB, T_out=max_len, H=H, V=V,
                          sos_id=sos_id, eos_id=eos_id),
        out_shape=(
            jax.ShapeDtypeStruct((max_len, B, V), f32),        # streamed per step
            jax.ShapeDtypeStruct((n_b, max_len, TB), jnp.int32),
            jax.ShapeDtypeStruct((B, 1), jnp.int32),
        ),
        grid=(n_b, max_len),
        in_specs=[
            pl.BlockSpec((TB, H), lambda b, t: (b, 0)),        # h0
            pl.BlockSpec((V, E), lambda b, t: (0, 0)),         # emb_dec
            pl.BlockSpec((E, 3 * H), lambda b, t: (0, 0)),
            pl.BlockSpec((H, 3 * H), lambda b, t: (0, 0)),
            pl.BlockSpec((1, 3 * H), lambda b, t: (0, 0)),
            pl.BlockSpec((1, 3 * H), lambda b, t: (0, 0)),
            pl.BlockSpec((H, V), lambda b, t: (0, 0)),         # w_out
            pl.BlockSpec((1, V), lambda b, t: (0, 0)),         # b_out
        ],
        out_specs=(
            pl.BlockSpec((None, TB, V), lambda b, t: (t, b, 0)),        # logp: new block every t
            pl.BlockSpec((None, max_len, TB), lambda b, t: (b, 0, 0)),  # seq: resident per tile
            pl.BlockSpec((TB, 1), lambda b, t: (b, 0)),                 # len: resident per tile
        ),
        scratch_shapes=[
            pltpu.VMEM((TB, H), f32),          # hidden state carried across time
            pltpu.VMEM((TB, 1), jnp.int32),    # previous symbol carried across time
        ],
        compiler_params=pltpu.CompilerParams(
            dimension_semantics=("parallel", "arbitrary"),
            vmem_limit_bytes=vmem_limit),
    )(enc_hidden,
      params["emb_dec"].astype(cd),
      params["dec_w_ih"].astype(cd), params["dec_w_hh"].astype(cd),
      params["dec_b_ih"].astype(f32), params["dec_b_hh"].astype(f32),
      params["w_out"].astype(cd), params["b_out"].astype(f32))

    out_seqs = jnp.transpose(seq_btile, (0, 2, 1)).reshape(B, max_len)  # KEY_SEQUENCE
    out_lengths = lens[:, 0]                                            # KEY_LENGTH
    step_probs = step_logp                                              # per-step log_softmax
    return out_seqs, out_lengths, step_probs


# ---------------------------------------------------------------------------
# Deterministic parameter construction + example run
# ---------------------------------------------------------------------------
def make_params(key, *, vocab, emb, hidden):
    ks = jax.random.split(key, 8)
    s = 0.2
    return {
        "emb_enc": s * jax.random.normal(ks[0], (vocab, emb), jnp.float32),
        "emb_dec": s * jax.random.normal(ks[1], (vocab, emb), jnp.float32),
        "enc_w_ih": s * jax.random.normal(ks[2], (emb, 3 * hidden), jnp.float32),
        "enc_w_hh": s * jax.random.normal(ks[3], (hidden, 3 * hidden), jnp.float32),
        "enc_b_ih": jnp.zeros((1, 3 * hidden), jnp.float32),
        "enc_b_hh": jnp.zeros((1, 3 * hidden), jnp.float32),
        "dec_w_ih": s * jax.random.normal(ks[4], (emb, 3 * hidden), jnp.float32),
        "dec_w_hh": s * jax.random.normal(ks[5], (hidden, 3 * hidden), jnp.float32),
        "dec_b_ih": jnp.zeros((1, 3 * hidden), jnp.float32),
        "dec_b_hh": jnp.zeros((1, 3 * hidden), jnp.float32),
        "w_out": s * jax.random.normal(ks[6], (hidden, vocab), jnp.float32),
        "b_out": jnp.zeros((1, vocab), jnp.float32),
    }


if __name__ == "__main__":
    B, T_IN, MAX_LEN = 16, 8, 8
    VOCAB, EMB, HIDDEN = 128, 128, 128            # 128-aligned (MXU / lane dense)
    SOS_ID, EOS_ID = 1, 2

    key = jax.random.PRNGKey(0)
    k_param, k_inp = jax.random.split(key)
    params = make_params(k_param, vocab=VOCAB, emb=EMB, hidden=HIDDEN)
    input_ids = jax.random.randint(k_inp, (B, T_IN), 3, VOCAB, dtype=jnp.int32)

    fwd = jax.jit(functools.partial(reinforce_generator_forward,
                                    max_len=MAX_LEN, sos_id=SOS_ID, eos_id=EOS_ID))
    out_seqs, out_lengths, step_probs = fwd(input_ids, params)
    jax.block_until_ready((out_seqs, out_lengths, step_probs))

    assert out_seqs.shape == (B, MAX_LEN) and out_seqs.dtype == jnp.int32
    assert out_lengths.shape == (B,) and out_lengths.dtype == jnp.int32
    assert step_probs.shape == (MAX_LEN, B, VOCAB) and step_probs.dtype == jnp.float32
    # each step's output is a valid log-softmax distribution
    assert bool(jnp.all(jnp.abs(jnp.sum(jnp.exp(step_probs), axis=-1) - 1.0) < 1e-4))
    # symbols in vocab, lengths in [1, MAX_LEN]
    assert bool(jnp.all((out_seqs >= 0) & (out_seqs < VOCAB)))
    assert bool(jnp.all((out_lengths >= 1) & (out_lengths <= MAX_LEN)))

    print("KERNEL_OK")
</pallas_src>

<mosaic_0001>
module attributes {stable_mosaic.version = 11 : i64} {
  func.func @decoder_kernel(%arg0: i32, %arg1: i32, %arg2: memref<8x128xf32, #tpu.memory_space<vmem>>, %arg3: memref<128x128xbf16, #tpu.memory_space<vmem>>, %arg4: memref<128x384xbf16, #tpu.memory_space<vmem>>, %arg5: memref<128x384xbf16, #tpu.memory_space<vmem>>, %arg6: memref<1x384xf32, #tpu.memory_space<vmem>>, %arg7: memref<1x384xf32, #tpu.memory_space<vmem>>, %arg8: memref<128x128xbf16, #tpu.memory_space<vmem>>, %arg9: memref<1x128xf32, #tpu.memory_space<vmem>>, %arg10: memref<1x8x128xf32, #tpu.memory_space<vmem>>, %arg11: memref<1x8x8xi32, #tpu.memory_space<vmem>>, %arg12: memref<8x1xi32, #tpu.memory_space<vmem>>, %arg13: memref<8x128xf32, #tpu.memory_space<vmem>>, %arg14: memref<8x1xi32, #tpu.memory_space<vmem>>) attributes {dimension_semantics = [#tpu.dimension_semantics<parallel>, #tpu.dimension_semantics<arbitrary>], iteration_bounds = array<i64: 2, 8>, scalar_prefetch = 0 : i64, scratch_operands = 2 : i64, tpu.core_type = #tpu.core_type<tc>, window_params = [{transform_indices = @transform_0, window_bounds = array<i64: 8, 128>}, {pipeline_mode = #tpu.pipeline_mode<synchronous>, transform_indices = @transform_1, window_bounds = array<i64: 128, 128>}, {pipeline_mode = #tpu.pipeline_mode<synchronous>, transform_indices = @transform_2, window_bounds = array<i64: 128, 384>}, {pipeline_mode = #tpu.pipeline_mode<synchronous>, transform_indices = @transform_3, window_bounds = array<i64: 128, 384>}, {pipeline_mode = #tpu.pipeline_mode<synchronous>, transform_indices = @transform_4, window_bounds = array<i64: 1, 384>}, {pipeline_mode = #tpu.pipeline_mode<synchronous>, transform_indices = @transform_5, window_bounds = array<i64: 1, 384>}, {pipeline_mode = #tpu.pipeline_mode<synchronous>, transform_indices = @transform_6, window_bounds = array<i64: 128, 128>}, {pipeline_mode = #tpu.pipeline_mode<synchronous>, transform_indices = @transform_7, window_bounds = array<i64: 1, 128>}, {transform_indices = @transform_8, window_bounds = array<i64: 1, 8, 128>}, {transform_indices = @transform_9, window_bounds = array<i64: 1, 8, 8>}, {transform_indices = @transform_10, window_bounds = array<i64: 8, 1>}]} {
    %c0_i32 = arith.constant 0 : i32
    %0 = arith.cmpi eq, %arg1, %c0_i32 : i32
    %1 = arith.extui %0 : i1 to i32
    %c0_i32_0 = arith.constant 0 : i32
    %2 = arith.cmpi ne, %1, %c0_i32_0 : i32
    scf.if %2 {
      %c0_40 = arith.constant 0 : index
      %c0_41 = arith.constant 0 : index
      %93 = vector.load %arg2[%c0_40, %c0_41] : memref<8x128xf32, #tpu.memory_space<vmem>>, vector<8x128xf32>
      %c0_42 = arith.constant 0 : index
      %c0_43 = arith.constant 0 : index
      %94 = vector.load %arg13[%c0_42, %c0_43] : memref<8x128xf32, #tpu.memory_space<vmem>>, vector<8x128xf32>
      tpu.vector_store %arg13[%c0_42, %c0_43], %93 {strides = array<i32>} : memref<8x128xf32, #tpu.memory_space<vmem>>, vector<8x128xf32>,
      %c1_i32_44 = arith.constant 1 : i32
      %95 = vector.broadcast %c1_i32_44 : i32 to vector<8x1xi32>
      %c0_45 = arith.constant 0 : index
      %c0_46 = arith.constant 0 : index
      %96 = vector.load %arg14[%c0_45, %c0_46] : memref<8x1xi32, #tpu.memory_space<vmem>>, vector<8x1xi32>
      tpu.vector_store %arg14[%c0_45, %c0_46], %95 {strides = array<i32>} : memref<8x1xi32, #tpu.memory_space<vmem>>, vector<8x1xi32>,
      %c8_i32 = arith.constant 8 : i32
      %97 = vector.broadcast %c8_i32 : i32 to vector<8x1xi32>
      %c0_47 = arith.constant 0 : index
      %c0_48 = arith.constant 0 : index
      %98 = vector.load %arg12[%c0_47, %c0_48] : memref<8x1xi32, #tpu.memory_space<vmem>>, vector<8x1xi32>
      tpu.vector_store %arg12[%c0_47, %c0_48], %97 {strides = array<i32>} : memref<8x1xi32, #tpu.memory_space<vmem>>, vector<8x1xi32>,
    } else {
    }
    %c0 = arith.constant 0 : index
    %c0_1 = arith.constant 0 : index
    %3 = vector.load %arg13[%c0, %c0_1] : memref<8x128xf32, #tpu.memory_space<vmem>>, vector<8x128xf32>
    %c0_2 = arith.constant 0 : index
    %c0_3 = arith.constant 0 : index
    %4 = vector.load %arg14[%c0_2, %c0_3] : memref<8x1xi32, #tpu.memory_space<vmem>>, vector<8x1xi32>
    %5 = tpu.iota {dimensions = array<i32: 1>} : vector<8x128xi32>
    %c0_4 = arith.constant 0 : index
    %c0_5 = arith.constant 0 : index
    %6 = vector.load %arg3[%c0_4, %c0_5] : memref<128x128xbf16, #tpu.memory_space<vmem>>, vector<128x128xbf16>
    %7 = vector.broadcast %4 : vector<8x1xi32> to vector<8x128xi32>
    %8 = arith.cmpi eq, %5, %7 : vector<8x128xi32>
    %9 = arith.extui %8 : vector<8x128xi1> to vector<8x128xi32>
    %10 = arith.sitofp %9 : vector<8x128xi32> to vector<8x128xf32>
    %11 = arith.truncf %10 : vector<8x128xf32> to vector<8x128xbf16>
    %cst = arith.constant dense<0.000000e+00> : vector<8x128xf32>
    %12 = tpu.matmul %11, %6, %cst {dimension_numbers = #tpu.dot_dimension_numbers<[1], [0], [0], [1], [0, 0, 1, 1], [], []>} : vector<8x128xbf16>, vector<128x128xbf16>, vector<8x128xf32> -> vector<8x128xf32>
    %c0_6 = arith.constant 0 : index
    %c0_7 = arith.constant 0 : index
    %13 = vector.load %arg4[%c0_6, %c0_7] : memref<128x384xbf16, #tpu.memory_space<vmem>>, vector<128x384xbf16>
    %c0_8 = arith.constant 0 : index
    %c0_9 = arith.constant 0 : index
    %14 = vector.load %arg5[%c0_8, %c0_9] : memref<128x384xbf16, #tpu.memory_space<vmem>>, vector<128x384xbf16>
    %c0_10 = arith.constant 0 : index
    %c0_11 = arith.constant 0 : index
    %15 = vector.load %arg6[%c0_10, %c0_11] : memref<1x384xf32, #tpu.memory_space<vmem>>, vector<1x384xf32>
    %c0_12 = arith.constant 0 : index
    %c0_13 = arith.constant 0 : index
    %16 = vector.load %arg7[%c0_12, %c0_13] : memref<1x384xf32, #tpu.memory_space<vmem>>, vector<1x384xf32>
    %17 = arith.truncf %12 : vector<8x128xf32> to vector<8x128xbf16>
    %cst_14 = arith.constant dense<0.000000e+00> : vector<8x384xf32>
    %18 = tpu.matmul %17, %13, %cst_14 {dimension_numbers = #tpu.dot_dimension_numbers<[1], [0], [0], [1], [0, 0, 1, 1], [], []>} : vector<8x128xbf16>, vector<128x384xbf16>, vector<8x384xf32> -> vector<8x384xf32>
    %19 = vector.broadcast %15 : vector<1x384xf32> to vector<8x384xf32>
    %20 = arith.addf %18, %19 : vector<8x384xf32>
    %21 = arith.truncf %3 : vector<8x128xf32> to vector<8x128xbf16>
    %cst_15 = arith.constant dense<0.000000e+00> : vector<8x384xf32>
    %22 = tpu.matmul %21, %14, %cst_15 {dimension_numbers = #tpu.dot_dimension_numbers<[1], [0], [0], [1], [0, 0, 1, 1], [], []>} : vector<8x128xbf16>, vector<128x384xbf16>, vector<8x384xf32> -> vector<8x384xf32>
    %23 = vector.broadcast %16 : vector<1x384xf32> to vector<8x384xf32>
    %24 = arith.addf %22, %23 : vector<8x384xf32>
    %25 = vector.extract_strided_slice %20 {offsets = [0, 0], sizes = [8, 128], strides = [1, 1]} : vector<8x384xf32> to vector<8x128xf32>
    %26 = vector.extract_strided_slice %20 {offsets = [0, 128], sizes = [8, 128], strides = [1, 1]} : vector<8x384xf32> to vector<8x128xf32>
    %27 = vector.extract_strided_slice %20 {offsets = [0, 256], sizes = [8, 128], strides = [1, 1]} : vector<8x384xf32> to vector<8x128xf32>
    %28 = vector.extract_strided_slice %24 {offsets = [0, 0], sizes = [8, 128], strides = [1, 1]} : vector<8x384xf32> to vector<8x128xf32>
    %29 = vector.extract_strided_slice %24 {offsets = [0, 128], sizes = [8, 128], strides = [1, 1]} : vector<8x384xf32> to vector<8x128xf32>
    %30 = vector.extract_strided_slice %24 {offsets = [0, 256], sizes = [8, 128], strides = [1, 1]} : vector<8x384xf32> to vector<8x128xf32>
    %31 = arith.addf %25, %28 : vector<8x128xf32>
    %32 = arith.negf %31 : vector<8x128xf32>
    %33 = math.exp %32 : vector<8x128xf32>
    %cst_16 = arith.constant 1.000000e+00 : f32
    %34 = vector.broadcast %cst_16 : f32 to vector<8x128xf32>
    %35 = arith.addf %34, %33 : vector<8x128xf32>
    %36 = arith.divf %34, %35 : vector<8x128xf32>
    %37 = arith.addf %26, %29 : vector<8x128xf32>
    %38 = arith.negf %37 : vector<8x128xf32>
    %39 = math.exp %38 : vector<8x128xf32>
    %cst_17 = arith.constant 1.000000e+00 : f32
    %40 = vector.broadcast %cst_17 : f32 to vector<8x128xf32>
    %41 = arith.addf %40, %39 : vector<8x128xf32>
    %42 = arith.divf %40, %41 : vector<8x128xf32>
    %43 = arith.mulf %36, %30 : vector<8x128xf32>
    %44 = arith.addf %27, %43 : vector<8x128xf32>
    %45 = math.tanh %44 : vector<8x128xf32>
    %cst_18 = arith.constant 1.000000e+00 : f32
    %46 = vector.broadcast %cst_18 : f32 to vector<8x128xf32>
    %47 = arith.subf %46, %42 : vector<8x128xf32>
    %48 = arith.mulf %47, %45 : vector<8x128xf32>
    %49 = arith.mulf %42, %3 : vector<8x128xf32>
    %50 = arith.addf %48, %49 : vector<8x128xf32>
    %c0_19 = arith.constant 0 : index
    %c0_20 = arith.constant 0 : index
    %51 = vector.load %arg8[%c0_19, %c0_20] : memref<128x128xbf16, #tpu.memory_space<vmem>>, vector<128x128xbf16>
    %52 = arith.truncf %50 : vector<8x128xf32> to vector<8x128xbf16>
    %cst_21 = arith.constant dense<0.000000e+00> : vector<8x128xf32>
    %53 = tpu.matmul %52, %51, %cst_21 {dimension_numbers = #tpu.dot_dimension_numbers<[1], [0], [0], [1], [0, 0, 1, 1], [], []>} : vector<8x128xbf16>, vector<128x128xbf16>, vector<8x128xf32> -> vector<8x128xf32>
    %c0_22 = arith.constant 0 : index
    %c0_23 = arith.constant 0 : index
    %54 = vector.load %arg9[%c0_22, %c0_23] : memref<1x128xf32, #tpu.memory_space<vmem>>, vector<1x128xf32>
    %55 = vector.broadcast %54 : vector<1x128xf32> to vector<8x128xf32>
    %56 = arith.addf %53, %55 : vector<8x128xf32>
    %cst_24 = arith.constant dense<0xFF800000> : vector<8xf32>
    %57 = vector.multi_reduction <maximumf>, %56, %cst_24 [1] : vector<8x128xf32> to vector<8xf32>
    %58 = vector.shape_cast %57 : vector<8xf32> to vector<8x1xf32>
    %59 = vector.broadcast %58 : vector<8x1xf32> to vector<8x128xf32>
    %60 = arith.subf %56, %59 : vector<8x128xf32>
    %61 = math.exp %60 : vector<8x128xf32>
    %cst_25 = arith.constant dense<0.000000e+00> : vector<8xf32>
    %62 = vector.multi_reduction <add>, %61, %cst_25 [1] : vector<8x128xf32> to vector<8xf32>
    %63 = vector.shape_cast %62 : vector<8xf32> to vector<8x1xf32>
    %64 = math.log %63 : vector<8x1xf32>
    %65 = vector.broadcast %64 : vector<8x1xf32> to vector<8x128xf32>
    %66 = arith.subf %60, %65 : vector<8x128xf32>
    %c0_26 = arith.constant 0 : index
    %c0_27 = arith.constant 0 : index
    %c0_28 = arith.constant 0 : index
    %67 = vector.load %arg10[%c0_26, %c0_27, %c0_28] : memref<1x8x128xf32, #tpu.memory_space<vmem>>, vector<1x8x128xf32>
    %68 = vector.shape_cast %67 : vector<1x8x128xf32> to vector<8x128xf32>
    %69 = vector.shape_cast %66 : vector<8x128xf32> to vector<1x8x128xf32>
    tpu.vector_store %arg10[%c0_26, %c0_27, %c0_28], %69 {strides = array<i32>} : memref<1x8x128xf32, #tpu.memory_space<vmem>>, vector<1x8x128xf32>,
    %70 = vector.broadcast %58 : vector<8x1xf32> to vector<8x128xf32>
    %71 = arith.cmpf oeq, %56, %70 : vector<8x128xf32>
    %c127_i32 = arith.constant 127 : i32
    %72 = vector.broadcast %c127_i32 : i32 to vector<8x128xi32>
    %73 = arith.select %71, %5, %72 : vector<8x128xi1>, vector<8x128xi32>
    %cst_29 = arith.constant dense<2147483647> : vector<8xi32>
    %74 = vector.multi_reduction <minsi>, %73, %cst_29 [1] : vector<8x128xi32> to vector<8xi32>
    %75 = vector.shape_cast %74 : vector<8xi32> to vector<8x1xi32>
    %76 = tpu.transpose %75, [1, 0] : vector<8x1xi32> -> vector<1x8xi32>
    %c0_30 = arith.constant 0 : index
    %77 = arith.index_cast %arg1 : i32 to index
    %c0_31 = arith.constant 0 : index
    %78 = vector.load %arg11[%c0_30, %77, %c0_31] : memref<1x8x8xi32, #tpu.memory_space<vmem>>, vector<1x1x8xi32>
    %79 = vector.shape_cast %78 : vector<1x1x8xi32> to vector<1x8xi32>
    %80 = vector.shape_cast %76 : vector<1x8xi32> to vector<1x1x8xi32>
    tpu.vector_store %arg11[%c0_30, %77, %c0_31], %80 {strides = array<i32>} : memref<1x8x8xi32, #tpu.memory_space<vmem>>, vector<1x1x8xi32>,
    %c0_32 = arith.constant 0 : index
    %c0_33 = arith.constant 0 : index
    %81 = vector.load %arg12[%c0_32, %c0_33] : memref<8x1xi32, #tpu.memory_space<vmem>>, vector<8x1xi32>
    %c2_i32 = arith.constant 2 : i32
    %82 = vector.broadcast %c2_i32 : i32 to vector<8x1xi32>
    %83 = arith.cmpi eq, %75, %82 : vector<8x1xi32>
    %84 = vector.broadcast %arg1 : i32 to vector<8x1xi32>
    %85 = arith.cmpi sgt, %81, %84 : vector<8x1xi32>
    %86 = arith.andi %83, %85 : vector<8x1xi1>
    %c1_i32 = arith.constant 1 : i32
    %87 = arith.addi %arg1, %c1_i32 : i32
    %88 = vector.broadcast %87 : i32 to vector<8x1xi32>
    %89 = arith.select %86, %88, %81 : vector<8x1xi1>, vector<8x1xi32>
    %c0_34 = arith.constant 0 : index
    %c0_35 = arith.constant 0 : index
    %90 = vector.load %arg12[%c0_34, %c0_35] : memref<8x1xi32, #tpu.memory_space<vmem>>, vector<8x1xi32>
    tpu.vector_store %arg12[%c0_34, %c0_35], %89 {strides = array<i32>} : memref<8x1xi32, #tpu.memory_space<vmem>>, vector<8x1xi32>,
    %c0_36 = arith.constant 0 : index
    %c0_37 = arith.constant 0 : index
    %91 = vector.load %arg13[%c0_36, %c0_37] : memref<8x128xf32, #tpu.memory_space<vmem>>, vector<8x128xf32>
    tpu.vector_store %arg13[%c0_36, %c0_37], %50 {strides = array<i32>} : memref<8x128xf32, #tpu.memory_space<vmem>>, vector<8x128xf32>,
    %c0_38 = arith.constant 0 : index
    %c0_39 = arith.constant 0 : index
    %92 = vector.load %arg14[%c0_38, %c0_39] : memref<8x1xi32, #tpu.memory_space<vmem>>, vector<8x1xi32>
    tpu.vector_store %arg14[%c0_38, %c0_39], %75 {strides = array<i32>} : memref<8x1xi32, #tpu.memory_space<vmem>>, vector<8x1xi32>,
    return
  }
  func.func @transform_0(%arg0: i32, %arg1: i32) -> (i32, i32) {
    %c0_i32 = arith.constant 0 : i32
    %c0_i32_0 = arith.constant 0 : i32
    return %arg0, %c0_i32 : i32, i32
  }
  func.func @transform_1(%arg0: i32, %arg1: i32) -> (i32, i32) {
    %c0_i32 = arith.constant 0 : i32
    %c0_i32_0 = arith.constant 0 : i32
    %c0_i32_1 = arith.constant 0 : i32
    return %c0_i32, %c0_i32_0 : i32, i32
  }
  func.func @transform_2(%arg0: i32, %arg1: i32) -> (i32, i32) {
    %c0_i32 = arith.constant 0 : i32
    %c0_i32_0 = arith.constant 0 : i32
    %c0_i32_1 = arith.constant 0 : i32
    return %c0_i32, %c0_i32_0 : i32, i32
  }
  func.func @transform_3(%arg0: i32, %arg1: i32) -> (i32, i32) {
    %c0_i32 = arith.constant 0 : i32
    %c0_i32_0 = arith.constant 0 : i32
    %c0_i32_1 = arith.constant 0 : i32
    return %c0_i32, %c0_i32_0 : i32, i32
  }
  func.func @transform_4(%arg0: i32, %arg1: i32) -> (i32, i32) {
    %c0_i32 = arith.constant 0 : i32
    %c0_i32_0 = arith.constant 0 : i32
    %c0_i32_1 = arith.constant 0 : i32
    return %c0_i32, %c0_i32_0 : i32, i32
  }
  func.func @transform_5(%arg0: i32, %arg1: i32) -> (i32, i32) {
    %c0_i32 = arith.constant 0 : i32
    %c0_i32_0 = arith.constant 0 : i32
    %c0_i32_1 = arith.constant 0 : i32
    return %c0_i32, %c0_i32_0 : i32, i32
  }
  func.func @transform_6(%arg0: i32, %arg1: i32) -> (i32, i32) {
    %c0_i32 = arith.constant 0 : i32
    %c0_i32_0 = arith.constant 0 : i32
    %c0_i32_1 = arith.constant 0 : i32
    return %c0_i32, %c0_i32_0 : i32, i32
  }
  func.func @transform_7(%arg0: i32, %arg1: i32) -> (i32, i32) {
    %c0_i32 = arith.constant 0 : i32
    %c0_i32_0 = arith.constant 0 : i32
    %c0_i32_1 = arith.constant 0 : i32
    return %c0_i32, %c0_i32_0 : i32, i32
  }
  func.func @transform_8(%arg0: i32, %arg1: i32) -> (i32, i32, i32) {
    %c0_i32 = arith.constant 0 : i32
    %c0_i32_0 = arith.constant 0 : i32
    return %arg1, %arg0, %c0_i32 : i32, i32, i32
  }
  func.func @transform_9(%arg0: i32, %arg1: i32) -> (i32, i32, i32) {
    %c0_i32 = arith.constant 0 : i32
    %c0_i32_0 = arith.constant 0 : i32
    %c0_i32_1 = arith.constant 0 : i32
    return %arg0, %c0_i32, %c0_i32_0 : i32, i32, i32
  }
  func.func @transform_10(%arg0: i32, %arg1: i32) -> (i32, i32) {
    %c0_i32 = arith.constant 0 : i32
    %c0_i32_0 = arith.constant 0 : i32
    return %arg0, %c0_i32 : i32, i32
  }
}

module attributes {stable_mosaic.version = 11 : i64} {
  func.func @encoder_kernel(%arg0: i32, %arg1: memref<8x8x128xbf16, #tpu.memory_space<vmem>>, %arg2: memref<128x384xbf16, #tpu.memory_space<vmem>>, %arg3: memref<128x384xbf16, #tpu.memory_space<vmem>>, %arg4: memref<1x384xf32, #tpu.memory_space<vmem>>, %arg5: memref<1x384xf32, #tpu.memory_space<vmem>>, %arg6: memref<8x128xf32, #tpu.memory_space<vmem>>) attributes {dimension_semantics = [#tpu.dimension_semantics<parallel>], iteration_bounds = array<i64: 2>, scalar_prefetch = 0 : i64, scratch_operands = 0 : i64, tpu.core_type = #tpu.core_type<tc>, window_params = [{transform_indices = @transform_0, window_bounds = array<i64: 8, 8, 128>}, {pipeline_mode = #tpu.pipeline_mode<synchronous>, transform_indices = @transform_1, window_bounds = array<i64: 128, 384>}, {pipeline_mode = #tpu.pipeline_mode<synchronous>, transform_indices = @transform_2, window_bounds = array<i64: 128, 384>}, {pipeline_mode = #tpu.pipeline_mode<synchronous>, transform_indices = @transform_3, window_bounds = array<i64: 1, 384>}, {pipeline_mode = #tpu.pipeline_mode<synchronous>, transform_indices = @transform_4, window_bounds = array<i64: 1, 384>}, {transform_indices = @transform_5, window_bounds = array<i64: 8, 128>}]} {
    %c0 = arith.constant 0 : index
    %c0_0 = arith.constant 0 : index
    %0 = vector.load %arg2[%c0, %c0_0] : memref<128x384xbf16, #tpu.memory_space<vmem>>, vector<128x384xbf16>
    %c0_1 = arith.constant 0 : index
    %c0_2 = arith.constant 0 : index
    %1 = vector.load %arg3[%c0_1, %c0_2] : memref<128x384xbf16, #tpu.memory_space<vmem>>, vector<128x384xbf16>
    %c0_3 = arith.constant 0 : index
    %c0_4 = arith.constant 0 : index
    %2 = vector.load %arg4[%c0_3, %c0_4] : memref<1x384xf32, #tpu.memory_space<vmem>>, vector<1x384xf32>
    %3 = vector.shape_cast %2 : vector<1x384xf32> to vector<1x384xf32>
    %4 = vector.broadcast %3 : vector<1x384xf32> to vector<8x384xf32>
    %c0_5 = arith.constant 0 : index
    %c0_6 = arith.constant 0 : index
    %5 = vector.load %arg5[%c0_5, %c0_6] : memref<1x384xf32, #tpu.memory_space<vmem>>, vector<1x384xf32>
    %6 = vector.shape_cast %5 : vector<1x384xf32> to vector<1x384xf32>
    %7 = vector.broadcast %6 : vector<1x384xf32> to vector<8x384xf32>
    %cst = arith.constant 0.000000e+00 : f32
    %8 = vector.broadcast %cst : f32 to vector<8x128xf32>
    %c0_i32 = arith.constant 0 : i32
    %9 = arith.index_cast %c0_i32 : i32 to index
    %c0_7 = arith.constant 0 : index
    %c0_8 = arith.constant 0 : index
    %10 = vector.load %arg1[%9, %c0_7, %c0_8] : memref<8x8x128xbf16, #tpu.memory_space<vmem>>, vector<1x8x128xbf16>
    %11 = vector.shape_cast %10 : vector<1x8x128xbf16> to vector<8x128xbf16>
    %cst_9 = arith.constant dense<0.000000e+00> : vector<8x384xf32>
    %12 = tpu.matmul %11, %0, %cst_9 {dimension_numbers = #tpu.dot_dimension_numbers<[1], [0], [0], [1], [0, 0, 1, 1], [], []>} : vector<8x128xbf16>, vector<128x384xbf16>, vector<8x384xf32> -> vector<8x384xf32>
    %13 = arith.addf %12, %4 : vector<8x384xf32>
    %14 = arith.truncf %8 : vector<8x128xf32> to vector<8x128xbf16>
    %cst_10 = arith.constant dense<0.000000e+00> : vector<8x384xf32>
    %15 = tpu.matmul %14, %1, %cst_10 {dimension_numbers = #tpu.dot_dimension_numbers<[1], [0], [0], [1], [0, 0, 1, 1], [], []>} : vector<8x128xbf16>, vector<128x384xbf16>, vector<8x384xf32> -> vector<8x384xf32>
    %16 = arith.addf %15, %7 : vector<8x384xf32>
    %17 = vector.extract_strided_slice %13 {offsets = [0, 0], sizes = [8, 128], strides = [1, 1]} : vector<8x384xf32> to vector<8x128xf32>
    %18 = vector.extract_strided_slice %13 {offsets = [0, 128], sizes = [8, 128], strides = [1, 1]} : vector<8x384xf32> to vector<8x128xf32>
    %19 = vector.extract_strided_slice %13 {offsets = [0, 256], sizes = [8, 128], strides = [1, 1]} : vector<8x384xf32> to vector<8x128xf32>
    %20 = vector.extract_strided_slice %16 {offsets = [0, 0], sizes = [8, 128], strides = [1, 1]} : vector<8x384xf32> to vector<8x128xf32>
    %21 = vector.extract_strided_slice %16 {offsets = [0, 128], sizes = [8, 128], strides = [1, 1]} : vector<8x384xf32> to vector<8x128xf32>
    %22 = vector.extract_strided_slice %16 {offsets = [0, 256], sizes = [8, 128], strides = [1, 1]} : vector<8x384xf32> to vector<8x128xf32>
    %23 = arith.addf %17, %20 : vector<8x128xf32>
    %24 = arith.negf %23 : vector<8x128xf32>
    %25 = math.exp %24 : vector<8x128xf32>
    %cst_11 = arith.constant 1.000000e+00 : f32
    %26 = vector.broadcast %cst_11 : f32 to vector<8x128xf32>
    %27 = arith.addf %26, %25 : vector<8x128xf32>
    %28 = arith.divf %26, %27 : vector<8x128xf32>
    %29 = arith.addf %18, %21 : vector<8x128xf32>
    %30 = arith.negf %29 : vector<8x128xf32>
    %31 = math.exp %30 : vector<8x128xf32>
    %cst_12 = arith.constant 1.000000e+00 : f32
    %32 = vector.broadcast %cst_12 : f32 to vector<8x128xf32>
    %33 = arith.addf %32, %31 : vector<8x128xf32>
    %34 = arith.divf %32, %33 : vector<8x128xf32>
    %35 = arith.mulf %28, %22 : vector<8x128xf32>
    %36 = arith.addf %19, %35 : vector<8x128xf32>
    %37 = math.tanh %36 : vector<8x128xf32>
    %cst_13 = arith.constant 1.000000e+00 : f32
    %38 = vector.broadcast %cst_13 : f32 to vector<8x128xf32>
    %39 = arith.subf %38, %34 : vector<8x128xf32>
    %40 = arith.mulf %39, %37 : vector<8x128xf32>
    %41 = arith.mulf %34, %8 : vector<8x128xf32>
    %42 = arith.addf %40, %41 : vector<8x128xf32>
    %c1_i32 = arith.constant 1 : i32
    %43 = arith.index_cast %c1_i32 : i32 to index
    %c0_14 = arith.constant 0 : index
    %c0_15 = arith.constant 0 : index
    %44 = vector.load %arg1[%43, %c0_14, %c0_15] : memref<8x8x128xbf16, #tpu.memory_space<vmem>>, vector<1x8x128xbf16>
    %45 = vector.shape_cast %44 : vector<1x8x128xbf16> to vector<8x128xbf16>
    %cst_16 = arith.constant dense<0.000000e+00> : vector<8x384xf32>
    %46 = tpu.matmul %45, %0, %cst_16 {dimension_numbers = #tpu.dot_dimension_numbers<[1], [0], [0], [1], [0, 0, 1, 1], [], []>} : vector<8x128xbf16>, vector<128x384xbf16>, vector<8x384xf32> -> vector<8x384xf32>
    %47 = arith.addf %46, %4 : vector<8x384xf32>
    %48 = arith.truncf %42 : vector<8x128xf32> to vector<8x128xbf16>
    %cst_17 = arith.constant dense<0.000000e+00> : vector<8x384xf32>
    %49 = tpu.matmul %48, %1, %cst_17 {dimension_numbers = #tpu.dot_dimension_numbers<[1], [0], [0], [1], [0, 0, 1, 1], [], []>} : vector<8x128xbf16>, vector<128x384xbf16>, vector<8x384xf32> -> vector<8x384xf32>
    %50 = arith.addf %49, %7 : vector<8x384xf32>
    %51 = vector.extract_strided_slice %47 {offsets = [0, 0], sizes = [8, 128], strides = [1, 1]} : vector<8x384xf32> to vector<8x128xf32>
    %52 = vector.extract_strided_slice %47 {offsets = [0, 128], sizes = [8, 128], strides = [1, 1]} : vector<8x384xf32> to vector<8x128xf32>
    %53 = vector.extract_strided_slice %47 {offsets = [0, 256], sizes = [8, 128], strides = [1, 1]} : vector<8x384xf32> to vector<8x128xf32>
    %54 = vector.extract_strided_slice %50 {offsets = [0, 0], sizes = [8, 128], strides = [1, 1]} : vector<8x384xf32> to vector<8x128xf32>
    %55 = vector.extract_strided_slice %50 {offsets = [0, 128], sizes = [8, 128], strides = [1, 1]} : vector<8x384xf32> to vector<8x128xf32>
    %56 = vector.extract_strided_slice %50 {offsets = [0, 256], sizes = [8, 128], strides = [1, 1]} : vector<8x384xf32> to vector<8x128xf32>
    %57 = arith.addf %51, %54 : vector<8x128xf32>
    %58 = arith.negf %57 : vector<8x128xf32>
    %59 = math.exp %58 : vector<8x128xf32>
    %cst_18 = arith.constant 1.000000e+00 : f32
    %60 = vector.broadcast %cst_18 : f32 to vector<8x128xf32>
    %61 = arith.addf %60, %59 : vector<8x128xf32>
    %62 = arith.divf %60, %61 : vector<8x128xf32>
    %63 = arith.addf %52, %55 : vector<8x128xf32>
    %64 = arith.negf %63 : vector<8x128xf32>
    %65 = math.exp %64 : vector<8x128xf32>
    %cst_19 = arith.constant 1.000000e+00 : f32
    %66 = vector.broadcast %cst_19 : f32 to vector<8x128xf32>
    %67 = arith.addf %66, %65 : vector<8x128xf32>
    %68 = arith.divf %66, %67 : vector<8x128xf32>
    %69 = arith.mulf %62, %56 : vector<8x128xf32>
    %70 = arith.addf %53, %69 : vector<8x128xf32>
    %71 = math.tanh %70 : vector<8x128xf32>
    %cst_20 = arith.constant 1.000000e+00 : f32
    %72 = vector.broadcast %cst_20 : f32 to vector<8x128xf32>
    %73 = arith.subf %72, %68 : vector<8x128xf32>
    %74 = arith.mulf %73, %71 : vector<8x128xf32>
    %75 = arith.mulf %68, %42 : vector<8x128xf32>
    %76 = arith.addf %74, %75 : vector<8x128xf32>
    %c2_i32 = arith.constant 2 : i32
    %77 = arith.index_cast %c2_i32 : i32 to index
    %c0_21 = arith.constant 0 : index
    %c0_22 = arith.constant 0 : index
    %78 = vector.load %arg1[%77, %c0_21, %c0_22] : memref<8x8x128xbf16, #tpu.memory_space<vmem>>, vector<1x8x128xbf16>
    %79 = vector.shape_cast %78 : vector<1x8x128xbf16> to vector<8x128xbf16>
    %cst_23 = arith.constant dense<0.000000e+00> : vector<8x384xf32>
    %80 = tpu.matmul %79, %0, %cst_23 {dimension_numbers = #tpu.dot_dimension_numbers<[1], [0], [0], [1], [0, 0, 1, 1], [], []>} : vector<8x128xbf16>, vector<128x384xbf16>, vector<8x384xf32> -> vector<8x384xf32>
    %81 = arith.addf %80, %4 : vector<8x384xf32>
    %82 = arith.truncf %76 : vector<8x128xf32> to vector<8x128xbf16>
    %cst_24 = arith.constant dense<0.000000e+00> : vector<8x384xf32>
    %83 = tpu.matmul %82, %1, %cst_24 {dimension_numbers = #tpu.dot_dimension_numbers<[1], [0], [0], [1], [0, 0, 1, 1], [], []>} : vector<8x128xbf16>, vector<128x384xbf16>, vector<8x384xf32> -> vector<8x384xf32>
    %84 = arith.addf %83, %7 : vector<8x384xf32>
    %85 = vector.extract_strided_slice %81 {offsets = [0, 0], sizes = [8, 128], strides = [1, 1]} : vector<8x384xf32> to vector<8x128xf32>
    %86 = vector.extract_strided_slice %81 {offsets = [0, 128], sizes = [8, 128], strides = [1, 1]} : vector<8x384xf32> to vector<8x128xf32>
    %87 = vector.extract_strided_slice %81 {offsets = [0, 256], sizes = [8, 128], strides = [1, 1]} : vector<8x384xf32> to vector<8x128xf32>
    %88 = vector.extract_strided_slice %84 {offsets = [0, 0], sizes = [8, 128], strides = [1, 1]} : vector<8x384xf32> to vector<8x128xf32>
    %89 = vector.extract_strided_slice %84 {offsets = [0, 128], sizes = [8, 128], strides = [1, 1]} : vector<8x384xf32> to vector<8x128xf32>
    %90 = vector.extract_strided_slice %84 {offsets = [0, 256], sizes = [8, 128], strides = [1, 1]} : vector<8x384xf32> to vector<8x128xf32>
    %91 = arith.addf %85, %88 : vector<8x128xf32>
    %92 = arith.negf %91 : vector<8x128xf32>
    %93 = math.exp %92 : vector<8x128xf32>
    %cst_25 = arith.constant 1.000000e+00 : f32
    %94 = vector.broadcast %cst_25 : f32 to vector<8x128xf32>
    %95 = arith.addf %94, %93 : vector<8x128xf32>
    %96 = arith.divf %94, %95 : vector<8x128xf32>
    %97 = arith.addf %86, %89 : vector<8x128xf32>
    %98 = arith.negf %97 : vector<8x128xf32>
    %99 = math.exp %98 : vector<8x128xf32>
    %cst_26 = arith.constant 1.000000e+00 : f32
    %100 = vector.broadcast %cst_26 : f32 to vector<8x128xf32>
    %101 = arith.addf %100, %99 : vector<8x128xf32>
    %102 = arith.divf %100, %101 : vector<8x128xf32>
    %103 = arith.mulf %96, %90 : vector<8x128xf32>
    %104 = arith.addf %87, %103 : vector<8x128xf32>
    %105 = math.tanh %104 : vector<8x128xf32>
    %cst_27 = arith.constant 1.000000e+00 : f32
    %106 = vector.broadcast %cst_27 : f32 to vector<8x128xf32>
    %107 = arith.subf %106, %102 : vector<8x128xf32>
    %108 = arith.mulf %107, %105 : vector<8x128xf32>
    %109 = arith.mulf %102, %76 : vector<8x128xf32>
    %110 = arith.addf %108, %109 : vector<8x128xf32>
    %c3_i32 = arith.constant 3 : i32
    %111 = arith.index_cast %c3_i32 : i32 to index
    %c0_28 = arith.constant 0 : index
    %c0_29 = arith.constant 0 : index
    %112 = vector.load %arg1[%111, %c0_28, %c0_29] : memref<8x8x128xbf16, #tpu.memory_space<vmem>>, vector<1x8x128xbf16>
    %113 = vector.shape_cast %112 : vector<1x8x128xbf16> to vector<8x128xbf16>
    %cst_30 = arith.constant dense<0.000000e+00> : vector<8x384xf32>
    %114 = tpu.matmul %113, %0, %cst_30 {dimension_numbers = #tpu.dot_dimension_numbers<[1], [0], [0], [1], [0, 0, 1, 1], [], []>} : vector<8x128xbf16>, vector<128x384xbf16>, vector<8x384xf32> -> vector<8x384xf32>
    %115 = arith.addf %114, %4 : vector<8x384xf32>
    %116 = arith.truncf %110 : vector<8x128xf32> to vector<8x128xbf16>
    %cst_31 = arith.constant dense<0.000000e+00> : vector<8x384xf32>
    %117 = tpu.matmul %116, %1, %cst_31 {dimension_numbers = #tpu.dot_dimension_numbers<[1], [0], [0], [1], [0, 0, 1, 1], [], []>} : vector<8x128xbf16>, vector<128x384xbf16>, vector<8x384xf32> -> vector<8x384xf32>
    %118 = arith.addf %117, %7 : vector<8x384xf32>
    %119 = vector.extract_strided_slice %115 {offsets = [0, 0], sizes = [8, 128], strides = [1, 1]} : vector<8x384xf32> to vector<8x128xf32>
    %120 = vector.extract_strided_slice %115 {offsets = [0, 128], sizes = [8, 128], strides = [1, 1]} : vector<8x384xf32> to vector<8x128xf32>
    %121 = vector.extract_strided_slice %115 {offsets = [0, 256], sizes = [8, 128], strides = [1, 1]} : vector<8x384xf32> to vector<8x128xf32>
    %122 = vector.extract_strided_slice %118 {offsets = [0, 0], sizes = [8, 128], strides = [1, 1]} : vector<8x384xf32> to vector<8x128xf32>
    %123 = vector.extract_strided_slice %118 {offsets = [0, 128], sizes = [8, 128], strides = [1, 1]} : vector<8x384xf32> to vector<8x128xf32>
    %124 = vector.extract_strided_slice %118 {offsets = [0, 256], sizes = [8, 128], strides = [1, 1]} : vector<8x384xf32> to vector<8x128xf32>
    %125 = arith.addf %119, %122 : vector<8x128xf32>
    %126 = arith.negf %125 : vector<8x128xf32>
    %127 = math.exp %126 : vector<8x128xf32>
    %cst_32 = arith.constant 1.000000e+00 : f32
    %128 = vector.broadcast %cst_32 : f32 to vector<8x128xf32>
    %129 = arith.addf %128, %127 : vector<8x128xf32>
    %130 = arith.divf %128, %129 : vector<8x128xf32>
    %131 = arith.addf %120, %123 : vector<8x128xf32>
    %132 = arith.negf %131 : vector<8x128xf32>
    %133 = math.exp %132 : vector<8x128xf32>
    %cst_33 = arith.constant 1.000000e+00 : f32
    %134 = vector.broadcast %cst_33 : f32 to vector<8x128xf32>
    %135 = arith.addf %134, %133 : vector<8x128xf32>
    %136 = arith.divf %134, %135 : vector<8x128xf32>
    %137 = arith.mulf %130, %124 : vector<8x128xf32>
    %138 = arith.addf %121, %137 : vector<8x128xf32>
    %139 = math.tanh %138 : vector<8x128xf32>
    %cst_34 = arith.constant 1.000000e+00 : f32
    %140 = vector.broadcast %cst_34 : f32 to vector<8x128xf32>
    %141 = arith.subf %140, %136 : vector<8x128xf32>
    %142 = arith.mulf %141, %139 : vector<8x128xf32>
    %143 = arith.mulf %136, %110 : vector<8x128xf32>
    %144 = arith.addf %142, %143 : vector<8x128xf32>
    %c4_i32 = arith.constant 4 : i32
    %145 = arith.index_cast %c4_i32 : i32 to index
    %c0_35 = arith.constant 0 : index
    %c0_36 = arith.constant 0 : index
    %146 = vector.load %arg1[%145, %c0_35, %c0_36] : memref<8x8x128xbf16, #tpu.memory_space<vmem>>, vector<1x8x128xbf16>
    %147 = vector.shape_cast %146 : vector<1x8x128xbf16> to vector<8x128xbf16>
    %cst_37 = arith.constant dense<0.000000e+00> : vector<8x384xf32>
    %148 = tpu.matmul %147, %0, %cst_37 {dimension_numbers = #tpu.dot_dimension_numbers<[1], [0], [0], [1], [0, 0, 1, 1], [], []>} : vector<8x128xbf16>, vector<128x384xbf16>, vector<8x384xf32> -> vector<8x384xf32>
    %149 = arith.addf %148, %4 : vector<8x384xf32>
    %150 = arith.truncf %144 : vector<8x128xf32> to vector<8x128xbf16>
    %cst_38 = arith.constant dense<0.000000e+00> : vector<8x384xf32>
    %151 = tpu.matmul %150, %1, %cst_38 {dimension_numbers = #tpu.dot_dimension_numbers<[1], [0], [0], [1], [0, 0, 1, 1], [], []>} : vector<8x128xbf16>, vector<128x384xbf16>, vector<8x384xf32> -> vector<8x384xf32>
    %152 = arith.addf %151, %7 : vector<8x384xf32>
    %153 = vector.extract_strided_slice %149 {offsets = [0, 0], sizes = [8, 128], strides = [1, 1]} : vector<8x384xf32> to vector<8x128xf32>
    %154 = vector.extract_strided_slice %149 {offsets = [0, 128], sizes = [8, 128], strides = [1, 1]} : vector<8x384xf32> to vector<8x128xf32>
    %155 = vector.extract_strided_slice %149 {offsets = [0, 256], sizes = [8, 128], strides = [1, 1]} : vector<8x384xf32> to vector<8x128xf32>
    %156 = vector.extract_strided_slice %152 {offsets = [0, 0], sizes = [8, 128], strides = [1, 1]} : vector<8x384xf32> to vector<8x128xf32>
    %157 = vector.extract_strided_slice %152 {offsets = [0, 128], sizes = [8, 128], strides = [1, 1]} : vector<8x384xf32> to vector<8x128xf32>
    %158 = vector.extract_strided_slice %152 {offsets = [0, 256], sizes = [8, 128], strides = [1, 1]} : vector<8x384xf32> to vector<8x128xf32>
    %159 = arith.addf %153, %156 : vector<8x128xf32>
    %160 = arith.negf %159 : vector<8x128xf32>
    %161 = math.exp %160 : vector<8x128xf32>
    %cst_39 = arith.constant 1.000000e+00 : f32
    %162 = vector.broadcast %cst_39 : f32 to vector<8x128xf32>
    %163 = arith.addf %162, %161 : vector<8x128xf32>
    %164 = arith.divf %162, %163 : vector<8x128xf32>
    %165 = arith.addf %154, %157 : vector<8x128xf32>
    %166 = arith.negf %165 : vector<8x128xf32>
    %167 = math.exp %166 : vector<8x128xf32>
    %cst_40 = arith.constant 1.000000e+00 : f32
    %168 = vector.broadcast %cst_40 : f32 to vector<8x128xf32>
    %169 = arith.addf %168, %167 : vector<8x128xf32>
    %170 = arith.divf %168, %169 : vector<8x128xf32>
    %171 = arith.mulf %164, %158 : vector<8x128xf32>
    %172 = arith.addf %155, %171 : vector<8x128xf32>
    %173 = math.tanh %172 : vector<8x128xf32>
    %cst_41 = arith.constant 1.000000e+00 : f32
    %174 = vector.broadcast %cst_41 : f32 to vector<8x128xf32>
    %175 = arith.subf %174, %170 : vector<8x128xf32>
    %176 = arith.mulf %175, %173 : vector<8x128xf32>
    %177 = arith.mulf %170, %144 : vector<8x128xf32>
    %178 = arith.addf %176, %177 : vector<8x128xf32>
    %c5_i32 = arith.constant 5 : i32
    %179 = arith.index_cast %c5_i32 : i32 to index
    %c0_42 = arith.constant 0 : index
    %c0_43 = arith.constant 0 : index
    %180 = vector.load %arg1[%179, %c0_42, %c0_43] : memref<8x8x128xbf16, #tpu.memory_space<vmem>>, vector<1x8x128xbf16>
    %181 = vector.shape_cast %180 : vector<1x8x128xbf16> to vector<8x128xbf16>
    %cst_44 = arith.constant dense<0.000000e+00> : vector<8x384xf32>
    %182 = tpu.matmul %181, %0, %cst_44 {dimension_numbers = #tpu.dot_dimension_numbers<[1], [0], [0], [1], [0, 0, 1, 1], [], []>} : vector<8x128xbf16>, vector<128x384xbf16>, vector<8x384xf32> -> vector<8x384xf32>
    %183 = arith.addf %182, %4 : vector<8x384xf32>
    %184 = arith.truncf %178 : vector<8x128xf32> to vector<8x128xbf16>
    %cst_45 = arith.constant dense<0.000000e+00> : vector<8x384xf32>
    %185 = tpu.matmul %184, %1, %cst_45 {dimension_numbers = #tpu.dot_dimension_numbers<[1], [0], [0], [1], [0, 0, 1, 1], [], []>} : vector<8x128xbf16>, vector<128x384xbf16>, vector<8x384xf32> -> vector<8x384xf32>
    %186 = arith.addf %185, %7 : vector<8x384xf32>
    %187 = vector.extract_strided_slice %183 {offsets = [0, 0], sizes = [8, 128], strides = [1, 1]} : vector<8x384xf32> to vector<8x128xf32>
    %188 = vector.extract_strided_slice %183 {offsets = [0, 128], sizes = [8, 128], strides = [1, 1]} : vector<8x384xf32> to vector<8x128xf32>
    %189 = vector.extract_strided_slice %183 {offsets = [0, 256], sizes = [8, 128], strides = [1, 1]} : vector<8x384xf32> to vector<8x128xf32>
    %190 = vector.extract_strided_slice %186 {offsets = [0, 0], sizes = [8, 128], strides = [1, 1]} : vector<8x384xf32> to vector<8x128xf32>
    %191 = vector.extract_strided_slice %186 {offsets = [0, 128], sizes = [8, 128], strides = [1, 1]} : vector<8x384xf32> to vector<8x128xf32>
    %192 = vector.extract_strided_slice %186 {offsets = [0, 256], sizes = [8, 128], strides = [1, 1]} : vector<8x384xf32> to vector<8x128xf32>
    %193 = arith.addf %187, %190 : vector<8x128xf32>
    %194 = arith.negf %193 : vector<8x128xf32>
    %195 = math.exp %194 : vector<8x128xf32>
    %cst_46 = arith.constant 1.000000e+00 : f32
    %196 = vector.broadcast %cst_46 : f32 to vector<8x128xf32>
    %197 = arith.addf %196, %195 : vector<8x128xf32>
    %198 = arith.divf %196, %197 : vector<8x128xf32>
    %199 = arith.addf %188, %191 : vector<8x128xf32>
    %200 = arith.negf %199 : vector<8x128xf32>
    %201 = math.exp %200 : vector<8x128xf32>
    %cst_47 = arith.constant 1.000000e+00 : f32
    %202 = vector.broadcast %cst_47 : f32 to vector<8x128xf32>
    %203 = arith.addf %202, %201 : vector<8x128xf32>
    %204 = arith.divf %202, %203 : vector<8x128xf32>
    %205 = arith.mulf %198, %192 : vector<8x128xf32>
    %206 = arith.addf %189, %205 : vector<8x128xf32>
    %207 = math.tanh %206 : vector<8x128xf32>
    %cst_48 = arith.constant 1.000000e+00 : f32
    %208 = vector.broadcast %cst_48 : f32 to vector<8x128xf32>
    %209 = arith.subf %208, %204 : vector<8x128xf32>
    %210 = arith.mulf %209, %207 : vector<8x128xf32>
    %211 = arith.mulf %204, %178 : vector<8x128xf32>
    %212 = arith.addf %210, %211 : vector<8x128xf32>
    %c6_i32 = arith.constant 6 : i32
    %213 = arith.index_cast %c6_i32 : i32 to index
    %c0_49 = arith.constant 0 : index
    %c0_50 = arith.constant 0 : index
    %214 = vector.load %arg1[%213, %c0_49, %c0_50] : memref<8x8x128xbf16, #tpu.memory_space<vmem>>, vector<1x8x128xbf16>
    %215 = vector.shape_cast %214 : vector<1x8x128xbf16> to vector<8x128xbf16>
    %cst_51 = arith.constant dense<0.000000e+00> : vector<8x384xf32>
    %216 = tpu.matmul %215, %0, %cst_51 {dimension_numbers = #tpu.dot_dimension_numbers<[1], [0], [0], [1], [0, 0, 1, 1], [], []>} : vector<8x128xbf16>, vector<128x384xbf16>, vector<8x384xf32> -> vector<8x384xf32>
    %217 = arith.addf %216, %4 : vector<8x384xf32>
    %218 = arith.truncf %212 : vector<8x128xf32> to vector<8x128xbf16>
    %cst_52 = arith.constant dense<0.000000e+00> : vector<8x384xf32>
    %219 = tpu.matmul %218, %1, %cst_52 {dimension_numbers = #tpu.dot_dimension_numbers<[1], [0], [0], [1], [0, 0, 1, 1], [], []>} : vector<8x128xbf16>, vector<128x384xbf16>, vector<8x384xf32> -> vector<8x384xf32>
    %220 = arith.addf %219, %7 : vector<8x384xf32>
    %221 = vector.extract_strided_slice %217 {offsets = [0, 0], sizes = [8, 128], strides = [1, 1]} : vector<8x384xf32> to vector<8x128xf32>
    %222 = vector.extract_strided_slice %217 {offsets = [0, 128], sizes = [8, 128], strides = [1, 1]} : vector<8x384xf32> to vector<8x128xf32>
    %223 = vector.extract_strided_slice %217 {offsets = [0, 256], sizes = [8, 128], strides = [1, 1]} : vector<8x384xf32> to vector<8x128xf32>
    %224 = vector.extract_strided_slice %220 {offsets = [0, 0], sizes = [8, 128], strides = [1, 1]} : vector<8x384xf32> to vector<8x128xf32>
    %225 = vector.extract_strided_slice %220 {offsets = [0, 128], sizes = [8, 128], strides = [1, 1]} : vector<8x384xf32> to vector<8x128xf32>
    %226 = vector.extract_strided_slice %220 {offsets = [0, 256], sizes = [8, 128], strides = [1, 1]} : vector<8x384xf32> to vector<8x128xf32>
    %227 = arith.addf %221, %224 : vector<8x128xf32>
    %228 = arith.negf %227 : vector<8x128xf32>
    %229 = math.exp %228 : vector<8x128xf32>
    %cst_53 = arith.constant 1.000000e+00 : f32
    %230 = vector.broadcast %cst_53 : f32 to vector<8x128xf32>
    %231 = arith.addf %230, %229 : vector<8x128xf32>
    %232 = arith.divf %230, %231 : vector<8x128xf32>
    %233 = arith.addf %222, %225 : vector<8x128xf32>
    %234 = arith.negf %233 : vector<8x128xf32>
    %235 = math.exp %234 : vector<8x128xf32>
    %cst_54 = arith.constant 1.000000e+00 : f32
    %236 = vector.broadcast %cst_54 : f32 to vector<8x128xf32>
    %237 = arith.addf %236, %235 : vector<8x128xf32>
    %238 = arith.divf %236, %237 : vector<8x128xf32>
    %239 = arith.mulf %232, %226 : vector<8x128xf32>
    %240 = arith.addf %223, %239 : vector<8x128xf32>
    %241 = math.tanh %240 : vector<8x128xf32>
    %cst_55 = arith.constant 1.000000e+00 : f32
    %242 = vector.broadcast %cst_55 : f32 to vector<8x128xf32>
    %243 = arith.subf %242, %238 : vector<8x128xf32>
    %244 = arith.mulf %243, %241 : vector<8x128xf32>
    %245 = arith.mulf %238, %212 : vector<8x128xf32>
    %246 = arith.addf %244, %245 : vector<8x128xf32>
    %c7_i32 = arith.constant 7 : i32
    %247 = arith.index_cast %c7_i32 : i32 to index
    %c0_56 = arith.constant 0 : index
    %c0_57 = arith.constant 0 : index
    %248 = vector.load %arg1[%247, %c0_56, %c0_57] : memref<8x8x128xbf16, #tpu.memory_space<vmem>>, vector<1x8x128xbf16>
    %249 = vector.shape_cast %248 : vector<1x8x128xbf16> to vector<8x128xbf16>
    %cst_58 = arith.constant dense<0.000000e+00> : vector<8x384xf32>
    %250 = tpu.matmul %249, %0, %cst_58 {dimension_numbers = #tpu.dot_dimension_numbers<[1], [0], [0], [1], [0, 0, 1, 1], [], []>} : vector<8x128xbf16>, vector<128x384xbf16>, vector<8x384xf32> -> vector<8x384xf32>
    %251 = arith.addf %250, %4 : vector<8x384xf32>
    %252 = arith.truncf %246 : vector<8x128xf32> to vector<8x128xbf16>
    %cst_59 = arith.constant dense<0.000000e+00> : vector<8x384xf32>
    %253 = tpu.matmul %252, %1, %cst_59 {dimension_numbers = #tpu.dot_dimension_numbers<[1], [0], [0], [1], [0, 0, 1, 1], [], []>} : vector<8x128xbf16>, vector<128x384xbf16>, vector<8x384xf32> -> vector<8x384xf32>
    %254 = arith.addf %253, %7 : vector<8x384xf32>
    %255 = vector.extract_strided_slice %251 {offsets = [0, 0], sizes = [8, 128], strides = [1, 1]} : vector<8x384xf32> to vector<8x128xf32>
    %256 = vector.extract_strided_slice %251 {offsets = [0, 128], sizes = [8, 128], strides = [1, 1]} : vector<8x384xf32> to vector<8x128xf32>
    %257 = vector.extract_strided_slice %251 {offsets = [0, 256], sizes = [8, 128], strides = [1, 1]} : vector<8x384xf32> to vector<8x128xf32>
    %258 = vector.extract_strided_slice %254 {offsets = [0, 0], sizes = [8, 128], strides = [1, 1]} : vector<8x384xf32> to vector<8x128xf32>
    %259 = vector.extract_strided_slice %254 {offsets = [0, 128], sizes = [8, 128], strides = [1, 1]} : vector<8x384xf32> to vector<8x128xf32>
    %260 = vector.extract_strided_slice %254 {offsets = [0, 256], sizes = [8, 128], strides = [1, 1]} : vector<8x384xf32> to vector<8x128xf32>
    %261 = arith.addf %255, %258 : vector<8x128xf32>
    %262 = arith.negf %261 : vector<8x128xf32>
    %263 = math.exp %262 : vector<8x128xf32>
    %cst_60 = arith.constant 1.000000e+00 : f32
    %264 = vector.broadcast %cst_60 : f32 to vector<8x128xf32>
    %265 = arith.addf %264, %263 : vector<8x128xf32>
    %266 = arith.divf %264, %265 : vector<8x128xf32>
    %267 = arith.addf %256, %259 : vector<8x128xf32>
    %268 = arith.negf %267 : vector<8x128xf32>
    %269 = math.exp %268 : vector<8x128xf32>
    %cst_61 = arith.constant 1.000000e+00 : f32
    %270 = vector.broadcast %cst_61 : f32 to vector<8x128xf32>
    %271 = arith.addf %270, %269 : vector<8x128xf32>
    %272 = arith.divf %270, %271 : vector<8x128xf32>
    %273 = arith.mulf %266, %260 : vector<8x128xf32>
    %274 = arith.addf %257, %273 : vector<8x128xf32>
    %275 = math.tanh %274 : vector<8x128xf32>
    %cst_62 = arith.constant 1.000000e+00 : f32
    %276 = vector.broadcast %cst_62 : f32 to vector<8x128xf32>
    %277 = arith.subf %276, %272 : vector<8x128xf32>
    %278 = arith.mulf %277, %275 : vector<8x128xf32>
    %279 = arith.mulf %272, %246 : vector<8x128xf32>
    %280 = arith.addf %278, %279 : vector<8x128xf32>
    %c8_i32 = arith.constant 8 : i32
    %c0_63 = arith.constant 0 : index
    %c0_64 = arith.constant 0 : index
    %281 = vector.load %arg6[%c0_63, %c0_64] : memref<8x128xf32, #tpu.memory_space<vmem>>, vector<8x128xf32>
    tpu.vector_store %arg6[%c0_63, %c0_64], %280 {strides = array<i32>} : memref<8x128xf32, #tpu.memory_space<vmem>>, vector<8x128xf32>,
    return
  }
  func.func @transform_0(%arg0: i32) -> (i32, i32, i32) {
    %c0_i32 = arith.constant 0 : i32
    %c0_i32_0 = arith.constant 0 : i32
    %c0_i32_1 = arith.constant 0 : i32
    return %c0_i32, %arg0, %c0_i32_0 : i32, i32, i32
  }
  func.func @transform_1(%arg0: i32) -> (i32, i32) {
    %c0_i32 = arith.constant 0 : i32
    %c0_i32_0 = arith.constant 0 : i32
    %c0_i32_1 = arith.constant 0 : i32
    return %c0_i32, %c0_i32_0 : i32, i32
  }
  func.func @transform_2(%arg0: i32) -> (i32, i32) {
    %c0_i32 = arith.constant 0 : i32
    %c0_i32_0 = arith.constant 0 : i32
    %c0_i32_1 = arith.constant 0 : i32
    return %c0_i32, %c0_i32_0 : i32, i32
  }
  func.func @transform_3(%arg0: i32) -> (i32, i32) {
    %c0_i32 = arith.constant 0 : i32
    %c0_i32_0 = arith.constant 0 : i32
    %c0_i32_1 = arith.constant 0 : i32
    return %c0_i32, %c0_i32_0 : i32, i32
  }
  func.func @transform_4(%arg0: i32) -> (i32, i32) {
    %c0_i32 = arith.constant 0 : i32
    %c0_i32_0 = arith.constant 0 : i32
    %c0_i32_1 = arith.constant 0 : i32
    return %c0_i32, %c0_i32_0 : i32, i32
  }
  func.func @transform_5(%arg0: i32) -> (i32, i32) {
    %c0_i32 = arith.constant 0 : i32
    %c0_i32_0 = arith.constant 0 : i32
    return %arg0, %c0_i32 : i32, i32
  }
}

</mosaic_0001>

<bundles_post_ra>
// kernel: reinforce_generator_forward.3
= control target key start
LH: loop header
LB: loop body
LE: loop exit
PB: predicated region body
PF: predicated region fallthrough
CT: control target
= control target key end

     0   :  { %s2360_s0 = inlined_call_operand.vmem [shape: f32[16,128], index: 0, kind: input, shape index: {}]   ;;  %s2361_s1 = inlined_call_operand.vmem [shape: bf16[128,128], index: 1, kind: input, shape index: {}]   ;;  %s2362_s2 = inlined_call_operand.vmem [shape: bf16[128,384], index: 2, kind: input, shape index: {}]   ;;  %s2363_s3 = inlined_call_operand.vmem [shape: bf16[128,384], index: 3, kind: input, shape index: {}]   ;;  %s2364_s4 = inlined_call_operand.vmem [shape: f32[1,384], index: 4, kind: input, shape index: {}]   ;;  %s2365_s5 = inlined_call_operand.vmem [shape: f32[1,384], index: 5, kind: input, shape index: {}]   ;;  %s2366_s6 = inlined_call_operand.vmem [shape: bf16[128,128], index: 6, kind: input, shape index: {}]   ;;  %s2367_s7 = inlined_call_operand.vmem [shape: f32[1,128], index: 7, kind: input, shape index: {}]   ;;  %s2368_s8 = inlined_call_operand.hbm [shape: f32[8,16,128], index: 8, kind: output, shape index: {0}]   ;;  %s2369_s9 = inlined_call_operand.vmem [shape: s32[2,8,8], index: 9, kind: output, shape index: {1}]   ;;  %s2370_s10 = inlined_call_operand.vmem [shape: s32[16,1], index: 10, kind: output, shape index: {2}]  }
   0x1   :  { %2377 = sst [smem:[#allocation13_spill]] %s2360_s0 }
   0x2   :  { %2378 = sst [smem:[#allocation14_spill]] %s2361_s1 }
   0x3   :  { %2379 = sst [smem:[#allocation15_spill]] %s2362_s2 }
   0x4   :  { %16 = vsyncpa [#allocation5], 0 }
   0x5   :  { %18 = vsyncpa [#allocation5 + $0x1], 0  ;;  %s1845_s13 = smov 0   ;;  %s1847_s14 = smov 0  }
   0x6   :  { %s1849_s15 = smov 0   ;;  %s1851_s16 = smov 0  }
   0x7   :  { %s1853_s17 = smov 0   ;;  %s1855_s18 = smov 0  }
   0x8   :  { %s1857_s19 = smov 0   ;;  %s1859_s20 = smov 0  }
   0x9 LB: > { %2380 = sst [smem:[#allocation7_spill]] %s1764_s15  ;;  %s1259_s21 = sadd.s32 4294967295, %s1784_s20   ;;  %s1784_s20 = sphi %s1859_s20, %s24_s20   ;;  %s1780_s19 = sphi %s1857_s19, %s2400_s19   ;;  %s1776_s18 = sphi %s1855_s18, %s2399_s18   ;;  %s1772_s17 = sphi %s1853_s17, %s2398_s17   ;;  %s1768_s16 = sphi %s1851_s16, %s2403_s16   ;;  %s1764_s15 = sphi %s1849_s15, %s2396_s15   ;;  %s1760_s14 = sphi %s1847_s14, %s2402_s14   ;;  %s1756_s13 = sphi %s1845_s13, %s2401_s13  }
   0xa   : > { %2381 = sst [smem:[#allocation8_spill]] %s1776_s18  ;;  %s1260_s22 = sadd.s32 4294967294, %s1784_s20  }
   0xb   : > { %2382 = sst [smem:[#allocation9_spill]] %s1780_s19  ;;  %s33_s23 = sadd.s32 1, %s1776_s18 }
   0xc   : > { %p34_p0 = scmp.ge.s32.totalorder %s33_s23, 8  ;;  %s36_s24 = sadd.s32 1, %s1780_s19 }
   0xd   : > { %p228_p1 = scmp.ne.s32.totalorder %s1764_s15, %s1760_s14  ;;  %p229_p2 = scmp.eq.s32.totalorder %s1259_s21, 15 }
   0xe   : > { %s2405_s23 = smov (%p34_p0, %s33_s23), 0  ;;  %s2407_s24 = smov (!%p34_p0, %s36_s24), %s1780_s19 }
   0xf   : > { %2383 = sst [smem:[#allocation10_spill]] %s2405_s23  ;;  %s213_s25 = ssub.s32 %s1776_s18, %s2405_s23 }
  0x10   : > { %p1896_p3 = por %p229_p2, %p228_p1  ;;  %p38_p4 = scmp.ge.s32.totalorder %s2407_s24, 2 }
  0x11   : > { %p234_p5 = scmp.ne.s32.totalorder %s1760_s14, %s1756_s13  ;;  %p235_p6 = scmp.eq.s32.totalorder %s1260_s22, 15 }
  0x12   : > { %p1263_p7 = scmp.ge.s32.totalorder %s1784_s20, 1  ;;  %s2409_s24 = smov (%p38_p4, %s2407_s24), 0 }
  0x13   : > { %2385 = sst [smem:[#allocation11_spill]] %s2409_s24  ;;  %p1905_p8 = por %p235_p6, %p234_p5 }
  0x14   : > { %p333_p9 = scmp.lt.s32.totalorder %s1784_s20, 17  ;;  %s214_s28 = ssub.s32 %s1780_s19, %s2409_s24 }
  0x15   : > { %s218_s29 = sadd.s32 1, %s1764_s15  ;;  %s215_s30 = sor.u32 %s214_s28, %s213_s25 }
  0x16   : > { %p334_p10 = pnand %p1263_p7, %p333_p9  ;;  %p216_p11 = scmp.eq.s32.totalorder %s215_s30, 0 }
  0x17   : > { %s2375_s12 = sand.u32 (!%p334_p10), 1, %s1760_s14   ;;  %p378_p12 = scmp.lt.s32.totalorder (!%p334_p10), %s1772_s17, 1 }
  0x18   : > { %s1914_s11 = scalar_select %p216_p11, %s1764_s15, %s218_s29  }
  0x19   : > { %337 = sbr.rel (%p334_p10) target bundleno = 1122 (0x462), region = 52  ;;  %s1920_s21 = sshll.u32 (!%p334_p10), %s2375_s12, 3 }
  0x1a   : > { %2387 = sst [smem:[#allocation12_spill]] %s1914_s11  ;;  %p1268_p13 = scmp.ne.s32.totalorder (!%p334_p10), %s1768_s16, 0 }
  0x1b   : > { %s2388_s0 = sld [smem:[#allocation13_spill]] (!%p334_p10) }
  0x1e   : > { %s379_s22 = scalar_select %p378_p12, %s1772_s17, 1 }
  0x1f   : > { %393 = sbr.rel (%p1268_p13) target bundleno = 40 (0x28), region = 56 }
  0x20   : > { %s1923_s23 = sshll.u32 %s379_s22, 3 }
  0x21   : > { %s381_s29 = scalar_lea.vmem %s2388_s0, %s1923_s23  ;;  %s1937_s12 = scalar_lea.vmem %s2370_s10, %s1923_s23 }
  0x24   : > { %v394_v0 = vld [vmem:[%s381_s29] sm:$0xff]  ;;  %vm396_vm0 = vcmask 7168   ;;  %v1786_v1 = vmov 1   ;;  %v1787_v2 = vmov 8  }
  0x25   : > { %395 = vst [vmem:[#allocation2] sm:$0xff] %v394_v0 }
  0x26   : > { %397 = vst.msk [vmem:[#allocation3] sm:$0xff] %vm396_vm0, %v1786_v1 }
  0x27   : > { %398 = vst.msk [vmem:[%s1937_s12] sm:$0xff] %vm396_vm0, %v1787_v2 }
  0x28 PF: > { %s2389_s1 = sld [smem:[#allocation14_spill]]  ;;  %v1788_v5 = vmov 0   ;;  %v1486_v27 = vld [vmem:[%s2363_s3 + $0xa8] sm:$0xf]  ;;  %v1589_v28 = vld [vmem:[%s2363_s3 + $0xb0] sm:$0xf0] }
  0x29   : > { %1674 = vset.pattern.permute.xlu0 %v1788_v5  ;;  %s2390_s2 = sld [smem:[#allocation15_spill]]  ;;  %v1487_v30 = vor.u32 %v1589_v28, %v1486_v27  ;;  %v1474_v35 = vld [vmem:[%s2363_s3 + $0x90] sm:$0xf]  ;;  %v1586_v37 = vld [vmem:[%s2363_s3 + $0x98] sm:$0xf0]  ;;  %s2391_s24 = scalar_lea.vmem [#allocation4], %s1920_s21 }
  0x2a   : > { %v1475_v43 = vor.u32 %v1586_v37, %v1474_v35  ;;  %v1462_v47 = vld [vmem:[%s2363_s3 + $0x78] sm:$0xf]  ;;  %v1583_v48 = vld [vmem:[%s2363_s3 + $0x80] sm:$0xf0]  ;;  %v1450_v58 = vld [vmem:[%s2363_s3 + $0x60] sm:$0xf]  ;;  %s2392_s0 = smov %s2391_s24 }
  0x2b   : > { %v1463_v54 = vor.u32 %v1583_v48, %v1462_v47  ;;  %v1580_v59 = vld [vmem:[%s2363_s3 + $0x68] sm:$0xf0]  ;;  %v1585_v47 = vld [vmem:[%s2363_s3 + $0x94] sm:$0xf]  ;;  %v1476_v48 = vld [vmem:[%s2363_s3 + $0x9c] sm:$0xf0] }
  0x2c   : > { %v1451_v2 = vor.u32 %v1580_v59, %v1450_v58  ;;  %v1464_v58 = vld [vmem:[%s2363_s3 + $0x84] sm:$0xf0]  ;;  %s1099_s22 = sadd.s32 1, %s1768_s16  ;;  %vm1102_vm13 = vcmask 7168   ;;  %s1531_s15 = sshll.u32 %s1768_s16, 1 }
  0x2d   : > { %v400_v3 = vld [vmem:[#allocation3] sm:$0xff]  ;;  %s1125_s19 = sadd.s32 %s1772_s17, %s1531_s15  ;;  %s1129_s28 = sshll.u32 %s2392_s0, 4  ;;  %s1130_s28 = int_to_ptr.vmem [resolvable:$true] %s1129_s28 }
  0x2e   : > { %v1542_v4 = vld [vmem:[%s2389_s1 + $0x38] sm:$0xff]  ;;  %420 = vperm.xlu0 %1674, %v400_v3   ;;  %v1541_v6 = vld [vmem:[%s2389_s1 + $0x30] sm:$0xff]  ;;  %v1540_v7 = vld [vmem:[%s2389_s1 + $0x28] sm:$0xff]  ;;  %s2393_s30 = sand.u32 1, %s1760_s14   ;;  %s1710_s15 = scalar_lea.hbm %s2368_s8, 128 }
  0x2f   : > { %474 = vmatpush.bf16.msra.mxu0 %v1542_v4  ;;  %v1539_v8 = vld [vmem:[%s2389_s1 + $0x20] sm:$0xff]  ;;  %v1538_v9 = vld [vmem:[%s2389_s1 + $0x18] sm:$0xff]  ;;  %v1537_v10 = vld [vmem:[%s2389_s1 + $0x10] sm:$0xff] }
  0x30   : > { %v1536_v11 = vld [vmem:[%s2389_s1 + $0x8] sm:$0xff]  ;;  %v1535_v12 = vld [vmem:[%s2389_s1] sm:$0xff]  ;;  %v1565_v14 = vld [vmem:[%s2390_s2 + $0xb0] sm:$0xf0]  ;;  %s1532_s1 = sshll.u32 %s1125_s19, 3 }
  0x31   : > { %v1390_v13 = vld [vmem:[%s2390_s2 + $0xa8] sm:$0xf]  ;;  %v1378_v15 = vld [vmem:[%s2390_s2 + $0x90] sm:$0xf]  ;;  %v1562_v17 = vld [vmem:[%s2390_s2 + $0x98] sm:$0xf0]  ;;  %s1127_s25 = scalar_lea.hbm %s2368_s8, %s1532_s1 }
  0x32   : > { %v1391_v16 = vor.u32 %v1565_v14, %v1390_v13  ;;  %v1564_v18 = vld [vmem:[%s2390_s2 + $0xac] sm:$0xf]  ;;  %v1392_v19 = vld [vmem:[%s2390_s2 + $0xb4] sm:$0xf0]  ;;  %v1561_v21 = vld [vmem:[%s2390_s2 + $0x94] sm:$0xf]  ;;  %v1379_v22 = vor.u32 %v1562_v17, %v1378_v15 }
  0x33   : > { %475 = vmatpush.bf16.msra.mxu0 %v1541_v6  ;;  %v1395_v20 = vor.u32 %v1564_v18, %v1392_v19  ;;  %v1366_v23 = vld [vmem:[%s2390_s2 + $0x78] sm:$0xf]  ;;  %v1559_v24 = vld [vmem:[%s2390_s2 + $0x80] sm:$0xf0]  ;;  %v1380_v25 = vld [vmem:[%s2390_s2 + $0x9c] sm:$0xf0] }
  0x34   : > { %689 = vmatpush.bf16.msra.mxu1 %v1391_v16  ;;  %v1383_v26 = vor.u32 %v1561_v21, %v1380_v25  ;;  %v1398_v29 = vld [vmem:[%s2390_s2 + $0xb0] sm:$0xf]  ;;  %v1566_v31 = vld [vmem:[%s2390_s2 + $0xb8] sm:$0xf0]  ;;  %v1368_v33 = vld [vmem:[%s2390_s2 + $0x84] sm:$0xf0]  ;;  %v1367_v36 = vor.u32 %v1559_v24, %v1366_v23 }
  0x35   : > { %702 = vmatpush.bf16.msra.mxu2 %v1395_v20  ;;  %v1558_v32 = vld [vmem:[%s2390_s2 + $0x7c] sm:$0xf]  ;;  %v1399_v34 = vor.u32 %v1566_v31, %v1398_v29  ;;  %v1386_v38 = vld [vmem:[%s2390_s2 + $0x98] sm:$0xf]  ;;  %v1563_v39 = vld [vmem:[%s2390_s2 + $0xa0] sm:$0xf0] }
  0x36   : > { %v1354_v40 = vld [vmem:[%s2390_s2 + $0x60] sm:$0xf]  ;;  %v1556_v41 = vld [vmem:[%s2390_s2 + $0x68] sm:$0xf0]  ;;  %v1371_v42 = vor.u32 %v1558_v32, %v1368_v33  ;;  %v1387_v44 = vor.u32 %v1563_v39, %v1386_v38  ;;  %v1555_v45 = vld [vmem:[%s2390_s2 + $0x64] sm:$0xf] }
  0x37   : > { %476 = vmatpush.bf16.msra.mxu0 %v1540_v7  ;;  %715 = vmatpush.bf16.msra.mxu3 %v1399_v34  ;;  %v1356_v46 = vld [vmem:[%s2390_s2 + $0x6c] sm:$0xf0]  ;;  %v1374_v49 = vld [vmem:[%s2390_s2 + $0x80] sm:$0xf]  ;;  %v1560_v50 = vld [vmem:[%s2390_s2 + $0x88] sm:$0xf0]  ;;  %v1355_v51 = vor.u32 %v1556_v41, %v1354_v40 }
  0x38   : > { %690 = vmatpush.bf16.msra.mxu1 %v1379_v22  ;;  %v1342_v52 = vld [vmem:[%s2390_s2 + $0x48] sm:$0xf]  ;;  %v1553_v53 = vld [vmem:[%s2390_s2 + $0x50] sm:$0xf0]  ;;  %v1359_v55 = vor.u32 %v1555_v45, %v1356_v46  ;;  %v1375_v56 = vor.u32 %v1560_v50, %v1374_v49  ;;  %v1552_v57 = vld [vmem:[%s2390_s2 + $0x4c] sm:$0xf] }
  0x39   : > { %703 = vmatpush.bf16.msra.mxu2 %v1383_v26  ;;  %v1344_v60 = vld [vmem:[%s2390_s2 + $0x54] sm:$0xf0]  ;;  %v1362_v61 = vld [vmem:[%s2390_s2 + $0x68] sm:$0xf]  ;;  %v1557_v62 = vld [vmem:[%s2390_s2 + $0x70] sm:$0xf0]  ;;  %v1343_v63 = vor.u32 %v1553_v53, %v1342_v52 }
  0x3a   : > { %v1330_v0 = vld [vmem:[%s2390_s2 + $0x30] sm:$0xf]  ;;  %v1550_v1 = vld [vmem:[%s2390_s2 + $0x38] sm:$0xf0]  ;;  %v1347_v3 = vor.u32 %v1552_v57, %v1344_v60  ;;  %v1363_v4 = vor.u32 %v1557_v62, %v1362_v61  ;;  %v1549_v5 = vld [vmem:[%s2390_s2 + $0x34] sm:$0xf] }
  0x3b   : > { %477 = vmatpush.bf16.msra.mxu0 %v1539_v8  ;;  %716 = vmatpush.bf16.msra.mxu3 %v1387_v44  ;;  %v1438_v6 = vld [vmem:[%s2363_s3 + $0x48] sm:$0xf]  ;;  %v1577_v7 = vld [vmem:[%s2363_s3 + $0x50] sm:$0xf0]  ;;  %v1332_v8 = vld [vmem:[%s2390_s2 + $0x3c] sm:$0xf0] }
  0x3c   : > { %691 = vmatpush.bf16.msra.mxu1 %v1367_v36  ;;  %v1318_v13 = vld [vmem:[%s2390_s2 + $0x18] sm:$0xf]  ;;  %v1547_v14 = vld [vmem:[%s2390_s2 + $0x20] sm:$0xf0]  ;;  %v1439_v15 = vor.u32 %v1577_v7, %v1438_v6  ;;  %v1335_v16 = vor.u32 %v1549_v5, %v1332_v8  ;;  %v1546_v18 = vld [vmem:[%s2390_s2 + $0x1c] sm:$0xf] }
  0x3d   : > { %704 = vmatpush.bf16.msra.mxu2 %v1371_v42  ;;  %v1426_v19 = vld [vmem:[%s2363_s3 + $0x30] sm:$0xf]  ;;  %v1574_v20 = vld [vmem:[%s2363_s3 + $0x38] sm:$0xf0]  ;;  %v1320_v21 = vld [vmem:[%s2390_s2 + $0x24] sm:$0xf0]  ;;  %v1319_v25 = vor.u32 %v1547_v14, %v1318_v13 }
  0x3e   : > { %v1338_v22 = vld [vmem:[%s2390_s2 + $0x38] sm:$0xf]  ;;  %v1551_v23 = vld [vmem:[%s2390_s2 + $0x40] sm:$0xf0]  ;;  %v1306_v26 = vld [vmem:[%s2390_s2] sm:$0xf]  ;;  %v1427_v27 = vor.u32 %v1574_v20, %v1426_v19  ;;  %v1323_v29 = vor.u32 %v1546_v18, %v1320_v21 }
  0x3f   : > { %478 = vmatpush.bf16.msra.mxu0 %v1538_v9  ;;  %717 = vmatpush.bf16.msra.mxu3 %v1375_v56  ;;  %v1350_v9 = vld [vmem:[%s2390_s2 + $0x50] sm:$0xf]  ;;  %v1544_v28 = vld [vmem:[%s2390_s2 + $0x8] sm:$0xf0]  ;;  %v1414_v31 = vld [vmem:[%s2363_s3 + $0x18] sm:$0xf]  ;;  %v1479_v56 = vor.u32 %v1585_v47, %v1476_v48 }
  0x40   : > { %692 = vmatpush.bf16.msra.mxu1 %v1355_v51  ;;  %v1571_v32 = vld [vmem:[%s2363_s3 + $0x20] sm:$0xf0]  ;;  %v1588_v33 = vld [vmem:[%s2363_s3 + $0xac] sm:$0xf]  ;;  %v1488_v34 = vld [vmem:[%s2363_s3 + $0xb4] sm:$0xf0]  ;;  %v1307_v39 = vor.u32 %v1544_v28, %v1306_v26 }
  0x41   : > { %705 = vmatpush.bf16.msra.mxu2 %v1359_v55  ;;  %v1543_v35 = vld [vmem:[%s2390_s2 + $0x4] sm:$0xf]  ;;  %v1308_v36 = vld [vmem:[%s2390_s2 + $0xc] sm:$0xf0]  ;;  %v1326_v37 = vld [vmem:[%s2390_s2 + $0x20] sm:$0xf]  ;;  %v1415_v40 = vor.u32 %v1571_v32, %v1414_v31 }
  0x42   : > { %v1548_v38 = vld [vmem:[%s2390_s2 + $0x28] sm:$0xf0]  ;;  %v1494_v41 = vld [vmem:[%s2363_s3 + $0xb0] sm:$0xf]  ;;  %v1590_v42 = vld [vmem:[%s2363_s3 + $0xb8] sm:$0xf0]  ;;  %v1311_v49 = vor.u32 %v1543_v35, %v1308_v36 }
  0x43   : > { %479 = vmatpush.bf16.msra.mxu0 %v1537_v10  ;;  %v1554_v10 = vld [vmem:[%s2390_s2 + $0x58] sm:$0xf0]  ;;  %718 = vmatpush.bf16.msra.mxu3 %v1363_v4  ;;  %v1402_v44 = vld [vmem:[%s2363_s3] sm:$0xf]  ;;  %v1568_v45 = vld [vmem:[%s2363_s3 + $0x8] sm:$0xf0]  ;;  %v1327_v50 = vor.u32 %v1548_v38, %v1326_v37  ;;  %v1495_v51 = vor.u32 %v1590_v42, %v1494_v41 }
  0x44   : > { %693 = vmatpush.bf16.msra.mxu1 %v1343_v63  ;;  %v1351_v17 = vor.u32 %v1554_v10, %v1350_v9  ;;  %v1403_v52 = vor.u32 %v1568_v45, %v1402_v44  ;;  %v1482_v53 = vld [vmem:[%s2363_s3 + $0x98] sm:$0xf]  ;;  %v1789_v55 = vmov 1.0|1.0   ;;  %v1582_v57 = vld [vmem:[%s2363_s3 + $0x7c] sm:$0xf] }
  0x45   : > { %706 = vmatpush.bf16.msra.mxu2 %v1347_v3  ;;  %v1467_v60 = vor.u32 %v1582_v57, %v1464_v58  ;;  %v1314_v61 = vld [vmem:[%s2390_s2 + $0x8] sm:$0xf]  ;;  %v1545_v62 = vld [vmem:[%s2390_s2 + $0x10] sm:$0xf0]  ;;  %v1579_v63 = vld [vmem:[%s2363_s3 + $0x64] sm:$0xf] }
  0x46   : > { %v2197_v3 = vld [vmem:[#allocation2] sm:$0xff]  ;;  %v1584_v6 = vld [vmem:[%s2363_s3 + $0x88] sm:$0xf0]  ;;  %v1440_v9 = vld [vmem:[%s2363_s3 + $0x54] sm:$0xf0]  ;;  %s1131_s29 = sshll.u32 %s1127_s25, 4  ;;  %s1132_s29 = int_to_ptr.hbm [resolvable:$true] %s1131_s29 }
  0x47   : > { %480 = vmatpush.bf16.msra.mxu0 %v1536_v11  ;;  %v401_v11 = vlaneseq  ;;  %719 = vmatpush.bf16.msra.mxu3 %v1351_v17  ;;  %v728_v4 = vpack.c.bf16 %v2197_v3, %v2197_v3  ;;  %v1470_v5 = vld [vmem:[%s2363_s3 + $0x80] sm:$0xf]  ;;  %v1576_v8 = vld [vmem:[%s2363_s3 + $0x4c] sm:$0xf]  ;;  %v1573_v14 = vld [vmem:[%s2363_s3 + $0x34] sm:$0xf] }
  0x48   : > { %v1471_v7 = vor.u32 %v1584_v6, %v1470_v5  ;;  %v1443_v10 = vor.u32 %v1576_v8, %v1440_v9  ;;  %v1446_v17 = vld [vmem:[%s2363_s3 + $0x50] sm:$0xf]  ;;  %v1578_v18 = vld [vmem:[%s2363_s3 + $0x58] sm:$0xf0]  ;;  %v1416_v21 = vld [vmem:[%s2363_s3 + $0x24] sm:$0xf0] }
  0x49   : > { %v2122_v24 = vand.u32 127, %v401_v11  ;;  %707 = vmatpush.bf16.msra.mxu2 %v1335_v16  ;;  %v1458_v11 = vld [vmem:[%s2363_s3 + $0x68] sm:$0xf]  ;;  %v1570_v19 = vld [vmem:[%s2363_s3 + $0x1c] sm:$0xf]  ;;  %v1447_v20 = vor.u32 %v1578_v18, %v1446_v17  ;;  %v1593_v58 = vld [vmem:[%s2366_s6 + $0x10] sm:$0xff] }
  0x4a   : > { %v1567_v26 = vld [vmem:[%s2363_s3 + $0x4] sm:$0xf]  ;;  %v1572_v31 = vld [vmem:[%s2363_s3 + $0x28] sm:$0xf0]  ;;  %v552_v41 = vld [vmem:[%s2365_s5] sm:$0x7] }
  0x4b   : > { %481 = vmatpush.bf16.msra.mxu0 %v1535_v12  ;;  %v1331_v12 = vor.u32 %v1550_v1, %v1330_v0  ;;  %v1315_v0 = vor.u32 %v1545_v62, %v1314_v61  ;;  %v1452_v1 = vld [vmem:[%s2363_s3 + $0x6c] sm:$0xf0]  ;;  %v1598_v42 = vld [vmem:[%s2366_s6 + $0x38] sm:$0xff]  ;;  %v730_v44 = vperm.slane %v552_v41, 0  ;;  %v731_v61 = vperm.slane %v552_v41, 1 }
  0x4c   : > { %v1594_v57 = vld [vmem:[%s2366_s6 + $0x18] sm:$0xff] }
  0x4d   : > { %694 = vmatpush.bf16.msra.mxu1 %v1331_v12  ;;  %708 = vmatpush.bf16.msra.mxu2 %v1323_v29  ;;  %v1581_v12 = vld [vmem:[%s2363_s3 + $0x70] sm:$0xf0] }
  0x4e   : > { %v1459_v13 = vor.u32 %v1581_v12, %v1458_v11 }
  0x4f   : > { %864 = vmatpush.bf16.msrb.mxu0 %v1487_v30  ;;  %v1339_v30 = vor.u32 %v1551_v23, %v1338_v22  ;;  %v1434_v22 = vld [vmem:[%s2363_s3 + $0x38] sm:$0xf]  ;;  %v1575_v23 = vld [vmem:[%s2363_s3 + $0x40] sm:$0xf0] }
  0x50   : > { %v1435_v28 = vor.u32 %v1575_v23, %v1434_v22 }
  0x51   : > { %695 = vmatpush.bf16.msra.mxu1 %v1319_v25  ;;  %720 = vmatpush.bf16.msra.mxu3 %v1339_v30  ;;  %v1419_v25 = vor.u32 %v1570_v19, %v1416_v21  ;;  %v1422_v30 = vld [vmem:[%s2363_s3 + $0x20] sm:$0xf] }
  0x52   : > { %709 = vmatpush.bf16.msra.mxu2 %v1311_v49  ;;  %v1423_v32 = vor.u32 %v1572_v31, %v1422_v30 }
  0x53   : > { %865 = vmatpush.bf16.msrb.mxu0 %v1475_v43  ;;  %v1491_v43 = vor.u32 %v1588_v33, %v1488_v34  ;;  %v1410_v33 = vld [vmem:[%s2363_s3 + $0x8] sm:$0xf]  ;;  %v1569_v34 = vld [vmem:[%s2363_s3 + $0x10] sm:$0xf0] }
  0x54   : > { %v1411_v35 = vor.u32 %v1569_v34, %v1410_v33 }
  0x55   : > { %696 = vmatpush.bf16.msra.mxu1 %v1307_v39  ;;  %721 = vmatpush.bf16.msra.mxu3 %v1327_v50  ;;  %v1596_v50 = vld [vmem:[%s2366_s6 + $0x28] sm:$0xff] }
  0x56   : > { %890 = vmatpush.bf16.msrb.mxu2 %v1495_v51 }
  0x57   : > { %866 = vmatpush.bf16.msrb.mxu0 %v1463_v54  ;;  %v1587_v54 = vld [vmem:[%s2363_s3 + $0xa0] sm:$0xf0] }
  0x58   : > { %v1483_v59 = vor.u32 %v1587_v54, %v1482_v53  ;;  %v1595_v53 = vld [vmem:[%s2366_s6 + $0x20] sm:$0xff] }
  0x59   : > { %877 = vmatpush.bf16.msrb.mxu1 %v1491_v43  ;;  %722 = vmatpush.bf16.msra.mxu3 %v1315_v0  ;;  %v2270_v43 = vld [vmem:[%s2364_s4] sm:$0x7] }
  0x5a   : > { %891 = vmatpush.bf16.msrb.mxu2 %v1483_v59  ;;  %v555_v45 = vperm.slane %v2270_v43, 0 }
  0x5b   : > { %867 = vmatpush.bf16.msrb.mxu0 %v1451_v2  ;;  %v1455_v2 = vor.u32 %v1579_v63, %v1452_v1  ;;  %v1592_v1 = vld [vmem:[%s2366_s6 + $0x8] sm:$0xff] }
  0x5d   : > { %878 = vmatpush.bf16.msrb.mxu1 %v1479_v56  ;;  %1019 = vmatpush.bf16.msrb.mxu3 %v1598_v42 }
  0x5e   : > { %892 = vmatpush.bf16.msrb.mxu2 %v1471_v7  ;;  %v1591_v7 = vld [vmem:[%s2366_s6] sm:$0xff] }
  0x5f   : > { %868 = vmatpush.bf16.msrb.mxu0 %v1439_v15  ;;  %v1428_v15 = vld [vmem:[%s2363_s3 + $0x3c] sm:$0xf0] }
  0x60   : > { %v1431_v16 = vor.u32 %v1573_v14, %v1428_v15 }
  0x61   : > { %879 = vmatpush.bf16.msrb.mxu1 %v1467_v60  ;;  %v556_v60 = vperm.slane %v2270_v43, 1 }
  0x62   : > { %893 = vmatpush.bf16.msrb.mxu2 %v1459_v13 }
  0x63   : > { %869 = vmatpush.bf16.msrb.mxu0 %v1427_v27  ;;  %v1404_v27 = vld [vmem:[%s2363_s3 + $0xc] sm:$0xf0] }
  0x64   : > { %v1407_v29 = vor.u32 %v1567_v26, %v1404_v27  ;;  %v557_v27 = vperm.slane %v2270_v43, 2 }
  0x65   : > { %880 = vmatpush.bf16.msrb.mxu1 %v1455_v2 }
  0x66   : > { %894 = vmatpush.bf16.msrb.mxu2 %v1447_v20 }
  0x67   : > { %870 = vmatpush.bf16.msrb.mxu0 %v1415_v40 }
  0x69   : > { %881 = vmatpush.bf16.msrb.mxu1 %v1443_v10 }
  0x6a   : > { %895 = vmatpush.bf16.msrb.mxu2 %v1435_v28 }
  0x6b   : > { %871 = vmatpush.bf16.msrb.mxu0 %v1403_v52 }
  0x6d   : > { %882 = vmatpush.bf16.msrb.mxu1 %v1431_v16  ;;  %v732_v16 = vperm.slane %v552_v41, 2 }
  0x6e   : > { %896 = vmatpush.bf16.msrb.mxu2 %v1423_v32 }
  0x71   : > { %883 = vmatpush.bf16.msrb.mxu1 %v1419_v25 }
  0x72   : > { %897 = vmatpush.bf16.msrb.mxu2 %v1411_v35 }
  0x75   : > { %884 = vmatpush.bf16.msrb.mxu1 %v1407_v29 }
  0xa0   : > { %v421_v46 = vpop.permute.xlu0 %420 }
  0xa1   : > { %vm422_vm1 = vcmp.eq.s32.totalorder %v2122_v24, %v421_v46  ;;  %v1597_v46 = vld [vmem:[%s2366_s6 + $0x30] sm:$0xff] }
  0xa2   : > { %vm1302_vm2 = vmpackc.low %vm422_vm1, %vm422_vm1  ;;  %1020 = vmatpush.bf16.msrb.mxu3 %v1597_v46 }
  0xa3   : > { %1303 = vmatmul.msk.bf16.vlgmr.msra.gmra.mxu0 %vm1302_vm2, %v1789_v55 }
  0xa6   : > { %1021 = vmatpush.bf16.msrb.mxu3 %v1596_v50 }
  0xaa   : > { %1022 = vmatpush.bf16.msrb.mxu3 %v1595_v53 }
  0xae   : > { %1023 = vmatpush.bf16.msrb.mxu3 %v1594_v57 }
  0xb2   : > { %1024 = vmatpush.bf16.msrb.mxu3 %v1593_v58 }
  0xb3   : > { %872 = vmatmul.bf16.vlgmr.msrb.gmra.mxu0 %v728_v4 }
  0xb6   : > { %1025 = vmatpush.bf16.msrb.mxu3 %v1592_v1  ;;  %v1094_v1 = vld [vmem:[%s1937_s12] sm:$0xff] }
  0xba   : > { %1026 = vmatpush.bf16.msrb.mxu3 %v1591_v7 }
 0x120   : > { %v483_v36 = vpop.f32.mrf.mxu0 }
 0x121   : > { %v553_v37 = vpack.c.bf16 %v483_v36, %v483_v36 }
 0x123   : > { %697 = vmatmul.bf16.vlgmr.msra.gmra.mxu1 %v553_v37  ;;  %710 = vmatmul.bf16.vlgmr.msra.gmra.mxu2 %v553_v37 }
 0x124   : > { %723 = vmatmul.bf16.vlgmr.msra.gmra.mxu3 %v553_v37 }
 0x128   : > { %v485_v38 = vpop.f32.mrf.mxu0 }
 0x130   : > { %v873_v39 = vpop.f32.mrf.mxu0 }
 0x131   : > { %v874_v47 = vadd.f32 %v873_v39, %v730_v44 }
 0x133   : > { %885 = vmatmul.bf16.vlgmr.msrb.gmra.mxu1 %v728_v4  ;;  %898 = vmatmul.bf16.vlgmr.msrb.gmra.mxu2 %v728_v4 }
 0x138   : > { %v875_v40 = vpop.f32.mrf.mxu0 }
 0x1a0   : > { %v698_v48 = vpop.f32.mrf.mxu1 }
 0x1a1   : > { %v699_v49 = vadd.f32 %v698_v48, %v555_v45 }
 0x1a3   : > { %v903_v51 = vadd.f32 %v874_v47, %v699_v49  ;;  %v1675_v47 = vld [vmem:[%s2367_s7] ss:$0 sm:$0xff] }
 0x1a5   : > { %v1496_v52 = vmul.f32 -1.442695, %v903_v51 }
 0x1a6   : > { %v711_v54 = vpop.f32.mrf.mxu2 }
 0x1a7   : > { %1676 = vpow2.f32 %v1496_v52  ;;  %v724_v55 = vpop.f32.mrf.mxu3  ;;  %v712_v4 = vadd.f32 %v711_v54, %v556_v60 }
 0x1a8   : > { %v700_v56 = vpop.f32.mrf.mxu1  ;;  %v725_v30 = vadd.f32 %v724_v55, %v557_v27 }
 0x1ad   : > { %v1677_v59 = vpop.eup %1676 }
 0x1ae   : > { %v907_v62 = vadd.f32 1.0, %v1677_v59  ;;  %v713_v63 = vpop.f32.mrf.mxu2 }
 0x1af   : > { %v726_v0 = vpop.f32.mrf.mxu3 }
 0x1b0   : > { %1678 = vrcp.f32 %v907_v62  ;;  %v886_v2 = vpop.f32.mrf.mxu1  ;;  %v919_v15 = vand.u32 2147483648, %v907_v62  ;;  %v917_v17 = vand.u32 2147483647, %v907_v62  ;;  %vm913_vm4 = vweird.f32 %v907_v62 }
 0x1b1   : > { %v887_v5 = vadd.f32 %v886_v2, %v731_v61  ;;  %v1096_v2 = vstv %s1768_s16 }
 0x1b2   : > { %v920_v23 = vor.u32 1.1754944e-38, %v919_v15  ;;  %vm918_vm6 = vcmp.eq.f32.partialorder %v917_v17, 8.507059e+37  ;;  %vm1097_vm14 = vcmp.gt.s32.totalorder %v1094_v1, %v1096_v2 }
 0x1b3   : > { %v923_v6 = vadd.f32 %v887_v5, %v712_v4 }
 0x1b5   : > { %v1497_v8 = vmul.f32 -1.442695, %v923_v6 }
 0x1b6   : > { %v1679_v9 = vpop.eup %1678  ;;  %v899_v10 = vpop.f32.mrf.mxu2 }
 0x1b7   : > { %1680 = vpow2.f32 %v1497_v8  ;;  %v909_v11 = vmul.f32 %v1679_v9, %v907_v62  ;;  %vm914_vm3 = vweird.f32 %v1679_v9  ;;  %v900_v25 = vadd.f32 %v899_v10, %v732_v16 }
 0x1b8   : > { %v888_v12 = vpop.f32.mrf.mxu1  ;;  %vm915_vm5 = vmor %vm913_vm4, %vm914_vm3  ;;  %v1100_v8 = vstv %s1099_s22  ;;  %s1704_s22 = sshra.s32 %s1132_s29, 4  ;;  %s1705_s22 = int_to_ptr.hbm [resolvable:$true] %s1704_s22 }
 0x1b9   : > { %v910_v13 = vsub.f32 1.0, %v909_v11  ;;  %s1706_s2 = scalar_lea.hbm %s1705_s22, 8  ;;  %p1711_p4 = scmp.lt.s32.totalorder %s1705_s22, %s2368_s8 }
 0x1ba   : > { %p1707_p0 = scmp.ne.s32.totalorder %s1705_s22, %s1706_s2  ;;  %p1712_p5 = scmp.lt.s32.totalorder %s1710_s15, %s1706_s2 }
 0x1bb   : > { %v911_v14 = vmul.f32 %v1679_v9, %v910_v13 }
 0x1bc   : > { %p1708_p1 = pnand %p1707_p0, %p1896_p3  ;;  %p1713_p6 = por %p1712_p5, %p1711_p4 }
 0x1bd   : > { %v1681_v18 = vpop.eup %1680  ;;  %v912_v19 = vadd.f32 %v1679_v9, %v911_v14 }
 0x1be   : > { %v927_v20 = vadd.f32 1.0, %v1681_v18  ;;  %v901_v21 = vpop.f32.mrf.mxu2  ;;  %p1709_p2 = pneg %p1708_p1 }
 0x1bf   : > { %v916_v22 = vsel %vm915_vm5, %v1679_v9, %v912_v19 }
 0x1c0   : > { %1682 = vrcp.f32 %v927_v20  ;;  %v921_v26 = vsel %vm918_vm6, %v920_v23, %v916_v22  ;;  %v939_v34 = vand.u32 2147483648, %v927_v20  ;;  %v937_v36 = vand.u32 2147483647, %v927_v20  ;;  %p1714_p7 = pnand %p1713_p6, %p1709_p2 }
 0x1c1   : > { %v943_v28 = vmul.f32 %v921_v26, %v900_v25  ;;  %vm933_vm8 = vweird.f32 %v927_v20 }
 0x1c2   : > { %v940_v38 = vor.u32 1.1754944e-38, %v939_v34  ;;  %vm938_vm10 = vcmp.eq.f32.partialorder %v937_v36, 8.507059e+37 }
 0x1c3   : > { %v944_v32 = vadd.f32 %v943_v28, %v725_v30 }
 0x1c5   : > { %1684 = vtanh.f32 %v944_v32 }
 0x1c6   : > { %v1683_v29 = vpop.eup %1682 }
 0x1c7   : > { %v929_v31 = vmul.f32 %v1683_v29, %v927_v20  ;;  %vm934_vm7 = vweird.f32 %v1683_v29 }
 0x1c8   : > { %vm935_vm9 = vmor %vm933_vm8, %vm934_vm7 }
 0x1c9   : > { %v930_v33 = vsub.f32 1.0, %v929_v31 }
 0x1cb   : > { %v931_v35 = vmul.f32 %v1683_v29, %v930_v33  ;;  %v1685_v42 = vpop.eup %1684 }
 0x1cd   : > { %v932_v37 = vadd.f32 %v1683_v29, %v931_v35 }
 0x1cf   : > { %v936_v39 = vsel %vm935_vm9, %v1683_v29, %v932_v37 }
 0x1d0   : > { %v941_v40 = vsel %vm938_vm10, %v940_v38, %v936_v39 }
 0x1d1   : > { %v946_v41 = vsub.f32 1.0, %v941_v40  ;;  %v948_v44 = vmul.f32 %v941_v40, %v2197_v3 }
 0x1d3   : > { %v947_v43 = vmul.f32 %v1685_v42, %v946_v41 }
 0x1d5   : > { %v949_v45 = vadd.f32 %v948_v44, %v947_v43 }
 0x1d7   : > { %v966_v46 = vpack.c.bf16 %v949_v45, %v949_v45  ;;  %1104 = vst [vmem:[#allocation2] sm:$0xff] %v949_v45 }
 0x1d9   : > { %1027 = vmatmul.bf16.vlgmr.msrb.gmra.mxu3 %v966_v46 }
 0x25c   : > { %v1028_v48 = vpop.f32.mrf.mxu3 }
 0x25d   : > { %v1029_v49 = vadd.f32 %v1675_v47, %v1028_v48 }
 0x25f   : > { %1032 = vmax.xlane.f32.xlu0 %v1029_v49 }
 0x264   : > { %v1030_v50 = vpop.f32.mrf.mxu3 }
 0x2d2   : > { %v1033_v51 = vpop.xlane.xlu0 %1032 }
 0x2d3   : > { %v1034_v52 = vsub.f32 %v1029_v49, %v1033_v51  ;;  %vm1043_vm11 = vcmp.eq.f32.partialorder %v1029_v49, %v1033_v51 }
 0x2d4   : > { %v1044_v53 = vsel %vm1043_vm11, %v2122_v24, 127 }
 0x2d5   : > { %v1046_v54 = vshra.s32 %v1044_v53, 16  ;;  %v1035_v55 = vmul.f32 1.442695, %v1034_v52  ;;  %v1045_v57 = vand.u32 65535, %v1044_v53 }
 0x2d7   : > { %v1048_v3 = vcvt.s32.f32 %v1046_v54  ;;  %1686 = vpow2.f32 %v1035_v55  ;;  %v1047_v59 = vcvt.s32.f32 %v1045_v57 }
 0x2d9   : > { %1049 = vmin.xlane.f32.xlu1 %v1048_v3 }
 0x2dd   : > { %v1687_v56 = vpop.eup %1686 }
 0x2de   : > { %1037 = vadd.xlane.f32.xlu2 %v1687_v56 }
 0x34c   : > { %v1050_v58 = vpop.xlane.xlu1 %1049 }
 0x34d   : > { %vm1051_vm12 = vcmp.eq.f32.partialorder %v1048_v3, %v1050_v58  ;;  %v1056_v0 = vcvt.f32.s32 %v1050_v58 }
 0x34e   : > { %v1052_v60 = vsel %vm1051_vm12, %v1047_v59, inf }
 0x34f   : > { %1053 = vmin.xlane.f32.xlu1 %v1052_v60  ;;  %v1057_v5 = vshll.u32 %v1056_v0, 16 }
 0x351   : > { %v1038_v61 = vpop.xlane.xlu2 %1037 }
 0x352   : > { %1688 = vlog2.f32 %v1038_v61 }
 0x358   : > { %v1689_v24 = vpop.eup %1688 }
 0x359   : > { %v1040_v62 = vmul.f32 0.6931472, %v1689_v24 }
 0x35b   : > { %v1041_v63 = vsub.f32 %v1034_v52, %v1040_v62 }
 0x35d   : > { %1042 = vst [vmem:[%s2391_s24] sm:$0xff] %v1041_v63  ;;  %s1107_s24 = scalar_lea.sflag [#allocation5], %s2393_s30 }
 0x3c2   : > { %v1054_v4 = vpop.xlane.xlu1 %1053 }
 0x3c3   : > { %v1055_v6 = vcvt.f32.s32 %v1054_v4 }
 0x3c5   : > { %v1058_v7 = vadd.s32 %v1057_v5, %v1055_v6 }
 0x3c7   : > { %vm1095_vm15 = vcmp.eq.s32.totalorder %v1058_v7, 2  ;;  %1105 = vst.msk [vmem:[#allocation3] sm:$0xff] %vm1102_vm13, %v1058_v7  ;;  %1059 = vxpose.xlu2.b32.start.end [1/1] (short) (narrow) %v1058_v7, 8 }
 0x3c8   : > { %vm1098_vm0 = vmand %vm1095_vm15, %vm1097_vm14 }
 0x3c9   : > { %v1101_v9 = vsel %vm1098_vm0, %v1100_v8, %v1094_v1 }
 0x3ca   : > { %1103 = vst.msk [vmem:[%s1937_s12] sm:$0xff] %vm1102_vm13, %v1101_v9 }
 0x3cb   : > { %1717 = shalt.err (!%p1714_p7)
}
 0x3cc   : > { %1599 = dma.vmem_to_hbm [thread:$0]  (%p1896_p3), %s1130_s28, 128, %s1132_s29, %s1107_s24   ;;  %vm1092_vm1 = vcmask 57344  }
 0x3cd   : > { %s2394_s11 = scalar_lea.vmem %s2369_s9, %s1923_s23 }
 0x3ce   : > { %s1091_s25 = scalar_lea.vmem %s2394_s11, %s1768_s16 }
 0x460   : > { %v1075_v10 = vpop.trf.xlu2 }
 0x461   : > { %1093 = vst.msk [vmem:[%s1091_s25] sm:$0x1] %vm1092_vm1, %v1075_v10 }
 0x462 PF: > { %p1605_p9 = scmp.ge.s32.totalorder %s1784_s20, 2  ;;  %s1149_s2 = sand.u32 1, %s1756_s13  }
 0x463   : > { %s1150_s26 = scalar_lea.sflag [#allocation5], %s1149_s2 }
 0x464   : > { %p1602_p10 = pnand %p1605_p9, %p1905_p8 }
 0x466   : > { %p1603_p11 = pneg %p1602_p10 }
 0x468   : > { %1751 = dma.done.wait (%p1603_p11), %s1150_s26, 128  }
 0x469   : > { %1753 = vsyncadd (%p1603_p11), %s1150_s26, 4294967168  ;;  %s24_s20 = sadd.s32 1, %s1784_s20   ;;  %s2395_s16 = sld [smem:[#allocation7_spill]] }
 0x46a   : > { %p21_p3 = scmp.ge.s32.totalorder %s24_s20, 18   ;;  %s2396_s15 = sld [smem:[#allocation12_spill]] }
 0x46b   : > { %s2397_s23 = sld [smem:[#allocation8_spill]]  ;;  %s2401_s13 = smov %s1760_s14 }
 0x46c   : > { %s2398_s17 = sld [smem:[#allocation9_spill]] }
 0x46d   : > { %s2399_s18 = sld [smem:[#allocation10_spill]]  ;;  %23 = sbr.rel (!%p21_p3) target bundleno = 9 (0x9), region = 116 }
 0x46e   : > { %s2400_s19 = sld [smem:[#allocation11_spill]] }
 0x46f   : > { %s2402_s14 = smov %s2395_s16 }
 0x471   : > { %s2403_s16 = smov %s2397_s23 }
 0x472   :  { %1170 = vsyncpa [#allocation5], 1 }
 0x473   :  { %1172 = vsyncpa [#allocation5 + $0x1], 1 }

// kernel: reinforce_generator_forward.2
= control target key start
LH: loop header
LB: loop body
LE: loop exit
PB: predicated region body
PF: predicated region fallthrough
CT: control target
= control target key end

     0   :  { %s2147_s18 = smov 0   ;;  %s2149_s19 = smov 0   ;;  %s3105_s0 = inlined_call_operand.vmem [shape: bf16[8,16,128], index: 0, kind: input, shape index: {}]   ;;  %s3106_s1 = inlined_call_operand.vmem [shape: bf16[128,384], index: 1, kind: input, shape index: {}]   ;;  %s3107_s2 = inlined_call_operand.vmem [shape: bf16[128,384], index: 2, kind: input, shape index: {}]   ;;  %s3108_s3 = inlined_call_operand.vmem [shape: f32[1,384], index: 3, kind: input, shape index: {}]   ;;  %s3109_s4 = inlined_call_operand.vmem [shape: f32[1,384], index: 4, kind: input, shape index: {}]   ;;  %s3110_s5 = inlined_call_operand.vmem [shape: f32[16,128], index: 5, kind: output, shape index: {}]  }
   0x1   :  { %s2151_s20 = smov 0  }
   0x2 LB: > { %s1713_s21 = sadd.s32 4294967295, %s2114_s20   ;;  %s2164_s22 = sadd.s32 1, %s2114_s20   ;;  %s2114_s20 = sphi %s2151_s20, %s3228_s20   ;;  %s2110_s19 = sphi %s2149_s19, %s3227_s19   ;;  %s2106_s18 = sphi %s2147_s18, %s3226_s18  }
   0x3   : > { %s19_s23 = ssub.s32 %s2114_s20, %s2164_s22  ;;  %s22_s24 = sadd.s32 1, %s2110_s19 }
   0x4   : > { %p20_p0 = scmp.eq.s32.totalorder %s19_s23, 0  ;;  %p29_p1 = scmp.ne.s32.totalorder %s2110_s19, %s2106_s18 }
   0x5   : > { %p30_p2 = scmp.eq.s32.totalorder %s2114_s20, 0  ;;  %p1716_p4 = scmp.ge.s32.totalorder %s2114_s20, 2 }
   0x6   : > { %s2173_s25 = scalar_select %p20_p0, %s2110_s19, %s22_s24  }
   0x7   : > { %p31_p3 = por %p30_p2, %p29_p1  ;;  %177 = sbr.rel (%p1716_p4) target bundleno = 24 (0x18), region = 32 }
   0xc   : > { %180 = sbr.rel (!%p31_p3) target bundleno = 24 (0x18), region = 36  ;;  %s182_s26 = sand.u32 (%p31_p3), 1, %s2110_s19  }
   0xd   : > { %s1718_s27 = sshll.u32 (%p31_p3), %s2114_s20, 2  ;;  %s1717_s28 = sshll.u32 (%p31_p3), %s182_s26, 5 }
   0xe   : > { %s186_s6 = scalar_lea.vmem (%p31_p3), %s3105_s0, %s1718_s27  ;;  %s184_s7 = scalar_lea.vmem (%p31_p3), [#allocation2], %s1717_s28 }
   0xf   : > { %v203_v0 = vld [vmem:[%s186_s6] sm:$0xf] (%p31_p3)  ;;  %v205_v1 = vld [vmem:[%s186_s6 + $0x8] sm:$0xf] (%p31_p3)  ;;  %v207_v2 = vld [vmem:[%s186_s6 + $0x10] sm:$0xf] (%p31_p3) }
  0x10   : > { %204 = vst [vmem:[%s184_s7] sm:$0xf] (%p31_p3), %v203_v0  ;;  %v209_v3 = vld [vmem:[%s186_s6 + $0x18] sm:$0xf] (%p31_p3)  ;;  %v211_v4 = vld [vmem:[%s186_s6 + $0x20] sm:$0xf] (%p31_p3) }
  0x11   : > { %206 = vst [vmem:[%s184_s7 + $0x4] sm:$0xf] %v205_v1  ;;  %v213_v5 = vld [vmem:[%s186_s6 + $0x28] sm:$0xf]  ;;  %v215_v6 = vld [vmem:[%s186_s6 + $0x30] sm:$0xf] }
  0x12   : > { %208 = vst [vmem:[%s184_s7 + $0x8] sm:$0xf] %v207_v2  ;;  %v217_v7 = vld [vmem:[%s186_s6 + $0x38] sm:$0xf] }
  0x13   : > { %210 = vst [vmem:[%s184_s7 + $0xc] sm:$0xf] %v209_v3 }
  0x14   : > { %212 = vst [vmem:[%s184_s7 + $0x10] sm:$0xf] %v211_v4 }
  0x15   : > { %214 = vst [vmem:[%s184_s7 + $0x14] sm:$0xf] %v213_v5 }
  0x16   : > { %216 = vst [vmem:[%s184_s7 + $0x18] sm:$0xf] %v215_v6 }
  0x17   : > { %218 = vst [vmem:[%s184_s7 + $0x1c] sm:$0xf] %v217_v7 }
  0x18 PF: > { %p1719_p5 = scmp.ge.s32.totalorder %s2114_s20, 1  ;;  %p257_p6 = scmp.lt.s32.totalorder %s2114_s20, 3 }
  0x1a   : > { %p258_p7 = pnand %p1719_p5, %p257_p6 }
  0x1c   : > { %261 = sbr.rel (%p258_p7) target bundleno = 1507 (0x5e3), region = 77 }
  0x21   : > { %v1808_v8 = vld [vmem:[%s3106_s1 + $0xa8] sm:$0xf]  ;;  %v1961_v9 = vld [vmem:[%s3106_s1 + $0xb0] sm:$0xf0]  ;;  %v1796_v13 = vld [vmem:[%s3106_s1 + $0x90] sm:$0xf] }
  0x22   : > { %v1904_v10 = vld [vmem:[%s3107_s2 + $0xa8] sm:$0xf]  ;;  %v2192_v11 = vor.u32 %v1961_v9, %v1808_v8  ;;  %v1985_v12 = vld [vmem:[%s3107_s2 + $0xb0] sm:$0xf0]  ;;  %v1958_v14 = vld [vmem:[%s3106_s1 + $0x98] sm:$0xf0] }
  0x23   : > { %v2203_v15 = vor.u32 %v1985_v12, %v1904_v10  ;;  %v1892_v16 = vld [vmem:[%s3107_s2 + $0x90] sm:$0xf]  ;;  %v1982_v17 = vld [vmem:[%s3107_s2 + $0x98] sm:$0xf0]  ;;  %v1960_v18 = vld [vmem:[%s3106_s1 + $0xac] sm:$0xf]  ;;  %v2215_v19 = vor.u32 %v1958_v14, %v1796_v13 }
  0x24   : > { %504 = vmatpush.bf16.msra.mxu0 %v2192_v11  ;;  %v1810_v20 = vld [vmem:[%s3106_s1 + $0xb4] sm:$0xf0]  ;;  %v2221_v21 = vor.u32 %v1982_v17, %v1892_v16  ;;  %v1955_v24 = vld [vmem:[%s3106_s1 + $0x80] sm:$0xf0]  ;;  %v1957_v25 = vld [vmem:[%s3106_s1 + $0x94] sm:$0xf] }
  0x25   : > { %671 = vmatpush.bf16.msra.mxu3 %v2203_v15  ;;  %v2223_v22 = vor.u32 %v1960_v18, %v1810_v20  ;;  %v1784_v23 = vld [vmem:[%s3106_s1 + $0x78] sm:$0xf]  ;;  %v1979_v27 = vld [vmem:[%s3107_s2 + $0x80] sm:$0xf0]  ;;  %v1798_v28 = vld [vmem:[%s3106_s1 + $0x9c] sm:$0xf0] }
  0x26   : > { %v1880_v26 = vld [vmem:[%s3107_s2 + $0x78] sm:$0xf]  ;;  %v2244_v29 = vor.u32 %v1957_v25, %v1798_v28  ;;  %v2247_v30 = vor.u32 %v1955_v24, %v1784_v23  ;;  %v1954_v31 = vld [vmem:[%s3106_s1 + $0x7c] sm:$0xf]  ;;  %v1786_v32 = vld [vmem:[%s3106_s1 + $0x84] sm:$0xf0] }
  0x27   : > { %517 = vmatpush.bf16.msra.mxu1 %v2223_v22  ;;  %v2256_v33 = vor.u32 %v1979_v27, %v1880_v26  ;;  %v1772_v34 = vld [vmem:[%s3106_s1 + $0x60] sm:$0xf]  ;;  %v1952_v35 = vld [vmem:[%s3106_s1 + $0x68] sm:$0xf0]  ;;  %v2271_v38 = vor.u32 %v1954_v31, %v1786_v32  ;;  %v1951_v40 = vld [vmem:[%s3106_s1 + $0x64] sm:$0xf] }
  0x28   : > { %505 = vmatpush.bf16.msra.mxu0 %v2215_v19  ;;  %v1868_v36 = vld [vmem:[%s3107_s2 + $0x60] sm:$0xf]  ;;  %v1976_v37 = vld [vmem:[%s3107_s2 + $0x68] sm:$0xf0]  ;;  %v2274_v39 = vor.u32 %v1952_v35, %v1772_v34  ;;  %v1774_v41 = vld [vmem:[%s3106_s1 + $0x6c] sm:$0xf0] }
  0x29   : > { %672 = vmatpush.bf16.msra.mxu3 %v2221_v21  ;;  %3152 = vst [vmem:[#allocation3_spill] sm:$0xff] %v2256_v33  ;;  %v2283_v42 = vor.u32 %v1976_v37, %v1868_v36  ;;  %v1760_v43 = vld [vmem:[%s3106_s1 + $0x48] sm:$0xf]  ;;  %v1949_v44 = vld [vmem:[%s3106_s1 + $0x50] sm:$0xf0]  ;;  %v2298_v47 = vor.u32 %v1951_v40, %v1774_v41  ;;  %s264_s9 = sand.u32 1, %s2106_s18  }
  0x2a   : > { %v1856_v45 = vld [vmem:[%s3107_s2 + $0x48] sm:$0xf]  ;;  %v1973_v46 = vld [vmem:[%s3107_s2 + $0x50] sm:$0xf0]  ;;  %v2301_v48 = vor.u32 %v1949_v44, %v1760_v43  ;;  %v1748_v49 = vld [vmem:[%s3106_s1 + $0x30] sm:$0xf] }
  0x2b   : > { %518 = vmatpush.bf16.msra.mxu1 %v2244_v29  ;;  %v1948_v50 = vld [vmem:[%s3106_s1 + $0x4c] sm:$0xf]  ;;  %v1762_v51 = vld [vmem:[%s3106_s1 + $0x54] sm:$0xf0]  ;;  %v2313_v52 = vor.u32 %v1973_v46, %v1856_v45  ;;  %v1946_v53 = vld [vmem:[%s3106_s1 + $0x38] sm:$0xf0] }
  0x2c   : > { %506 = vmatpush.bf16.msra.mxu0 %v2247_v30  ;;  %v1816_v54 = vld [vmem:[%s3106_s1 + $0xb0] sm:$0xf]  ;;  %v1962_v55 = vld [vmem:[%s3106_s1 + $0xb8] sm:$0xf0]  ;;  %v2333_v59 = vor.u32 %v1948_v50, %v1762_v51  ;;  %v1804_v60 = vld [vmem:[%s3106_s1 + $0x98] sm:$0xf]  ;;  %v2339_v61 = vor.u32 %v1946_v53, %v1748_v49 }
  0x2d   : > { %673 = vmatpush.bf16.msra.mxu3 %v2256_v33  ;;  %3153 = vst [vmem:[#allocation4_spill] sm:$0xff] %v2313_v52  ;;  %v1844_v56 = vld [vmem:[%s3107_s2 + $0x30] sm:$0xf]  ;;  %v1970_v57 = vld [vmem:[%s3107_s2 + $0x38] sm:$0xf0]  ;;  %v2330_v58 = vor.u32 %v1962_v55, %v1816_v54  ;;  %s1720_s6 = sshll.u32 %s264_s9, 5 }
  0x2e   : > { %v1945_v62 = vld [vmem:[%s3106_s1 + $0x34] sm:$0xf]  ;;  %v1750_v63 = vld [vmem:[%s3106_s1 + $0x3c] sm:$0xf0]  ;;  %v1959_v0 = vld [vmem:[%s3106_s1 + $0xa0] sm:$0xf0]  ;;  %v2352_v1 = vor.u32 %v1970_v57, %v1844_v56 }
  0x2f   : > { %519 = vmatpush.bf16.msra.mxu1 %v2271_v38  ;;  %530 = vmatpush.bf16.msra.mxu2 %v2330_v58  ;;  %v1736_v2 = vld [vmem:[%s3106_s1 + $0x18] sm:$0xf]  ;;  %v1943_v3 = vld [vmem:[%s3106_s1 + $0x20] sm:$0xf0]  ;;  %v2363_v5 = vor.u32 %v1959_v0, %v1804_v60  ;;  %v1792_v7 = vld [vmem:[%s3106_s1 + $0x80] sm:$0xf]  ;;  %v2375_v9 = vor.u32 %v1945_v62, %v1750_v63 }
  0x30   : > { %507 = vmatpush.bf16.msra.mxu0 %v2274_v39  ;;  %3154 = vst [vmem:[#allocation5_spill] sm:$0xff] %v2352_v1  ;;  %v1832_v4 = vld [vmem:[%s3107_s2 + $0x18] sm:$0xf]  ;;  %v1967_v6 = vld [vmem:[%s3107_s2 + $0x20] sm:$0xf0]  ;;  %v2385_v13 = vor.u32 %v1943_v3, %v1736_v2  ;;  %s2459_s28 = scalar_lea.vmem [#allocation2], %s1720_s6 }
  0x31   : > { %674 = vmatpush.bf16.msra.mxu3 %v2283_v42  ;;  %3155 = vst [vmem:[#allocation6_spill] sm:$0xff] %v2363_v5  ;;  %v1956_v8 = vld [vmem:[%s3106_s1 + $0x88] sm:$0xf0]  ;;  %v1724_v10 = vld [vmem:[%s3106_s1] sm:$0xf]  ;;  %v2400_v20 = vor.u32 %v1967_v6, %v1832_v4  ;;  %v2116_v0 = vmov 0  }
  0x32   : > { %v1940_v12 = vld [vmem:[%s3106_s1 + $0x8] sm:$0xf0]  ;;  %v1820_v14 = vld [vmem:[%s3107_s2] sm:$0xf]  ;;  %v1942_v16 = vld [vmem:[%s3106_s1 + $0x1c] sm:$0xf]  ;;  %v2397_v18 = vor.u32 %v1956_v8, %v1792_v7 }
  0x33   : > { %520 = vmatpush.bf16.msra.mxu1 %v2298_v47  ;;  %v1738_v17 = vld [vmem:[%s3106_s1 + $0x24] sm:$0xf0]  ;;  %531 = vmatpush.bf16.msra.mxu2 %v2363_v5  ;;  %3156 = vst [vmem:[#allocation7_spill] sm:$0xff] %v2400_v20  ;;  %v1964_v23 = vld [vmem:[%s3107_s2 + $0x8] sm:$0xf0]  ;;  %v2421_v31 = vor.u32 %v1940_v12, %v1724_v10  ;;  %p290_p8 = scmp.lt.s32.totalorder %s1713_s21, 1 }
  0x34   : > { %508 = vmatpush.bf16.msra.mxu0 %v2301_v48  ;;  %v1780_v24 = vld [vmem:[%s3106_s1 + $0x68] sm:$0xf]  ;;  %v1953_v25 = vld [vmem:[%s3106_s1 + $0x70] sm:$0xf0]  ;;  %v1984_v26 = vld [vmem:[%s3107_s2 + $0xac] sm:$0xf]  ;;  %v2418_v28 = vor.u32 %v1942_v16, %v1738_v17  ;;  %v2436_v37 = vor.u32 %v1964_v23, %v1820_v14 }
  0x35   : > { %675 = vmatpush.bf16.msra.mxu3 %v2313_v52  ;;  %v1906_v27 = vld [vmem:[%s3107_s2 + $0xb4] sm:$0xf0]  ;;  %v1981_v32 = vld [vmem:[%s3107_s2 + $0x94] sm:$0xf]  ;;  %v1939_v34 = vld [vmem:[%s3106_s1 + $0x4] sm:$0xf]  ;;  %v2433_v36 = vor.u32 %v1953_v25, %v1780_v24 }
  0x36   : > { %v1726_v35 = vld [vmem:[%s3106_s1 + $0xc] sm:$0xf0]  ;;  %3158 = vst [vmem:[#allocation9_spill] sm:$0xff] %v2436_v37  ;;  %v2438_v40 = vor.u32 %v1984_v26, %v1906_v27  ;;  %v1986_v43 = vld [vmem:[%s3107_s2 + $0xb8] sm:$0xf0]  ;;  %s3230_s21 = smov (!%p290_p8, %s1713_s21), 1 }
  0x37   : > { %521 = vmatpush.bf16.msra.mxu1 %v2333_v59  ;;  %532 = vmatpush.bf16.msra.mxu2 %v2397_v18  ;;  %3157 = vst [vmem:[#allocation8_spill] sm:$0xff] %v2433_v36  ;;  %v1912_v41 = vld [vmem:[%s3107_s2 + $0xb0] sm:$0xf]  ;;  %v1894_v44 = vld [vmem:[%s3107_s2 + $0x9c] sm:$0xf0]  ;;  %v2456_v49 = vor.u32 %v1939_v34, %v1726_v35 }
  0x38   : > { %509 = vmatpush.bf16.msra.mxu0 %v2339_v61  ;;  %v1768_v45 = vld [vmem:[%s3106_s1 + $0x50] sm:$0xf]  ;;  %v1950_v46 = vld [vmem:[%s3106_s1 + $0x58] sm:$0xf0]  ;;  %v2462_v50 = vld [vmem:[%s2459_s28] sm:$0xf]  ;;  %v2464_v51 = vor.u32 %v1986_v43, %v1912_v41  ;;  %v2469_v53 = vor.u32 %v1981_v32, %v1894_v44 }
  0x39   : > { %676 = vmatpush.bf16.msra.mxu3 %v2352_v1  ;;  %v1978_v54 = vld [vmem:[%s3107_s2 + $0x7c] sm:$0xf]  ;;  %v1900_v55 = vld [vmem:[%s3107_s2 + $0x98] sm:$0xf]  ;;  %v1983_v56 = vld [vmem:[%s3107_s2 + $0xa0] sm:$0xf0]  ;;  %v2480_v57 = vor.u32 %v1950_v46, %v1768_v45 }
  0x3a   : > { %3159 = vst [vmem:[#allocation10_spill] sm:$0xff] %v2469_v53  ;;  %v1882_v60 = vld [vmem:[%s3107_s2 + $0x84] sm:$0xf0]  ;;  %v1756_v62 = vld [vmem:[%s3106_s1 + $0x38] sm:$0xf]  ;;  %v2496_v2 = vor.u32 %v1983_v56, %v1900_v55 }
  0x3b   : > { %522 = vmatpush.bf16.msra.mxu1 %v2375_v9  ;;  %533 = vmatpush.bf16.msra.mxu2 %v2433_v36  ;;  %3160 = vst [vmem:[#allocation11_spill] sm:$0xff] %v2480_v57  ;;  %v1947_v63 = vld [vmem:[%s3106_s1 + $0x40] sm:$0xf0]  ;;  %v2499_v3 = vor.u32 %v1978_v54, %v1882_v60  ;;  %v1888_v6 = vld [vmem:[%s3107_s2 + $0x80] sm:$0xf] }
  0x3c   : > { %510 = vmatpush.bf16.msra.mxu0 %v2385_v13  ;;  %v1975_v4 = vld [vmem:[%s3107_s2 + $0x64] sm:$0xf]  ;;  %v1980_v7 = vld [vmem:[%s3107_s2 + $0x88] sm:$0xf0]  ;;  %v2511_v8 = vor.u32 %v1947_v63, %v1756_v62  ;;  %v1870_v10 = vld [vmem:[%s3107_s2 + $0x6c] sm:$0xf0] }
  0x3d   : > { %677 = vmatpush.bf16.msra.mxu3 %v2400_v20  ;;  %v1744_v12 = vld [vmem:[%s3106_s1 + $0x20] sm:$0xf]  ;;  %v1944_v14 = vld [vmem:[%s3106_s1 + $0x28] sm:$0xf0]  ;;  %v2525_v16 = vor.u32 %v1980_v7, %v1888_v6  ;;  %v2528_v17 = vor.u32 %v1975_v4, %v1870_v10  ;;  %v1876_v24 = vld [vmem:[%s3107_s2 + $0x68] sm:$0xf] }
  0x3e   : > { %3161 = vst [vmem:[#allocation12_spill] sm:$0xff] %v2511_v8  ;;  %v1972_v23 = vld [vmem:[%s3107_s2 + $0x4c] sm:$0xf]  ;;  %v1977_v25 = vld [vmem:[%s3107_s2 + $0x70] sm:$0xf0]  ;;  %v2540_v26 = vor.u32 %v1944_v14, %v1744_v12 }
  0x3f   : > { %523 = vmatpush.bf16.msra.mxu1 %v2418_v28  ;;  %534 = vmatpush.bf16.msra.mxu2 %v2480_v57  ;;  %v1858_v27 = vld [vmem:[%s3107_s2 + $0x54] sm:$0xf0]  ;;  %v1732_v32 = vld [vmem:[%s3106_s1 + $0x8] sm:$0xf]  ;;  %v1941_v34 = vld [vmem:[%s3106_s1 + $0x10] sm:$0xf0]  ;;  %v2553_v35 = vor.u32 %v1977_v25, %v1876_v24 }
  0x40   : > { %511 = vmatpush.bf16.msra.mxu0 %v2421_v31  ;;  %3162 = vst [vmem:[#allocation13_spill] sm:$0xff] %v2540_v26  ;;  %v2556_v41 = vor.u32 %v1972_v23, %v1858_v27  ;;  %v1864_v43 = vld [vmem:[%s3107_s2 + $0x50] sm:$0xf]  ;;  %v1974_v44 = vld [vmem:[%s3107_s2 + $0x58] sm:$0xf0]  ;;  %v2565_v45 = vor.u32 %v1941_v34, %v1732_v32 }
  0x41   : > { %678 = vmatpush.bf16.msra.mxu3 %v2436_v37  ;;  %v1969_v46 = vld [vmem:[%s3107_s2 + $0x34] sm:$0xf]  ;;  %v1846_v54 = vld [vmem:[%s3107_s2 + $0x3c] sm:$0xf0]  ;;  %v2575_v55 = vor.u32 %v1974_v44, %v1864_v43  ;;  %v1852_v60 = vld [vmem:[%s3107_s2 + $0x38] sm:$0xf] }
  0x42   : > { %3163 = vst [vmem:[#allocation14_spill] sm:$0xff] %v2556_v41  ;;  %v2578_v56 = vor.u32 %v1969_v46, %v1846_v54  ;;  %v1971_v62 = vld [vmem:[%s3107_s2 + $0x40] sm:$0xf0]  ;;  %v1966_v63 = vld [vmem:[%s3107_s2 + $0x1c] sm:$0xf] }
  0x43   : > { %524 = vmatpush.bf16.msra.mxu1 %v2456_v49  ;;  %512 = vmatmul.bf16.vlgmr.msra.gmra.mxu0 %v2462_v50  ;;  %3164 = vst [vmem:[#allocation15_spill] sm:$0xff] %v2565_v45  ;;  %v1834_v4 = vld [vmem:[%s3107_s2 + $0x24] sm:$0xf0]  ;;  %v2596_v6 = vor.u32 %v1971_v62, %v1852_v60  ;;  %v1840_v10 = vld [vmem:[%s3107_s2 + $0x20] sm:$0xf] }
  0x44   : > { %684 = vmatpush.bf16.msrb.mxu0 %v2438_v40  ;;  %679 = vmatmul.bf16.vlgmr.msra.gmra.mxu3 %v2116_v0  ;;  %3165 = vst [vmem:[#allocation16_spill] sm:$0xff] %v2578_v56  ;;  %v2600_v7 = vor.u32 %v1966_v63, %v1834_v4  ;;  %v1968_v12 = vld [vmem:[%s3107_s2 + $0x28] sm:$0xf0]  ;;  %v1963_v14 = vld [vmem:[%s3107_s2 + $0x4] sm:$0xf] }
  0x45   : > { %772 = vmatpush.bf16.msrb.mxu3 %v2223_v22  ;;  %535 = vmatpush.bf16.msra.mxu2 %v2511_v8  ;;  %v2617_v23 = vor.u32 %v1968_v12, %v1840_v10  ;;  %v1828_v25 = vld [vmem:[%s3107_s2 + $0x8] sm:$0xf]  ;;  %v1965_v27 = vld [vmem:[%s3107_s2 + $0x10] sm:$0xf0]  ;;  %v367_v43 = vld [vmem:[%s3109_s4] sm:$0x7] }
  0x46   : > { %525 = vmatmul.bf16.vlgmr.msra.gmra.mxu1 %v2462_v50  ;;  %3166 = vst [vmem:[#allocation17_spill] sm:$0xff] %v2600_v7  ;;  %v2631_v32 = vor.u32 %v1965_v27, %v1828_v25  ;;  %v2702_v54 = vperm.slane %v367_v43, 0  ;;  %v1916_v25 = vld [vmem:[%s2459_s28 + $0x4] sm:$0xf] }
  0x47   : > { %697 = vmatpush.bf16.msrb.mxu1 %v2464_v51 }
  0x48   : > { %685 = vmatpush.bf16.msrb.mxu0 %v2469_v53 }
  0x49   : > { %773 = vmatpush.bf16.msrb.mxu3 %v2244_v29  ;;  %536 = vmatpush.bf16.msra.mxu2 %v2540_v26 }
  0x4b   : > { %698 = vmatpush.bf16.msrb.mxu1 %v2496_v2 }
  0x4c   : > { %686 = vmatpush.bf16.msrb.mxu0 %v2499_v3 }
  0x4d   : > { %774 = vmatpush.bf16.msrb.mxu3 %v2271_v38  ;;  %537 = vmatpush.bf16.msra.mxu2 %v2565_v45 }
  0x4f   : > { %699 = vmatpush.bf16.msrb.mxu1 %v2525_v16 }
  0x50   : > { %687 = vmatpush.bf16.msrb.mxu0 %v2528_v17  ;;  %538 = vmatmul.bf16.vlgmr.msra.gmra.mxu2 %v2462_v50  ;;  %v1822_v50 = vld [vmem:[%s3107_s2 + $0xc] sm:$0xf0] }
  0x51   : > { %775 = vmatpush.bf16.msrb.mxu3 %v2298_v47  ;;  %759 = vmatpush.bf16.msrb.mxu2 %v2192_v11  ;;  %v2620_v24 = vor.u32 %v1963_v14, %v1822_v50 }
  0x53   : > { %700 = vmatpush.bf16.msrb.mxu1 %v2553_v35  ;;  %3167 = vst [vmem:[#allocation18_spill] sm:$0xff] %v2620_v24 }
  0x54   : > { %688 = vmatpush.bf16.msrb.mxu0 %v2556_v41 }
  0x55   : > { %776 = vmatpush.bf16.msrb.mxu3 %v2333_v59  ;;  %760 = vmatpush.bf16.msrb.mxu2 %v2215_v19 }
  0x57   : > { %701 = vmatpush.bf16.msrb.mxu1 %v2575_v55 }
  0x58   : > { %689 = vmatpush.bf16.msrb.mxu0 %v2578_v56 }
  0x59   : > { %777 = vmatpush.bf16.msrb.mxu3 %v2375_v9  ;;  %761 = vmatpush.bf16.msrb.mxu2 %v2247_v30 }
  0x5b   : > { %702 = vmatpush.bf16.msrb.mxu1 %v2596_v6 }
  0x5c   : > { %690 = vmatpush.bf16.msrb.mxu0 %v2600_v7 }
  0x5d   : > { %778 = vmatpush.bf16.msrb.mxu3 %v2418_v28  ;;  %762 = vmatpush.bf16.msrb.mxu2 %v2274_v39 }
  0x5f   : > { %703 = vmatpush.bf16.msrb.mxu1 %v2617_v23 }
  0x60   : > { %691 = vmatpush.bf16.msrb.mxu0 %v2620_v24 }
  0x61   : > { %779 = vmatpush.bf16.msrb.mxu3 %v2456_v49  ;;  %763 = vmatpush.bf16.msrb.mxu2 %v2301_v48 }
  0x63   : > { %692 = vmatmul.bf16.vlgmr.msrb.gmra.mxu0 %v2116_v0  ;;  %704 = vmatpush.bf16.msrb.mxu1 %v2631_v32 }
  0x64   : > { %785 = vmatpush.bf16.msra.mxu0 %v2330_v58  ;;  %780 = vmatmul.bf16.vlgmr.msrb.gmra.mxu3 %v1916_v25 }
  0x65   : > { %825 = vmatpush.bf16.msra.mxu3 %v2464_v51  ;;  %764 = vmatpush.bf16.msrb.mxu2 %v2339_v61 }
  0x66   : > { %705 = vmatmul.bf16.vlgmr.msrb.gmra.mxu1 %v2116_v0  ;;  %v2694_v0 = vld [vmem:[%s3108_s3] sm:$0x7] }
  0x67   : > { %799 = vmatpush.bf16.msra.mxu1 %v2203_v15  ;;  %v2700_v44 = vperm.slane %v2694_v0, 0 }
  0x68   : > { %786 = vmatpush.bf16.msra.mxu0 %v2363_v5 }
  0x69   : > { %826 = vmatpush.bf16.msra.mxu3 %v2496_v2  ;;  %765 = vmatpush.bf16.msrb.mxu2 %v2385_v13 }
  0x6b   : > { %800 = vmatpush.bf16.msra.mxu1 %v2221_v21 }
  0x6c   : > { %787 = vmatpush.bf16.msra.mxu0 %v2397_v18 }
  0x6d   : > { %827 = vmatpush.bf16.msra.mxu3 %v2525_v16  ;;  %766 = vmatpush.bf16.msrb.mxu2 %v2421_v31 }
  0x6f   : > { %801 = vmatpush.bf16.msra.mxu1 %v2256_v33 }
  0x70   : > { %788 = vmatpush.bf16.msra.mxu0 %v2433_v36  ;;  %767 = vmatmul.bf16.vlgmr.msrb.gmra.mxu2 %v1916_v25 }
  0x71   : > { %828 = vmatpush.bf16.msra.mxu3 %v2553_v35  ;;  %812 = vmatpush.bf16.msra.mxu2 %v2438_v40 }
  0x73   : > { %802 = vmatpush.bf16.msra.mxu1 %v2283_v42 }
  0x74   : > { %789 = vmatpush.bf16.msra.mxu0 %v2480_v57 }
  0x75   : > { %829 = vmatpush.bf16.msra.mxu3 %v2575_v55  ;;  %813 = vmatpush.bf16.msra.mxu2 %v2469_v53 }
  0x77   : > { %803 = vmatpush.bf16.msra.mxu1 %v2313_v52 }
  0x78   : > { %790 = vmatpush.bf16.msra.mxu0 %v2511_v8 }
  0x79   : > { %830 = vmatpush.bf16.msra.mxu3 %v2596_v6  ;;  %814 = vmatpush.bf16.msra.mxu2 %v2499_v3 }
  0x7b   : > { %804 = vmatpush.bf16.msra.mxu1 %v2352_v1 }
  0x7c   : > { %791 = vmatpush.bf16.msra.mxu0 %v2540_v26 }
  0x7d   : > { %831 = vmatpush.bf16.msra.mxu3 %v2617_v23  ;;  %815 = vmatpush.bf16.msra.mxu2 %v2528_v17 }
  0x7f   : > { %805 = vmatpush.bf16.msra.mxu1 %v2400_v20 }
  0x80   : > { %792 = vmatpush.bf16.msra.mxu0 %v2565_v45 }
  0x81   : > { %832 = vmatpush.bf16.msra.mxu3 %v2631_v32  ;;  %816 = vmatpush.bf16.msra.mxu2 %v2556_v41 }
  0x83   : > { %806 = vmatpush.bf16.msra.mxu1 %v2436_v37  ;;  %793 = vmatmul.bf16.vlgmr.msra.gmra.mxu0 %v1916_v25 }
  0x84   : > { %887 = vmatpush.bf16.msrb.mxu0 %v2192_v11 }
  0x85   : > { %817 = vmatpush.bf16.msra.mxu2 %v2578_v56  ;;  %927 = vmatpush.bf16.msrb.mxu3 %v2203_v15 }
  0x87   : > { %900 = vmatpush.bf16.msrb.mxu1 %v2223_v22 }
  0x88   : > { %888 = vmatpush.bf16.msrb.mxu0 %v2215_v19 }
  0x89   : > { %818 = vmatpush.bf16.msra.mxu2 %v2600_v7  ;;  %928 = vmatpush.bf16.msrb.mxu3 %v2221_v21 }
  0x8b   : > { %901 = vmatpush.bf16.msrb.mxu1 %v2244_v29 }
  0x8c   : > { %889 = vmatpush.bf16.msrb.mxu0 %v2247_v30 }
  0x8d   : > { %819 = vmatpush.bf16.msra.mxu2 %v2620_v24  ;;  %929 = vmatpush.bf16.msrb.mxu3 %v2256_v33 }
  0x8f   : > { %902 = vmatpush.bf16.msrb.mxu1 %v2271_v38 }
  0x90   : > { %890 = vmatpush.bf16.msrb.mxu0 %v2274_v39 }
  0x91   : > { %913 = vmatpush.bf16.msrb.mxu2 %v2330_v58  ;;  %930 = vmatpush.bf16.msrb.mxu3 %v2283_v42 }
  0x93   : > { %903 = vmatpush.bf16.msrb.mxu1 %v2298_v47 }
  0x94   : > { %891 = vmatpush.bf16.msrb.mxu0 %v2301_v48 }
  0x95   : > { %914 = vmatpush.bf16.msrb.mxu2 %v2363_v5  ;;  %931 = vmatpush.bf16.msrb.mxu3 %v2313_v52 }
  0x97   : > { %904 = vmatpush.bf16.msrb.mxu1 %v2333_v59 }
  0x98   : > { %892 = vmatpush.bf16.msrb.mxu0 %v2339_v61 }
  0x99   : > { %915 = vmatpush.bf16.msrb.mxu2 %v2397_v18  ;;  %932 = vmatpush.bf16.msrb.mxu3 %v2352_v1 }
  0x9b   : > { %905 = vmatpush.bf16.msrb.mxu1 %v2375_v9 }
  0x9c   : > { %893 = vmatpush.bf16.msrb.mxu0 %v2385_v13 }
  0x9d   : > { %916 = vmatpush.bf16.msrb.mxu2 %v2433_v36  ;;  %933 = vmatpush.bf16.msrb.mxu3 %v2400_v20 }
  0x9f   : > { %906 = vmatpush.bf16.msrb.mxu1 %v2418_v28 }
  0xa0   : > { %894 = vmatpush.bf16.msrb.mxu0 %v2421_v31 }
  0xa1   : > { %917 = vmatpush.bf16.msrb.mxu2 %v2480_v57  ;;  %934 = vmatpush.bf16.msrb.mxu3 %v2436_v37 }
  0xa3   : > { %907 = vmatpush.bf16.msrb.mxu1 %v2456_v49 }
  0xa4   : > { %940 = vmatpush.bf16.msra.mxu0 %v2438_v40 }
  0xa5   : > { %918 = vmatpush.bf16.msrb.mxu2 %v2511_v8 }
  0xa8   : > { %941 = vmatpush.bf16.msra.mxu0 %v2469_v53 }
  0xa9   : > { %919 = vmatpush.bf16.msrb.mxu2 %v2540_v26 }
  0xac   : > { %942 = vmatpush.bf16.msra.mxu0 %v2499_v3 }
  0xad   : > { %920 = vmatpush.bf16.msrb.mxu2 %v2565_v45 }
  0xb0   : > { %943 = vmatpush.bf16.msra.mxu0 %v2528_v17 }
  0xb4   : > { %944 = vmatpush.bf16.msra.mxu0 %v2556_v41 }
  0xb8   : > { %945 = vmatpush.bf16.msra.mxu0 %v2578_v56 }
  0xbc   : > { %946 = vmatpush.bf16.msra.mxu0 %v2600_v7 }
  0xc0   : > { %v513_v34 = vpop.f32.mrf.mxu0  ;;  %947 = vmatpush.bf16.msra.mxu0 %v2620_v24 }
  0xc1   : > { %v514_v60 = vadd.f32 %v513_v34, %v2700_v44 }
  0xc3   : > { %v526_v46 = vpop.f32.mrf.mxu1 }
  0xc7   : > { %v680_v62 = vpop.f32.mrf.mxu3 }
  0xc8   : > { %v681_v63 = vadd.f32 %v680_v62, %v2702_v54  ;;  %v515_v4 = vpop.f32.mrf.mxu0 }
  0xca   : > { %v710_v10 = vadd.f32 %v681_v63, %v514_v60  ;;  %v2712_v60 = vperm.slane %v2694_v0, 1  ;;  %v2716_v63 = vperm.slane %v367_v43, 1 }
  0xcb   : > { %v528_v12 = vpop.f32.mrf.mxu1 }
  0xcc   : > { %v1914_v14 = vmul.f32 -1.442695, %v710_v10  ;;  %v527_v4 = vadd.f32 %v526_v46, %v2712_v60 }
  0xce   : > { %2012 = vpow2.f32 %v1914_v14 }
  0xcf   : > { %v682_v50 = vpop.f32.mrf.mxu3 }
  0xd3   : > { %v539_v62 = vpop.f32.mrf.mxu2 }
  0xd4   : > { %v2013_v27 = vpop.eup %2012 }
  0xd5   : > { %v714_v34 = vadd.f32 1.0, %v2013_v27 }
  0xd7   : > { %2014 = vrcp.f32 %v714_v34  ;;  %vm720_vm0 = vweird.f32 %v714_v34 }
  0xdb   : > { %v541_v25 = vpop.f32.mrf.mxu2 }
  0xdd   : > { %v2015_v10 = vpop.eup %2014 }
  0xde   : > { %v716_v50 = vmul.f32 %v2015_v10, %v714_v34  ;;  %vm721_vm1 = vweird.f32 %v2015_v10 }
  0xdf   : > { %vm722_vm2 = vmor %vm720_vm0, %vm721_vm1 }
  0xe0   : > { %v693_v12 = vpop.f32.mrf.mxu0  ;;  %v717_v53 = vsub.f32 1.0, %v716_v50  ;;  %v724_v50 = vand.u32 2147483647, %v714_v34 }
  0xe1   : > { %v694_v14 = vadd.f32 %v693_v12, %v2716_v63 }
  0xe2   : > { %v718_v33 = vmul.f32 %v2015_v10, %v717_v53  ;;  %v2732_v53 = vperm.slane %v367_v43, 2  ;;  %vm725_vm3 = vcmp.eq.f32.partialorder %v724_v50, 8.507059e+37 }
  0xe3   : > { %v730_v27 = vadd.f32 %v694_v14, %v527_v4  ;;  %v706_v5 = vpop.f32.mrf.mxu1  ;;  %v726_v4 = vand.u32 2147483648, %v714_v34 }
  0xe4   : > { %v719_v25 = vadd.f32 %v2015_v10, %v718_v33  ;;  %3168 = vst [vmem:[#allocation19_spill] sm:$0xff] %v2732_v53 }
  0xe5   : > { %v1915_v46 = vmul.f32 -1.442695, %v730_v27  ;;  %v727_v33 = vor.u32 1.1754944e-38, %v726_v4 }
  0xe6   : > { %v723_v41 = vsel %vm722_vm2, %v2015_v10, %v719_v25 }
  0xe7   : > { %2016 = vpow2.f32 %v1915_v46  ;;  %v728_v43 = vsel %vm725_vm3, %v727_v33, %v723_v41 }
  0xe8   : > { %v695_v12 = vpop.f32.mrf.mxu0 }
  0xe9   : > { %v707_v12 = vadd.f32 %v706_v5, %v2732_v53 }
  0xeb   : > { %v708_v14 = vpop.f32.mrf.mxu1  ;;  %v750_v34 = vmul.f32 %v728_v43, %v707_v12 }
  0xec   : > { %v2739_v14 = vperm.slane %v2694_v0, 2 }
  0xed   : > { %v2017_v27 = vpop.eup %2016 }
  0xee   : > { %v734_v46 = vadd.f32 1.0, %v2017_v27  ;;  %v540_v10 = vadd.f32 %v539_v62, %v2739_v14 }
  0xf0   : > { %2018 = vrcp.f32 %v734_v46  ;;  %v751_v27 = vadd.f32 %v750_v34, %v540_v10  ;;  %v746_v7 = vand.u32 2147483648, %v734_v46  ;;  %v744_v50 = vand.u32 2147483647, %v734_v46 }
  0xf1   : > { %vm740_vm5 = vweird.f32 %v734_v46 }
  0xf2   : > { %2020 = vtanh.f32 %v751_v27  ;;  %v747_v0 = vor.u32 1.1754944e-38, %v746_v7  ;;  %vm745_vm7 = vcmp.eq.f32.partialorder %v744_v50, 8.507059e+37 }
  0xf6   : > { %v2019_v25 = vpop.eup %2018 }
  0xf7   : > { %v736_v4 = vmul.f32 %v2019_v25, %v734_v46  ;;  %vm741_vm4 = vweird.f32 %v2019_v25 }
  0xf8   : > { %vm742_vm6 = vmor %vm740_vm5, %vm741_vm4  ;;  %v2021_v12 = vpop.eup %2020 }
  0xf9   : > { %v737_v26 = vsub.f32 1.0, %v736_v4 }
  0xfb   : > { %v738_v5 = vmul.f32 %v2019_v25, %v737_v26  ;;  %v768_v26 = vpop.f32.mrf.mxu2 }
  0xfd   : > { %v739_v41 = vadd.f32 %v2019_v25, %v738_v5  ;;  %v1919_v5 = vld [vmem:[%s2459_s28 + $0x8] sm:$0xf] }
  0xfe   : > { %895 = vmatmul.bf16.vlgmr.msrb.gmra.mxu0 %v1919_v5 }
  0xff   : > { %v743_v33 = vsel %vm742_vm6, %v2019_v25, %v739_v41  ;;  %v769_v25 = vadd.f32 %v768_v26, %v2700_v44  ;;  %1041 = vmatpush.bf16.msrb.mxu0 %v2330_v58  ;;  %v3169_v26 = vld [vmem:[#allocation10_spill] sm:$0xff] }
 0x100   : > { %v748_v24 = vsel %vm745_vm7, %v747_v0, %v743_v33  ;;  %v794_v46 = vpop.f32.mrf.mxu0 }
 0x101   : > { %v753_v45 = vsub.f32 1.0, %v748_v24  ;;  %v755_v62 = vmul.f32 0.0, %v748_v24 }
 0x103   : > { %v754_v43 = vmul.f32 %v2021_v12, %v753_v45  ;;  %v781_v45 = vpop.f32.mrf.mxu3  ;;  %v770_v7 = vpop.f32.mrf.mxu2 }
 0x104   : > { %v782_v41 = vadd.f32 %v781_v45, %v2712_v60  ;;  %v3170_v7 = vld [vmem:[#allocation6_spill] sm:$0xff]  ;;  %v3171_v45 = vld [vmem:[#allocation3_spill] sm:$0xff] }
 0x105   : > { %v2745_v37 = vadd.f32 %v755_v62, %v754_v43  ;;  %1042 = vmatpush.bf16.msrb.mxu0 %v3170_v7 }
 0x107   : > { %v798_v34 = vpack.c.bf16 %v2745_v37, %v2745_v37 }
 0x108   : > { %v796_v27 = vpop.f32.mrf.mxu0 }
 0x109   : > { %807 = vmatmul.bf16.vlgmr.msra.gmra.mxu1 %v798_v34  ;;  %820 = vmatmul.bf16.vlgmr.msra.gmra.mxu2 %v798_v34 }
 0x10a   : > { %833 = vmatmul.bf16.vlgmr.msra.gmra.mxu3 %v798_v34  ;;  %953 = vmatpush.bf16.msra.mxu1 %v2464_v51 }
 0x10b   : > { %1015 = vmatpush.bf16.msra.mxu2 %v2192_v11  ;;  %1028 = vmatpush.bf16.msra.mxu3 %v2223_v22  ;;  %v783_v24 = vpop.f32.mrf.mxu3 }
 0x10c   : > { %1043 = vmatpush.bf16.msrb.mxu0 %v2397_v18 }
 0x10e   : > { %954 = vmatpush.bf16.msra.mxu1 %v2496_v2 }
 0x10f   : > { %1016 = vmatpush.bf16.msra.mxu2 %v2215_v19  ;;  %1029 = vmatpush.bf16.msra.mxu3 %v2244_v29 }
 0x110   : > { %1044 = vmatpush.bf16.msrb.mxu0 %v2433_v36 }
 0x112   : > { %955 = vmatpush.bf16.msra.mxu1 %v2525_v16 }
 0x113   : > { %1017 = vmatpush.bf16.msra.mxu2 %v2247_v30  ;;  %1030 = vmatpush.bf16.msra.mxu3 %v2271_v38 }
 0x114   : > { %1045 = vmatpush.bf16.msrb.mxu0 %v2480_v57  ;;  %v3174_v57 = vld [vmem:[#allocation13_spill] sm:$0xff] }
 0x116   : > { %956 = vmatpush.bf16.msra.mxu1 %v2553_v35 }
 0x117   : > { %1018 = vmatpush.bf16.msra.mxu2 %v2274_v39  ;;  %1031 = vmatpush.bf16.msra.mxu3 %v2298_v47 }
 0x118   : > { %1046 = vmatpush.bf16.msrb.mxu0 %v2511_v8 }
 0x119   : > { %908 = vmatmul.bf16.vlgmr.msrb.gmra.mxu1 %v1919_v5  ;;  %921 = vmatmul.bf16.vlgmr.msrb.gmra.mxu2 %v1919_v5 }
 0x11a   : > { %957 = vmatpush.bf16.msra.mxu1 %v2575_v55 }
 0x11b   : > { %1019 = vmatpush.bf16.msra.mxu2 %v2301_v48  ;;  %1032 = vmatpush.bf16.msra.mxu3 %v2333_v59 }
 0x11c   : > { %1047 = vmatpush.bf16.msrb.mxu0 %v3174_v57 }
 0x11e   : > { %958 = vmatpush.bf16.msra.mxu1 %v2596_v6 }
 0x11f   : > { %1020 = vmatpush.bf16.msra.mxu2 %v2339_v61  ;;  %1033 = vmatpush.bf16.msra.mxu3 %v2375_v9 }
 0x122   : > { %959 = vmatpush.bf16.msra.mxu1 %v2617_v23 }
 0x123   : > { %1021 = vmatpush.bf16.msra.mxu2 %v2385_v13  ;;  %1034 = vmatpush.bf16.msra.mxu3 %v2418_v28 }
 0x126   : > { %960 = vmatpush.bf16.msra.mxu1 %v2631_v32 }
 0x127   : > { %1022 = vmatpush.bf16.msra.mxu2 %v2421_v31  ;;  %1035 = vmatpush.bf16.msra.mxu3 %v2456_v49 }
 0x12a   : > { %1055 = vmatpush.bf16.msrb.mxu1 %v2203_v15 }
 0x12b   : > { %1068 = vmatpush.bf16.msrb.mxu2 %v2438_v40 }
 0x12e   : > { %1056 = vmatpush.bf16.msrb.mxu1 %v2221_v21 }
 0x12f   : > { %1069 = vmatpush.bf16.msrb.mxu2 %v3169_v26 }
 0x132   : > { %1057 = vmatpush.bf16.msrb.mxu1 %v3171_v45 }
 0x133   : > { %1070 = vmatpush.bf16.msrb.mxu2 %v2499_v3 }
 0x136   : > { %1058 = vmatpush.bf16.msrb.mxu1 %v2283_v42 }
 0x137   : > { %1071 = vmatpush.bf16.msrb.mxu2 %v2528_v17 }
 0x13a   : > { %1059 = vmatpush.bf16.msrb.mxu1 %v2313_v52  ;;  %v3175_v52 = vld [vmem:[#allocation9_spill] sm:$0xff] }
 0x13e   : > { %1060 = vmatpush.bf16.msrb.mxu1 %v2352_v1 }
 0x142   : > { %1061 = vmatpush.bf16.msrb.mxu1 %v2400_v20 }
 0x146   : > { %1062 = vmatpush.bf16.msrb.mxu1 %v3175_v52 }
 0x186   : > { %v808_v10 = vpop.f32.mrf.mxu1 }
 0x187   : > { %v809_v4 = vadd.f32 %v808_v10, %v2702_v54 }
 0x189   : > { %v838_v50 = vadd.f32 %v809_v4, %v769_v25 }
 0x18b   : > { %v1917_v0 = vmul.f32 -1.442695, %v838_v50 }
 0x18c   : > { %v821_v33 = vpop.f32.mrf.mxu2 }
 0x18d   : > { %2022 = vpow2.f32 %v1917_v0  ;;  %v822_v12 = vadd.f32 %v821_v33, %v2716_v63  ;;  %v834_v43 = vpop.f32.mrf.mxu3 }
 0x18e   : > { %v810_v62 = vpop.f32.mrf.mxu1  ;;  %v835_v8 = vadd.f32 %v834_v43, %v2732_v53 }
 0x18f   : > { %v858_v34 = vadd.f32 %v822_v12, %v782_v41  ;;  %v3172_v41 = vld [vmem:[#allocation14_spill] sm:$0xff] }
 0x190   : > { %1072 = vmatpush.bf16.msrb.mxu2 %v3172_v41 }
 0x191   : > { %v1918_v24 = vmul.f32 -1.442695, %v858_v34 }
 0x193   : > { %v2023_v10 = vpop.eup %2022  ;;  %2024 = vpow2.f32 %v1918_v24 }
 0x194   : > { %v842_v25 = vadd.f32 1.0, %v2023_v10  ;;  %v823_v4 = vpop.f32.mrf.mxu2  ;;  %1073 = vmatpush.bf16.msrb.mxu2 %v2578_v56  ;;  %v795_v56 = vadd.f32 %v794_v46, %v2739_v14 }
 0x195   : > { %v836_v27 = vpop.f32.mrf.mxu3 }
 0x196   : > { %2026 = vrcp.f32 %v842_v25  ;;  %v854_v62 = vand.u32 2147483648, %v842_v25  ;;  %v852_v24 = vand.u32 2147483647, %v842_v25  ;;  %vm848_vm9 = vweird.f32 %v842_v25 }
 0x198   : > { %vm853_vm11 = vcmp.eq.f32.partialorder %v852_v24, 8.507059e+37 }
 0x199   : > { %v2025_v5 = vpop.eup %2024 }
 0x19a   : > { %v862_v50 = vadd.f32 1.0, %v2025_v5  ;;  %v3173_v5 = vld [vmem:[#allocation17_spill] sm:$0xff] }
 0x19b   : > { %1074 = vmatpush.bf16.msrb.mxu2 %v3173_v5  ;;  %v3177_v5 = vld [vmem:[#allocation15_spill] sm:$0xff] }
 0x19c   : > { %v2027_v0 = vpop.eup %2026  ;;  %2028 = vrcp.f32 %v862_v50  ;;  %v874_v36 = vand.u32 2147483648, %v862_v50  ;;  %1048 = vmatpush.bf16.msrb.mxu0 %v3177_v5  ;;  %v872_v57 = vand.u32 2147483647, %v862_v50  ;;  %vm868_vm13 = vweird.f32 %v862_v50 }
 0x19d   : > { %v844_v33 = vmul.f32 %v2027_v0, %v842_v25  ;;  %vm849_vm8 = vweird.f32 %v2027_v0  ;;  %v3176_v25 = vld [vmem:[#allocation18_spill] sm:$0xff] }
 0x19e   : > { %vm850_vm10 = vmor %vm848_vm9, %vm849_vm8  ;;  %v875_v43 = vor.u32 1.1754944e-38, %v874_v36  ;;  %vm873_vm15 = vcmp.eq.f32.partialorder %v872_v57, 8.507059e+37  ;;  %v909_v36 = vpop.f32.mrf.mxu1 }
 0x19f   : > { %v845_v12 = vsub.f32 1.0, %v844_v33  ;;  %v855_v33 = vor.u32 1.1754944e-38, %v854_v62  ;;  %1075 = vmatpush.bf16.msrb.mxu2 %v3176_v25 }
 0x1a1   : > { %v846_v34 = vmul.f32 %v2027_v0, %v845_v12 }
 0x1a2   : > { %v2029_v10 = vpop.eup %2028 }
 0x1a3   : > { %v864_v4 = vmul.f32 %v2029_v10, %v862_v50  ;;  %v847_v27 = vadd.f32 %v2027_v0, %v846_v34  ;;  %vm869_vm12 = vweird.f32 %v2029_v10  ;;  %v910_v50 = vadd.f32 %v909_v36, %v2712_v60 }
 0x1a4   : > { %vm870_vm14 = vmor %vm868_vm13, %vm869_vm12 }
 0x1a5   : > { %v865_v1 = vsub.f32 1.0, %v864_v4  ;;  %v851_v12 = vsel %vm850_vm10, %v2027_v0, %v847_v27 }
 0x1a6   : > { %v856_v41 = vsel %vm853_vm11, %v855_v33, %v851_v12  ;;  %v911_v57 = vpop.f32.mrf.mxu1 }
 0x1a7   : > { %v866_v20 = vmul.f32 %v2029_v10, %v865_v1  ;;  %v878_v34 = vmul.f32 %v856_v41, %v835_v8 }
 0x1a9   : > { %v867_v62 = vadd.f32 %v2029_v10, %v866_v20  ;;  %v879_v46 = vadd.f32 %v878_v34, %v795_v56  ;;  %v896_v20 = vpop.f32.mrf.mxu0  ;;  %v2833_v56 = vpop.f32.mrf.mxu2 }
 0x1ab   : > { %v871_v4 = vsel %vm870_vm14, %v2029_v10, %v867_v62  ;;  %2030 = vtanh.f32 %v879_v46  ;;  %v1922_v46 = vld [vmem:[%s2459_s28 + $0xc] sm:$0xf] }
 0x1ac   : > { %v876_v0 = vsel %vm873_vm15, %v875_v43, %v871_v4  ;;  %1023 = vmatmul.bf16.vlgmr.msra.gmra.mxu2 %v1922_v46 }
 0x1ad   : > { %v881_v24 = vsub.f32 1.0, %v876_v0  ;;  %v883_v8 = vmul.f32 %v876_v0, %v2745_v37  ;;  %1169 = vmatpush.bf16.msra.mxu2 %v2330_v58 }
 0x1b1   : > { %v2031_v27 = vpop.eup %2030  ;;  %v898_v37 = vpop.f32.mrf.mxu0  ;;  %1170 = vmatpush.bf16.msra.mxu2 %v3170_v7 }
 0x1b2   : > { %v882_v1 = vmul.f32 %v2031_v27, %v881_v24  ;;  %v924_v4 = vpop.f32.mrf.mxu2  ;;  %v897_v24 = vadd.f32 %v896_v20, %v2700_v44  ;;  %v3178_v20 = vld [vmem:[#allocation8_spill] sm:$0xff] }
 0x1b3   : > { %v3181_v4 = vld [vmem:[#allocation11_spill] sm:$0xff] }
 0x1b4   : > { %v2805_v41 = vadd.f32 %v883_v8, %v882_v1 }
 0x1b5   : > { %1171 = vmatpush.bf16.msra.mxu2 %v2397_v18 }
 0x1b6   : > { %v926_v33 = vpack.c.bf16 %v2805_v41, %v2805_v41 }
 0x1b8   : > { %935 = vmatmul.bf16.vlgmr.msrb.gmra.mxu3 %v926_v33  ;;  %948 = vmatmul.bf16.vlgmr.msra.gmra.mxu0 %v926_v33 }
 0x1b9   : > { %961 = vmatmul.bf16.vlgmr.msra.gmra.mxu1 %v926_v33  ;;  %1081 = vmatpush.bf16.msrb.mxu3 %v2464_v51 }
 0x1ba   : > { %1143 = vmatpush.bf16.msra.mxu0 %v2192_v11  ;;  %1156 = vmatpush.bf16.msra.mxu1 %v2223_v22 }
 0x1bb   : > { %1172 = vmatpush.bf16.msra.mxu2 %v3178_v20 }
 0x1bd   : > { %1082 = vmatpush.bf16.msrb.mxu3 %v2496_v2 }
 0x1be   : > { %1144 = vmatpush.bf16.msra.mxu0 %v2215_v19  ;;  %1157 = vmatpush.bf16.msra.mxu1 %v2244_v29 }
 0x1bf   : > { %1173 = vmatpush.bf16.msra.mxu2 %v3181_v4 }
 0x1c1   : > { %1083 = vmatpush.bf16.msrb.mxu3 %v2525_v16 }
 0x1c2   : > { %1145 = vmatpush.bf16.msra.mxu0 %v2247_v30  ;;  %1158 = vmatpush.bf16.msra.mxu1 %v2271_v38 }
 0x1c5   : > { %1084 = vmatpush.bf16.msrb.mxu3 %v2553_v35 }
 0x1c6   : > { %1146 = vmatpush.bf16.msra.mxu0 %v2274_v39  ;;  %1159 = vmatpush.bf16.msra.mxu1 %v2298_v47 }
 0x1c8   : > { %1036 = vmatmul.bf16.vlgmr.msra.gmra.mxu3 %v1922_v46  ;;  %1049 = vmatmul.bf16.vlgmr.msrb.gmra.mxu0 %v1922_v46  ;;  %v3180_v46 = vld [vmem:[#allocation14_spill] sm:$0xff] }
 0x1c9   : > { %1085 = vmatpush.bf16.msrb.mxu3 %v2575_v55 }
 0x1ca   : > { %1147 = vmatpush.bf16.msra.mxu0 %v2301_v48  ;;  %1160 = vmatpush.bf16.msra.mxu1 %v2333_v59 }
 0x1cd   : > { %1086 = vmatpush.bf16.msrb.mxu3 %v2596_v6 }
 0x1ce   : > { %1148 = vmatpush.bf16.msra.mxu0 %v2339_v61  ;;  %1161 = vmatpush.bf16.msra.mxu1 %v2375_v9 }
 0x1d1   : > { %1087 = vmatpush.bf16.msrb.mxu3 %v2617_v23 }
 0x1d2   : > { %1149 = vmatpush.bf16.msra.mxu0 %v2385_v13  ;;  %1162 = vmatpush.bf16.msra.mxu1 %v2418_v28 }
 0x1d5   : > { %1088 = vmatpush.bf16.msrb.mxu3 %v2631_v32 }
 0x1d6   : > { %1150 = vmatpush.bf16.msra.mxu0 %v2421_v31  ;;  %1163 = vmatpush.bf16.msra.mxu1 %v2456_v49 }
 0x1d9   : > { %1183 = vmatpush.bf16.msra.mxu3 %v2203_v15 }
 0x1da   : > { %1196 = vmatpush.bf16.msrb.mxu0 %v2438_v40 }
 0x1dd   : > { %1184 = vmatpush.bf16.msra.mxu3 %v2221_v21 }
 0x1de   : > { %1197 = vmatpush.bf16.msrb.mxu0 %v3169_v26 }
 0x1e1   : > { %1185 = vmatpush.bf16.msra.mxu3 %v3171_v45 }
 0x1e2   : > { %1198 = vmatpush.bf16.msrb.mxu0 %v2499_v3 }
 0x1e5   : > { %1186 = vmatpush.bf16.msra.mxu3 %v2283_v42 }
 0x1e6   : > { %1199 = vmatpush.bf16.msrb.mxu0 %v2528_v17 }
 0x1ea   : > { %1200 = vmatpush.bf16.msrb.mxu0 %v3180_v46 }
 0x235   : > { %v949_v10 = vpop.f32.mrf.mxu0 }
 0x236   : > { %v950_v12 = vadd.f32 %v949_v10, %v2716_v63  ;;  %v2837_v34 = vpop.f32.mrf.mxu1 }
 0x238   : > { %v986_v62 = vadd.f32 %v950_v12, %v910_v50 }
 0x23a   : > { %v1921_v43 = vmul.f32 -1.442695, %v986_v62  ;;  %v3179_v62 = vld [vmem:[#allocation4_spill] sm:$0xff] }
 0x23b   : > { %v936_v0 = vpop.f32.mrf.mxu3  ;;  %1187 = vmatpush.bf16.msra.mxu3 %v3179_v62 }
 0x23c   : > { %2032 = vpow2.f32 %v1921_v43  ;;  %v937_v27 = vadd.f32 %v936_v0, %v2702_v54  ;;  %v3182_v0 = vld [vmem:[#allocation5_spill] sm:$0xff] }
 0x23d   : > { %v951_v1 = vpop.f32.mrf.mxu0 }
 0x23e   : > { %v966_v8 = vadd.f32 %v937_v27, %v897_v24  ;;  %v964_v33 = vpop.f32.mrf.mxu1  ;;  %v3183_v27 = vld [vmem:[#allocation16_spill] sm:$0xff] }
 0x23f   : > { %1188 = vmatpush.bf16.msra.mxu3 %v3182_v0  ;;  %1201 = vmatpush.bf16.msrb.mxu0 %v3183_v27  ;;  %v3184_v1 = vld [vmem:[#allocation12_spill] sm:$0xff] }
 0x240   : > { %v1920_v36 = vmul.f32 -1.442695, %v966_v8  ;;  %1174 = vmatpush.bf16.msra.mxu2 %v3184_v1 }
 0x242   : > { %v2033_v37 = vpop.eup %2032  ;;  %2034 = vpow2.f32 %v1920_v36  ;;  %v3185_v36 = vld [vmem:[#allocation7_spill] sm:$0xff] }
 0x243   : > { %v990_v57 = vadd.f32 1.0, %v2033_v37  ;;  %v938_v50 = vpop.f32.mrf.mxu3  ;;  %1189 = vmatpush.bf16.msra.mxu3 %v3185_v36 }
 0x244   : > { %v3186_v50 = vld [vmem:[#allocation17_spill] sm:$0xff] }
 0x245   : > { %2036 = vrcp.f32 %v990_v57  ;;  %1202 = vmatpush.bf16.msrb.mxu0 %v3186_v50  ;;  %v963_v50 = vadd.f32 %v2837_v34, %v2732_v53  ;;  %vm996_vm5 = vweird.f32 %v990_v57 }
 0x247   : > { %1190 = vmatpush.bf16.msra.mxu3 %v3175_v52 }
 0x248   : > { %v2035_v10 = vpop.eup %2034 }
 0x249   : > { %v970_v12 = vadd.f32 1.0, %v2035_v10  ;;  %v3187_v10 = vld [vmem:[#allocation13_spill] sm:$0xff]  ;;  %1203 = vmatpush.bf16.msrb.mxu0 %v3176_v25  ;;  %v1000_v25 = vand.u32 2147483647, %v990_v57 }
 0x24a   : > { %1175 = vmatpush.bf16.msra.mxu2 %v3187_v10 }
 0x24b   : > { %2038 = vrcp.f32 %v970_v12  ;;  %v2037_v43 = vpop.eup %2036  ;;  %v982_v62 = vand.u32 2147483648, %v970_v12  ;;  %v980_v20 = vand.u32 2147483647, %v970_v12  ;;  %vm976_vm1 = vweird.f32 %v970_v12 }
 0x24c   : > { %v992_v24 = vmul.f32 %v2037_v43, %v990_v57  ;;  %vm997_vm4 = vweird.f32 %v2037_v43  ;;  %vm1001_vm7 = vcmp.eq.f32.partialorder %v1000_v25, 8.507059e+37 }
 0x24d   : > { %vm981_vm3 = vcmp.eq.f32.partialorder %v980_v20, 8.507059e+37  ;;  %vm998_vm6 = vmor %vm996_vm5, %vm997_vm4 }
 0x24e   : > { %v993_v37 = vsub.f32 1.0, %v992_v24  ;;  %1176 = vmatpush.bf16.msra.mxu2 %v3177_v5  ;;  %v983_v24 = vor.u32 1.1754944e-38, %v982_v62 }
 0x250   : > { %v994_v0 = vmul.f32 %v2037_v43, %v993_v37  ;;  %v1002_v37 = vand.u32 2147483648, %v990_v57 }
 0x251   : > { %v2039_v8 = vpop.eup %2038 }
 0x252   : > { %v972_v33 = vmul.f32 %v2039_v8, %v970_v12  ;;  %vm977_vm0 = vweird.f32 %v2039_v8  ;;  %v995_v36 = vadd.f32 %v2037_v43, %v994_v0  ;;  %v1003_v5 = vor.u32 1.1754944e-38, %v1002_v37 }
 0x253   : > { %vm978_vm2 = vmor %vm976_vm1, %vm977_vm0 }
 0x254   : > { %v973_v46 = vsub.f32 1.0, %v972_v33  ;;  %v923_v33 = vadd.f32 %v2833_v56, %v2739_v14  ;;  %v999_v12 = vsel %vm998_vm6, %v2037_v43, %v995_v36 }
 0x255   : > { %v1004_v62 = vsel %vm1001_vm7, %v1003_v5, %v999_v12 }
 0x256   : > { %v974_v4 = vmul.f32 %v2039_v8, %v973_v46  ;;  %v1009_v34 = vsub.f32 1.0, %v1004_v62  ;;  %v1011_v56 = vmul.f32 %v1004_v62, %v2805_v41  ;;  %v1050_v41 = vpop.f32.mrf.mxu0 }
 0x258   : > { %v975_v1 = vadd.f32 %v2039_v8, %v974_v4 }
 0x25a   : > { %v979_v46 = vsel %vm978_vm2, %v2039_v8, %v975_v1  ;;  %v1925_v8 = vld [vmem:[%s2459_s28 + $0x10] sm:$0xf] }
 0x25b   : > { %v984_v10 = vsel %vm981_vm3, %v983_v24, %v979_v46  ;;  %1151 = vmatmul.bf16.vlgmr.msra.gmra.mxu0 %v1925_v8 }
 0x25c   : > { %v1006_v52 = vmul.f32 %v984_v10, %v963_v50  ;;  %1297 = vmatpush.bf16.msra.mxu0 %v2330_v58 }
 0x25e   : > { %v1007_v4 = vadd.f32 %v1006_v52, %v923_v33  ;;  %v1024_v52 = vpop.f32.mrf.mxu2  ;;  %v1052_v1 = vpop.f32.mrf.mxu0 }
 0x25f   : > { %v1025_v43 = vadd.f32 %v1024_v52, %v2700_v44  ;;  %v3188_v52 = vld [vmem:[#allocation8_spill] sm:$0xff] }
 0x260   : > { %2040 = vtanh.f32 %v1007_v4  ;;  %1298 = vmatpush.bf16.msra.mxu0 %v3170_v7 }
 0x264   : > { %1299 = vmatpush.bf16.msra.mxu0 %v2397_v18 }
 0x266   : > { %v2041_v53 = vpop.eup %2040  ;;  %v1026_v5 = vpop.f32.mrf.mxu2 }
 0x267   : > { %v1010_v27 = vmul.f32 %v2041_v53, %v1009_v34  ;;  %v1037_v53 = vpop.f32.mrf.mxu3 }
 0x268   : > { %v1038_v50 = vadd.f32 %v1037_v53, %v2712_v60  ;;  %1300 = vmatpush.bf16.msra.mxu0 %v3188_v52 }
 0x269   : > { %v2871_v20 = vadd.f32 %v1011_v56, %v1010_v27 }
 0x26b   : > { %v1054_v0 = vpack.c.bf16 %v2871_v20, %v2871_v20 }
 0x26d   : > { %1063 = vmatmul.bf16.vlgmr.msrb.gmra.mxu1 %v1054_v0  ;;  %1076 = vmatmul.bf16.vlgmr.msrb.gmra.mxu2 %v1054_v0 }
 0x26e   : > { %1089 = vmatmul.bf16.vlgmr.msrb.gmra.mxu3 %v1054_v0  ;;  %1209 = vmatpush.bf16.msrb.mxu1 %v2464_v51 }
 0x26f   : > { %1271 = vmatpush.bf16.msrb.mxu2 %v2192_v11  ;;  %1284 = vmatpush.bf16.msrb.mxu3 %v2223_v22  ;;  %v1039_v25 = vpop.f32.mrf.mxu3 }
 0x270   : > { %v3189_v25 = vld [vmem:[#allocation4_spill] sm:$0xff] }
 0x272   : > { %1210 = vmatpush.bf16.msrb.mxu1 %v2496_v2 }
 0x273   : > { %1272 = vmatpush.bf16.msrb.mxu2 %v2215_v19  ;;  %1285 = vmatpush.bf16.msrb.mxu3 %v2244_v29 }
 0x276   : > { %1211 = vmatpush.bf16.msrb.mxu1 %v2525_v16 }
 0x277   : > { %1273 = vmatpush.bf16.msrb.mxu2 %v2247_v30  ;;  %1286 = vmatpush.bf16.msrb.mxu3 %v2271_v38 }
 0x27a   : > { %1212 = vmatpush.bf16.msrb.mxu1 %v2553_v35 }
 0x27b   : > { %1274 = vmatpush.bf16.msrb.mxu2 %v2274_v39  ;;  %1287 = vmatpush.bf16.msrb.mxu3 %v2298_v47 }
 0x27d   : > { %1164 = vmatmul.bf16.vlgmr.msra.gmra.mxu1 %v1925_v8  ;;  %1177 = vmatmul.bf16.vlgmr.msra.gmra.mxu2 %v1925_v8  ;;  %v3192_v8 = vld [vmem:[#allocation5_spill] sm:$0xff] }
 0x27e   : > { %1213 = vmatpush.bf16.msrb.mxu1 %v2575_v55 }
 0x27f   : > { %1275 = vmatpush.bf16.msrb.mxu2 %v2301_v48  ;;  %1288 = vmatpush.bf16.msrb.mxu3 %v2333_v59 }
 0x282   : > { %1214 = vmatpush.bf16.msrb.mxu1 %v2596_v6 }
 0x283   : > { %1276 = vmatpush.bf16.msrb.mxu2 %v2339_v61  ;;  %1289 = vmatpush.bf16.msrb.mxu3 %v2375_v9 }
 0x286   : > { %1215 = vmatpush.bf16.msrb.mxu1 %v2617_v23 }
 0x287   : > { %1277 = vmatpush.bf16.msrb.mxu2 %v2385_v13  ;;  %1290 = vmatpush.bf16.msrb.mxu3 %v2418_v28 }
 0x28a   : > { %1216 = vmatpush.bf16.msrb.mxu1 %v2631_v32 }
 0x28b   : > { %1278 = vmatpush.bf16.msrb.mxu2 %v2421_v31  ;;  %1291 = vmatpush.bf16.msrb.mxu3 %v2456_v49 }
 0x28e   : > { %1311 = vmatpush.bf16.msra.mxu1 %v2203_v15 }
 0x28f   : > { %1324 = vmatpush.bf16.msra.mxu2 %v2438_v40 }
 0x292   : > { %1312 = vmatpush.bf16.msra.mxu1 %v2221_v21 }
 0x293   : > { %1325 = vmatpush.bf16.msra.mxu2 %v3169_v26 }
 0x296   : > { %1313 = vmatpush.bf16.msra.mxu1 %v3171_v45 }
 0x297   : > { %1326 = vmatpush.bf16.msra.mxu2 %v2499_v3 }
 0x29a   : > { %1314 = vmatpush.bf16.msra.mxu1 %v2283_v42 }
 0x29b   : > { %1327 = vmatpush.bf16.msra.mxu2 %v2528_v17 }
 0x29e   : > { %1315 = vmatpush.bf16.msra.mxu1 %v3189_v25  ;;  %v3199_v25 = vld [vmem:[#allocation9_spill] sm:$0xff] }
 0x2a2   : > { %1316 = vmatpush.bf16.msra.mxu1 %v3192_v8 }
 0x2ea   : > { %v1064_v57 = vpop.f32.mrf.mxu1 }
 0x2eb   : > { %v1065_v27 = vadd.f32 %v1064_v57, %v2702_v54  ;;  %v3190_v57 = vld [vmem:[#allocation14_spill] sm:$0xff] }
 0x2ec   : > { %1328 = vmatpush.bf16.msra.mxu2 %v3190_v57 }
 0x2ed   : > { %v1094_v36 = vadd.f32 %v1065_v27, %v1025_v43  ;;  %v3191_v43 = vld [vmem:[#allocation11_spill] sm:$0xff] }
 0x2ee   : > { %1301 = vmatpush.bf16.msra.mxu0 %v3191_v43 }
 0x2ef   : > { %v1923_v10 = vmul.f32 -1.442695, %v1094_v36 }
 0x2f0   : > { %v1077_v24 = vpop.f32.mrf.mxu2 }
 0x2f1   : > { %2042 = vpow2.f32 %v1923_v10  ;;  %v1078_v33 = vadd.f32 %v1077_v24, %v2716_v63  ;;  %v1090_v46 = vpop.f32.mrf.mxu3  ;;  %v3194_v10 = vld [vmem:[#allocation12_spill] sm:$0xff] }
 0x2f2   : > { %v1066_v37 = vpop.f32.mrf.mxu1  ;;  %1302 = vmatpush.bf16.msra.mxu0 %v3194_v10  ;;  %v3198_v10 = vld [vmem:[#allocation19_spill] sm:$0xff] }
 0x2f3   : > { %v1114_v4 = vadd.f32 %v1078_v33, %v1038_v50  ;;  %v3193_v50 = vld [vmem:[#allocation16_spill] sm:$0xff]  ;;  %v1091_v43 = vadd.f32 %v1090_v46, %v3198_v10 }
 0x2f4   : > { %1329 = vmatpush.bf16.msra.mxu2 %v3193_v50  ;;  %v1051_v50 = vadd.f32 %v1050_v41, %v2739_v14 }
 0x2f5   : > { %v1924_v12 = vmul.f32 -1.442695, %v1114_v4 }
 0x2f7   : > { %v2043_v62 = vpop.eup %2042  ;;  %2044 = vpow2.f32 %v1924_v12  ;;  %v3195_v12 = vld [vmem:[#allocation7_spill] sm:$0xff] }
 0x2f8   : > { %v1098_v34 = vadd.f32 1.0, %v2043_v62  ;;  %v1079_v56 = vpop.f32.mrf.mxu2  ;;  %1317 = vmatpush.bf16.msra.mxu1 %v3195_v12 }
 0x2f9   : > { %v1092_v0 = vpop.f32.mrf.mxu3 }
 0x2fa   : > { %2046 = vrcp.f32 %v1098_v34  ;;  %v1110_v24 = vand.u32 2147483648, %v1098_v34  ;;  %v1108_v37 = vand.u32 2147483647, %v1098_v34  ;;  %vm1104_vm9 = vweird.f32 %v1098_v34  ;;  %v3196_v0 = vld [vmem:[#allocation17_spill] sm:$0xff] }
 0x2fb   : > { %1330 = vmatpush.bf16.msra.mxu2 %v3196_v0  ;;  %v3201_v0 = vld [vmem:[#allocation15_spill] sm:$0xff] }
 0x2fc   : > { %vm1109_vm11 = vcmp.eq.f32.partialorder %v1108_v37, 8.507059e+37  ;;  %1318 = vmatpush.bf16.msra.mxu1 %v3199_v25 }
 0x2fd   : > { %v2045_v53 = vpop.eup %2044 }
 0x2fe   : > { %v1118_v5 = vadd.f32 1.0, %v2045_v53  ;;  %v3197_v53 = vld [vmem:[#allocation13_spill] sm:$0xff] }
 0x2ff   : > { %1303 = vmatpush.bf16.msra.mxu0 %v3197_v53 }
 0x300   : > { %v2047_v27 = vpop.eup %2046  ;;  %2048 = vrcp.f32 %v1118_v5  ;;  %v1130_v52 = vand.u32 2147483648, %v1118_v5  ;;  %v1128_v53 = vand.u32 2147483647, %v1118_v5  ;;  %vm1124_vm13 = vweird.f32 %v1118_v5 }
 0x301   : > { %v1100_v1 = vmul.f32 %v2047_v27, %v1098_v34  ;;  %vm1105_vm8 = vweird.f32 %v2047_v27  ;;  %v3200_v34 = vld [vmem:[#allocation18_spill] sm:$0xff] }
 0x302   : > { %vm1106_vm10 = vmor %vm1104_vm9, %vm1105_vm8  ;;  %1331 = vmatpush.bf16.msra.mxu2 %v3200_v34  ;;  %v1131_v46 = vor.u32 1.1754944e-38, %v1130_v52  ;;  %vm1129_vm15 = vcmp.eq.f32.partialorder %v1128_v53, 8.507059e+37  ;;  %v1165_v52 = vpop.f32.mrf.mxu1 }
 0x303   : > { %v1101_v36 = vsub.f32 1.0, %v1100_v1  ;;  %v1111_v1 = vor.u32 1.1754944e-38, %v1110_v24  ;;  %1304 = vmatpush.bf16.msra.mxu0 %v3201_v0 }
 0x305   : > { %v1102_v33 = vmul.f32 %v2047_v27, %v1101_v36 }
 0x306   : > { %v2049_v4 = vpop.eup %2048 }
 0x307   : > { %v1120_v62 = vmul.f32 %v2049_v4, %v1118_v5  ;;  %v1103_v56 = vadd.f32 %v2047_v27, %v1102_v33  ;;  %vm1125_vm12 = vweird.f32 %v2049_v4 }
 0x308   : > { %vm1126_vm14 = vmor %vm1124_vm13, %vm1125_vm12 }
 0x309   : > { %v1121_v8 = vsub.f32 1.0, %v1120_v62  ;;  %v1107_v36 = vsel %vm1106_vm10, %v2047_v27, %v1103_v56 }
 0x30a   : > { %v1112_v57 = vsel %vm1109_vm11, %v1111_v1, %v1107_v36 }
 0x30b   : > { %v1122_v12 = vmul.f32 %v2049_v4, %v1121_v8  ;;  %v1134_v33 = vmul.f32 %v1112_v57, %v1091_v43 }
 0x30d   : > { %v1123_v24 = vadd.f32 %v2049_v4, %v1122_v12  ;;  %v1135_v41 = vadd.f32 %v1134_v33, %v1051_v50  ;;  %v1167_v50 = vpop.f32.mrf.mxu1  ;;  %v1166_v12 = vadd.f32 %v1165_v52, %v2712_v60 }
 0x30f   : > { %v1127_v62 = vsel %vm1126_vm14, %v2049_v4, %v1123_v24  ;;  %2050 = vtanh.f32 %v1135_v41  ;;  %v2959_v4 = vpop.f32.mrf.mxu2  ;;  %v1928_v41 = vld [vmem:[%s2459_s28 + $0x14] sm:$0xf] }
 0x310   : > { %v1132_v27 = vsel %vm1129_vm15, %v1131_v46, %v1127_v62  ;;  %1279 = vmatmul.bf16.vlgmr.msrb.gmra.mxu2 %v1928_v41 }
 0x311   : > { %v1137_v37 = vsub.f32 1.0, %v1132_v27  ;;  %v1139_v57 = vmul.f32 %v1132_v27, %v2871_v20  ;;  %v1152_v20 = vpop.f32.mrf.mxu0  ;;  %1425 = vmatpush.bf16.msrb.mxu2 %v2330_v58 }
 0x315   : > { %v2051_v56 = vpop.eup %2050  ;;  %1426 = vmatpush.bf16.msrb.mxu2 %v3170_v7 }
 0x316   : > { %v1138_v8 = vmul.f32 %v2051_v56, %v1137_v37  ;;  %v1153_v37 = vadd.f32 %v1152_v20, %v2700_v44  ;;  %v3202_v20 = vld [vmem:[#allocation8_spill] sm:$0xff] }
 0x317   : > { %v1180_v62 = vpop.f32.mrf.mxu2 }
 0x318   : > { %v2931_v43 = vadd.f32 %v1139_v57, %v1138_v8  ;;  %v3205_v62 = vld [vmem:[#allocation11_spill] sm:$0xff] }
 0x319   : > { %v1154_v5 = vpop.f32.mrf.mxu0  ;;  %1427 = vmatpush.bf16.msrb.mxu2 %v2397_v18 }
 0x31a   : > { %v1182_v1 = vpack.c.bf16 %v2931_v43, %v2931_v43 }
 0x31c   : > { %1191 = vmatmul.bf16.vlgmr.msra.gmra.mxu3 %v1182_v1  ;;  %1204 = vmatmul.bf16.vlgmr.msrb.gmra.mxu0 %v1182_v1 }
 0x31d   : > { %1217 = vmatmul.bf16.vlgmr.msrb.gmra.mxu1 %v1182_v1  ;;  %1337 = vmatpush.bf16.msra.mxu3 %v2464_v51 }
 0x31e   : > { %1399 = vmatpush.bf16.msrb.mxu0 %v2192_v11  ;;  %1412 = vmatpush.bf16.msrb.mxu1 %v2223_v22 }
 0x31f   : > { %1428 = vmatpush.bf16.msrb.mxu2 %v3202_v20 }
 0x321   : > { %1338 = vmatpush.bf16.msra.mxu3 %v2496_v2 }
 0x322   : > { %1400 = vmatpush.bf16.msrb.mxu0 %v2215_v19  ;;  %1413 = vmatpush.bf16.msrb.mxu1 %v2244_v29 }
 0x323   : > { %1429 = vmatpush.bf16.msrb.mxu2 %v3205_v62 }
 0x325   : > { %1339 = vmatpush.bf16.msra.mxu3 %v2525_v16 }
 0x326   : > { %1401 = vmatpush.bf16.msrb.mxu0 %v2247_v30  ;;  %1414 = vmatpush.bf16.msrb.mxu1 %v2271_v38 }
 0x329   : > { %1340 = vmatpush.bf16.msra.mxu3 %v2553_v35 }
 0x32a   : > { %1402 = vmatpush.bf16.msrb.mxu0 %v2274_v39  ;;  %1415 = vmatpush.bf16.msrb.mxu1 %v2298_v47 }
 0x32c   : > { %1292 = vmatmul.bf16.vlgmr.msrb.gmra.mxu3 %v1928_v41  ;;  %1305 = vmatmul.bf16.vlgmr.msra.gmra.mxu0 %v1928_v41  ;;  %v3204_v41 = vld [vmem:[#allocation14_spill] sm:$0xff] }
 0x32d   : > { %1341 = vmatpush.bf16.msra.mxu3 %v2575_v55 }
 0x32e   : > { %1403 = vmatpush.bf16.msrb.mxu0 %v2301_v48  ;;  %1416 = vmatpush.bf16.msrb.mxu1 %v2333_v59 }
 0x331   : > { %1342 = vmatpush.bf16.msra.mxu3 %v2596_v6 }
 0x332   : > { %1404 = vmatpush.bf16.msrb.mxu0 %v2339_v61  ;;  %1417 = vmatpush.bf16.msrb.mxu1 %v2375_v9 }
 0x335   : > { %1343 = vmatpush.bf16.msra.mxu3 %v2617_v23 }
 0x336   : > { %1405 = vmatpush.bf16.msrb.mxu0 %v2385_v13  ;;  %1418 = vmatpush.bf16.msrb.mxu1 %v2418_v28 }
 0x339   : > { %1344 = vmatpush.bf16.msra.mxu3 %v2631_v32 }
 0x33a   : > { %1406 = vmatpush.bf16.msrb.mxu0 %v2421_v31  ;;  %1419 = vmatpush.bf16.msrb.mxu1 %v2456_v49 }
 0x33d   : > { %1439 = vmatpush.bf16.msrb.mxu3 %v2203_v15 }
 0x33e   : > { %1452 = vmatpush.bf16.msra.mxu0 %v2438_v40 }
 0x341   : > { %1440 = vmatpush.bf16.msrb.mxu3 %v2221_v21 }
 0x342   : > { %1453 = vmatpush.bf16.msra.mxu0 %v3169_v26 }
 0x345   : > { %1441 = vmatpush.bf16.msrb.mxu3 %v3171_v45 }
 0x346   : > { %1454 = vmatpush.bf16.msra.mxu0 %v2499_v3 }
 0x349   : > { %1442 = vmatpush.bf16.msrb.mxu3 %v2283_v42 }
 0x34a   : > { %1455 = vmatpush.bf16.msra.mxu0 %v2528_v17 }
 0x34e   : > { %1456 = vmatpush.bf16.msra.mxu0 %v3204_v41 }
 0x399   : > { %v1205_v53 = vpop.f32.mrf.mxu0 }
 0x39a   : > { %v1206_v36 = vadd.f32 %v1205_v53, %v2716_v63  ;;  %v2963_v33 = vpop.f32.mrf.mxu1 }
 0x39c   : > { %v1242_v24 = vadd.f32 %v1206_v36, %v1166_v12 }
 0x39e   : > { %v1927_v46 = vmul.f32 -1.442695, %v1242_v24  ;;  %v3203_v24 = vld [vmem:[#allocation4_spill] sm:$0xff] }
 0x39f   : > { %v1192_v27 = vpop.f32.mrf.mxu3  ;;  %1443 = vmatpush.bf16.msrb.mxu3 %v3203_v24 }
 0x3a0   : > { %2052 = vpow2.f32 %v1927_v46  ;;  %v1193_v56 = vadd.f32 %v1192_v27, %v2702_v54  ;;  %v3206_v27 = vld [vmem:[#allocation5_spill] sm:$0xff] }
 0x3a1   : > { %v1207_v8 = vpop.f32.mrf.mxu0 }
 0x3a2   : > { %v1222_v57 = vadd.f32 %v1193_v56, %v1153_v37  ;;  %v1220_v1 = vpop.f32.mrf.mxu1  ;;  %v3207_v56 = vld [vmem:[#allocation16_spill] sm:$0xff] }
 0x3a3   : > { %1444 = vmatpush.bf16.msrb.mxu3 %v3206_v27  ;;  %1457 = vmatpush.bf16.msra.mxu0 %v3207_v56  ;;  %v3208_v8 = vld [vmem:[#allocation12_spill] sm:$0xff] }
 0x3a4   : > { %v1926_v52 = vmul.f32 -1.442695, %v1222_v57  ;;  %1430 = vmatpush.bf16.msrb.mxu2 %v3208_v8 }
 0x3a6   : > { %v2053_v5 = vpop.eup %2052  ;;  %2054 = vpow2.f32 %v1926_v52  ;;  %v3209_v52 = vld [vmem:[#allocation7_spill] sm:$0xff] }
 0x3a7   : > { %v1246_v50 = vadd.f32 1.0, %v2053_v5  ;;  %v1194_v12 = vpop.f32.mrf.mxu3  ;;  %1445 = vmatpush.bf16.msrb.mxu3 %v3209_v52 }
 0x3a8   : > { %v3210_v12 = vld [vmem:[#allocation17_spill] sm:$0xff] }
 0x3a9   : > { %2056 = vrcp.f32 %v1246_v50  ;;  %1458 = vmatpush.bf16.msra.mxu0 %v3210_v12  ;;  %v1219_v12 = vadd.f32 %v2963_v33, %v3198_v10  ;;  %vm1252_vm5 = vweird.f32 %v1246_v50 }
 0x3ab   : > { %1446 = vmatpush.bf16.msrb.mxu3 %v3199_v25 }
 0x3ac   : > { %v2055_v53 = vpop.eup %2054 }
 0x3ad   : > { %v1226_v36 = vadd.f32 1.0, %v2055_v53  ;;  %v3211_v53 = vld [vmem:[#allocation13_spill] sm:$0xff]  ;;  %1459 = vmatpush.bf16.msra.mxu0 %v3200_v34  ;;  %v1256_v34 = vand.u32 2147483647, %v1246_v50 }
 0x3ae   : > { %1431 = vmatpush.bf16.msrb.mxu2 %v3211_v53 }
 0x3af   : > { %2058 = vrcp.f32 %v1226_v36  ;;  %v2057_v46 = vpop.eup %2056  ;;  %v1238_v24 = vand.u32 2147483648, %v1226_v36  ;;  %v1236_v20 = vand.u32 2147483647, %v1226_v36  ;;  %vm1232_vm1 = vweird.f32 %v1226_v36 }
 0x3b0   : > { %v1248_v37 = vmul.f32 %v2057_v46, %v1246_v50  ;;  %vm1253_vm4 = vweird.f32 %v2057_v46  ;;  %vm1257_vm7 = vcmp.eq.f32.partialorder %v1256_v34, 8.507059e+37 }
 0x3b1   : > { %vm1237_vm3 = vcmp.eq.f32.partialorder %v1236_v20, 8.507059e+37  ;;  %vm1254_vm6 = vmor %vm1252_vm5, %vm1253_vm4 }
 0x3b2   : > { %v1249_v5 = vsub.f32 1.0, %v1248_v37  ;;  %1432 = vmatpush.bf16.msrb.mxu2 %v3201_v0  ;;  %v1239_v37 = vor.u32 1.1754944e-38, %v1238_v24 }
 0x3b4   : > { %v1250_v27 = vmul.f32 %v2057_v46, %v1249_v5  ;;  %v1258_v5 = vand.u32 2147483648, %v1246_v50  ;;  %v3215_v50 = vld [vmem:[#allocation11_spill] sm:$0xff] }
 0x3b5   : > { %v2059_v57 = vpop.eup %2058 }
 0x3b6   : > { %v1228_v1 = vmul.f32 %v2059_v57, %v1226_v36  ;;  %vm1233_vm0 = vweird.f32 %v2059_v57  ;;  %v1251_v52 = vadd.f32 %v2057_v46, %v1250_v27  ;;  %v1259_v0 = vor.u32 1.1754944e-38, %v1258_v5  ;;  %v3221_v5 = vld [vmem:[#allocation13_spill] sm:$0xff] }
 0x3b7   : > { %vm1234_vm2 = vmor %vm1232_vm1, %vm1233_vm0 }
 0x3b8   : > { %v1229_v41 = vsub.f32 1.0, %v1228_v1  ;;  %v1179_v1 = vadd.f32 %v2959_v4, %v2739_v14  ;;  %v1255_v36 = vsel %vm1254_vm6, %v2057_v46, %v1251_v52  ;;  %v3216_v46 = vld [vmem:[#allocation5_spill] sm:$0xff] }
 0x3b9   : > { %v1260_v24 = vsel %vm1257_vm7, %v1259_v0, %v1255_v36 }
 0x3ba   : > { %v1230_v62 = vmul.f32 %v2059_v57, %v1229_v41  ;;  %v1265_v33 = vsub.f32 1.0, %v1260_v24  ;;  %v1267_v4 = vmul.f32 %v1260_v24, %v2931_v43  ;;  %v3213_v43 = vld [vmem:[#allocation4_spill] sm:$0xff] }
 0x3bc   : > { %v1231_v8 = vadd.f32 %v2059_v57, %v1230_v62 }
 0x3be   : > { %v1235_v41 = vsel %vm1234_vm2, %v2059_v57, %v1231_v8  ;;  %v3217_v8 = vld [vmem:[#allocation16_spill] sm:$0xff] }
 0x3bf   : > { %v1240_v53 = vsel %vm1237_vm3, %v1239_v37, %v1235_v41  ;;  %v3220_v41 = vld [vmem:[#allocation17_spill] sm:$0xff] }
 0x3c0   : > { %v1262_v25 = vmul.f32 %v1240_v53, %v1219_v12  ;;  %v3219_v53 = vld [vmem:[#allocation7_spill] sm:$0xff] }
 0x3c2   : > { %v1263_v62 = vadd.f32 %v1262_v25, %v1179_v1 }
 0x3c4   : > { %2060 = vtanh.f32 %v1263_v62 }
 0x3ca   : > { %v2061_v10 = vpop.eup %2060 }
 0x3cb   : > { %v1266_v56 = vmul.f32 %v2061_v10, %v1265_v33  ;;  %v3222_v33 = vld [vmem:[#allocation19_spill] sm:$0xff] }
 0x3cd   : > { %v2997_v20 = vadd.f32 %v1267_v4, %v1266_v56 }
 0x3cf   : > { %v1310_v27 = vpack.c.bf16 %v2997_v20, %v2997_v20 }
 0x3d1   : > { %1319 = vmatmul.bf16.vlgmr.msra.gmra.mxu1 %v1310_v27  ;;  %1332 = vmatmul.bf16.vlgmr.msra.gmra.mxu2 %v1310_v27 }
 0x3d2   : > { %1345 = vmatmul.bf16.vlgmr.msra.gmra.mxu3 %v1310_v27  ;;  %1465 = vmatpush.bf16.msra.mxu1 %v2464_v51 }
 0x3d3   : > { %1527 = vmatpush.bf16.msra.mxu2 %v2192_v11  ;;  %1540 = vmatpush.bf16.msra.mxu3 %v2223_v22  ;;  %v1280_v11 = vpop.f32.mrf.mxu2 }
 0x3d6   : > { %1466 = vmatpush.bf16.msra.mxu1 %v2496_v2 }
 0x3d7   : > { %1528 = vmatpush.bf16.msra.mxu2 %v2215_v19  ;;  %1541 = vmatpush.bf16.msra.mxu3 %v2244_v29  ;;  %v1293_v19 = vpop.f32.mrf.mxu3 }
 0x3da   : > { %1467 = vmatpush.bf16.msra.mxu1 %v2525_v16 }
 0x3db   : > { %1529 = vmatpush.bf16.msra.mxu2 %v2247_v30  ;;  %1542 = vmatpush.bf16.msra.mxu3 %v2271_v38  ;;  %v1282_v22 = vpop.f32.mrf.mxu2  ;;  %v1306_v30 = vpop.f32.mrf.mxu0 }
 0x3dc   : > { %v1307_v36 = vadd.f32 %v1306_v30, %v2739_v14 }
 0x3de   : > { %1468 = vmatpush.bf16.msra.mxu1 %v2553_v35 }
 0x3df   : > { %1530 = vmatpush.bf16.msra.mxu2 %v2274_v39  ;;  %1543 = vmatpush.bf16.msra.mxu3 %v2298_v47  ;;  %v1295_v29 = vpop.f32.mrf.mxu3  ;;  %v1281_v39 = vadd.f32 %v1280_v11, %v2700_v44 }
 0x3e2   : > { %1469 = vmatpush.bf16.msra.mxu1 %v2575_v55 }
 0x3e3   : > { %1531 = vmatpush.bf16.msra.mxu2 %v2301_v48  ;;  %1544 = vmatpush.bf16.msra.mxu3 %v2333_v59  ;;  %v1308_v48 = vpop.f32.mrf.mxu0  ;;  %v1931_v59 = vld [vmem:[%s2459_s28 + $0x18] sm:$0xf] }
 0x3e4   : > { %1407 = vmatmul.bf16.vlgmr.msrb.gmra.mxu0 %v1931_v59  ;;  %1420 = vmatmul.bf16.vlgmr.msrb.gmra.mxu1 %v1931_v59 }
 0x3e5   : > { %1433 = vmatmul.bf16.vlgmr.msrb.gmra.mxu2 %v1931_v59  ;;  %1553 = vmatpush.bf16.msrb.mxu0 %v2330_v58 }
 0x3e6   : > { %1470 = vmatpush.bf16.msra.mxu1 %v2596_v6 }
 0x3e7   : > { %1532 = vmatpush.bf16.msra.mxu2 %v2339_v61  ;;  %1545 = vmatpush.bf16.msra.mxu3 %v2375_v9  ;;  %v1294_v9 = vadd.f32 %v1293_v19, %v2712_v60  ;;  %v3223_v19 = vld [vmem:[#allocation9_spill] sm:$0xff] }
 0x3e9   : > { %1554 = vmatpush.bf16.msrb.mxu0 %v3170_v7 }
 0x3ea   : > { %1471 = vmatpush.bf16.msra.mxu1 %v2617_v23 }
 0x3eb   : > { %1533 = vmatpush.bf16.msra.mxu2 %v2385_v13  ;;  %1546 = vmatpush.bf16.msra.mxu3 %v2418_v28 }
 0x3ed   : > { %1555 = vmatpush.bf16.msrb.mxu0 %v2397_v18 }
 0x3ee   : > { %1472 = vmatpush.bf16.msra.mxu1 %v2631_v32 }
 0x3ef   : > { %1534 = vmatpush.bf16.msra.mxu2 %v2421_v31  ;;  %1547 = vmatpush.bf16.msra.mxu3 %v2456_v49 }
 0x3f2   : > { %1567 = vmatpush.bf16.msrb.mxu1 %v2203_v15 }
 0x3f3   : > { %1580 = vmatpush.bf16.msrb.mxu2 %v2438_v40 }
 0x3f6   : > { %1568 = vmatpush.bf16.msrb.mxu1 %v2221_v21  ;;  %v3212_v21 = vld [vmem:[#allocation8_spill] sm:$0xff] }
 0x3f7   : > { %1581 = vmatpush.bf16.msrb.mxu2 %v3169_v26  ;;  %1556 = vmatpush.bf16.msrb.mxu0 %v3212_v21 }
 0x3fa   : > { %1569 = vmatpush.bf16.msrb.mxu1 %v3171_v45  ;;  %v3214_v45 = vld [vmem:[#allocation14_spill] sm:$0xff] }
 0x3fb   : > { %1582 = vmatpush.bf16.msrb.mxu2 %v2499_v3  ;;  %1557 = vmatpush.bf16.msrb.mxu0 %v3215_v50 }
 0x3fe   : > { %1570 = vmatpush.bf16.msrb.mxu1 %v2283_v42  ;;  %v3218_v42 = vld [vmem:[#allocation12_spill] sm:$0xff] }
 0x3ff   : > { %1583 = vmatpush.bf16.msrb.mxu2 %v2528_v17  ;;  %1558 = vmatpush.bf16.msrb.mxu0 %v3218_v42 }
 0x402   : > { %1571 = vmatpush.bf16.msrb.mxu1 %v3213_v43 }
 0x403   : > { %1584 = vmatpush.bf16.msrb.mxu2 %v3214_v45  ;;  %1559 = vmatpush.bf16.msrb.mxu0 %v3221_v5 }
 0x406   : > { %1572 = vmatpush.bf16.msrb.mxu1 %v3216_v46 }
 0x407   : > { %1585 = vmatpush.bf16.msrb.mxu2 %v3217_v8 }
 0x40a   : > { %1573 = vmatpush.bf16.msrb.mxu1 %v3219_v53 }
 0x40b   : > { %1586 = vmatpush.bf16.msrb.mxu2 %v3220_v41 }
 0x40e   : > { %1574 = vmatpush.bf16.msrb.mxu1 %v3223_v19 }
 0x44e   : > { %v1320_v38 = vpop.f32.mrf.mxu1 }
 0x44f   : > { %v1321_v47 = vadd.f32 %v1320_v38, %v2702_v54 }
 0x451   : > { %v1350_v61 = vadd.f32 %v1321_v47, %v1281_v39  ;;  %v3224_v39 = vld [vmem:[#allocation18_spill] sm:$0xff]  ;;  %v3225_v47 = vld [vmem:[#allocation15_spill] sm:$0xff] }
 0x452   : > { %1587 = vmatpush.bf16.msrb.mxu2 %v3224_v39  ;;  %1560 = vmatpush.bf16.msrb.mxu0 %v3225_v47 }
 0x453   : > { %v1929_v13 = vmul.f32 -1.442695, %v1350_v61 }
 0x454   : > { %v1333_v28 = vpop.f32.mrf.mxu2 }
 0x455   : > { %2062 = vpow2.f32 %v1929_v13  ;;  %v1334_v31 = vadd.f32 %v1333_v28, %v2716_v63  ;;  %v1346_v49 = vpop.f32.mrf.mxu3 }
 0x456   : > { %v1322_v25 = vpop.f32.mrf.mxu1  ;;  %v1347_v4 = vadd.f32 %v1346_v49, %v3222_v33 }
 0x457   : > { %v1370_v10 = vadd.f32 %v1334_v31, %v1294_v9 }
 0x459   : > { %v1930_v15 = vmul.f32 -1.442695, %v1370_v10 }
 0x45b   : > { %v2063_v0 = vpop.eup %2062  ;;  %2064 = vpow2.f32 %v1930_v15 }
 0x45c   : > { %v1354_v58 = vadd.f32 1.0, %v2063_v0  ;;  %v1335_v40 = vpop.f32.mrf.mxu2 }
 0x45d   : > { %v1348_v34 = vpop.f32.mrf.mxu3 }
 0x45e   : > { %2066 = vrcp.f32 %v1354_v58  ;;  %v1366_v17 = vand.u32 2147483648, %v1354_v58  ;;  %v1364_v52 = vand.u32 2147483647, %v1354_v58  ;;  %vm1360_vm9 = vweird.f32 %v1354_v58 }
 0x460   : > { %v1367_v62 = vor.u32 1.1754944e-38, %v1366_v17  ;;  %vm1365_vm11 = vcmp.eq.f32.partialorder %v1364_v52, 8.507059e+37 }
 0x461   : > { %v2065_v26 = vpop.eup %2064  ;;  %v1421_v0 = vpop.f32.mrf.mxu1 }
 0x462   : > { %v1374_v7 = vadd.f32 1.0, %v2065_v26  ;;  %v1934_v26 = vld [vmem:[%s2459_s28 + $0x1c] sm:$0xf]  ;;  %s1721_s28 = sshll.u32 %s3230_s21, 3 }
 0x463   : > { %1535 = vmatmul.bf16.vlgmr.msra.gmra.mxu2 %v1934_v26  ;;  %s293_s16 = scalar_lea.vmem %s3110_s5, %s1721_s28 }
 0x464   : > { %v2067_v3 = vpop.eup %2066  ;;  %2068 = vrcp.f32 %v1374_v7  ;;  %v1386_v29 = vand.u32 2147483648, %v1374_v7  ;;  %v1384_v48 = vand.u32 2147483647, %v1374_v7  ;;  %vm1380_vm13 = vweird.f32 %v1374_v7 }
 0x465   : > { %v1356_v18 = vmul.f32 %v2067_v3, %v1354_v58  ;;  %vm1361_vm8 = vweird.f32 %v2067_v3 }
 0x466   : > { %vm1362_vm10 = vmor %vm1360_vm9, %vm1361_vm8  ;;  %v1387_v9 = vor.u32 1.1754944e-38, %v1386_v29  ;;  %vm1385_vm15 = vcmp.eq.f32.partialorder %v1384_v48, 8.507059e+37 }
 0x467   : > { %v1357_v56 = vsub.f32 1.0, %v1356_v18 }
 0x469   : > { %v1358_v57 = vmul.f32 %v2067_v3, %v1357_v56  ;;  %v1423_v40 = vpop.f32.mrf.mxu1 }
 0x46a   : > { %v2069_v12 = vpop.eup %2068 }
 0x46b   : > { %v1376_v37 = vmul.f32 %v2069_v12, %v1374_v7  ;;  %v1359_v1 = vadd.f32 %v2067_v3, %v1358_v57  ;;  %vm1381_vm12 = vweird.f32 %v2069_v12 }
 0x46c   : > { %vm1382_vm14 = vmor %vm1380_vm13, %vm1381_vm12 }
 0x46d   : > { %v1377_v24 = vsub.f32 1.0, %v1376_v37  ;;  %v1363_v27 = vsel %vm1362_vm10, %v2067_v3, %v1359_v1 }
 0x46e   : > { %v1368_v11 = vsel %vm1365_vm11, %v1367_v62, %v1363_v27 }
 0x46f   : > { %v1378_v22 = vmul.f32 %v2069_v12, %v1377_v24  ;;  %v1390_v38 = vmul.f32 %v1368_v11, %v1347_v4 }
 0x471   : > { %v1379_v59 = vadd.f32 %v2069_v12, %v1378_v22  ;;  %v1391_v30 = vadd.f32 %v1390_v38, %v1307_v36 }
 0x473   : > { %v1383_v61 = vsel %vm1382_vm14, %v2069_v12, %v1379_v59  ;;  %2070 = vtanh.f32 %v1391_v30 }
 0x474   : > { %v1388_v13 = vsel %vm1385_vm15, %v1387_v9, %v1383_v61 }
 0x475   : > { %v1393_v28 = vsub.f32 1.0, %v1388_v13  ;;  %v1395_v25 = vmul.f32 %v1388_v13, %v2997_v20  ;;  %v1408_v20 = vpop.f32.mrf.mxu0 }
 0x479   : > { %v2071_v31 = vpop.eup %2070 }
 0x47a   : > { %v1394_v49 = vmul.f32 %v2071_v31, %v1393_v28 }
 0x47c   : > { %v3057_v10 = vadd.f32 %v1395_v25, %v1394_v49 }
 0x47d   : > { %v1410_v58 = vpop.f32.mrf.mxu0 }
 0x47e   : > { %v1438_v15 = vpack.c.bf16 %v3057_v10, %v3057_v10 }
 0x480   : > { %1447 = vmatmul.bf16.vlgmr.msrb.gmra.mxu3 %v1438_v15  ;;  %1460 = vmatmul.bf16.vlgmr.msra.gmra.mxu0 %v1438_v15 }
 0x481   : > { %1473 = vmatmul.bf16.vlgmr.msra.gmra.mxu1 %v1438_v15  ;;  %1593 = vmatpush.bf16.msrb.mxu3 %v2464_v51  ;;  %v1434_v51 = vpop.f32.mrf.mxu2 }
 0x482   : > { %v1435_v27 = vadd.f32 %v1434_v51, %v2739_v14 }
 0x485   : > { %1594 = vmatpush.bf16.msrb.mxu3 %v2496_v2  ;;  %v1422_v2 = vadd.f32 %v1421_v0, %v2712_v60 }
 0x489   : > { %1595 = vmatpush.bf16.msrb.mxu3 %v2525_v16 }
 0x48d   : > { %1596 = vmatpush.bf16.msrb.mxu3 %v2553_v35 }
 0x490   : > { %1548 = vmatmul.bf16.vlgmr.msra.gmra.mxu3 %v1934_v26  ;;  %1561 = vmatmul.bf16.vlgmr.msrb.gmra.mxu0 %v1934_v26 }
 0x491   : > { %1597 = vmatpush.bf16.msrb.mxu3 %v2575_v55  ;;  %v1436_v55 = vpop.f32.mrf.mxu2 }
 0x495   : > { %1598 = vmatpush.bf16.msrb.mxu3 %v2596_v6 }
 0x499   : > { %1599 = vmatpush.bf16.msrb.mxu3 %v2617_v23 }
 0x49d   : > { %1600 = vmatpush.bf16.msrb.mxu3 %v2631_v32  ;;  %v1409_v32 = vadd.f32 %v1408_v20, %v2700_v44 }
 0x4e6   : > { %v1536_v25 = vpop.f32.mrf.mxu2 }
 0x4e7   : > { %v1537_v51 = vadd.f32 %v1536_v25, %v2700_v44 }
 0x4ee   : > { %v1538_v20 = vpop.f32.mrf.mxu2 }
 0x4fd   : > { %v1461_v34 = vpop.f32.mrf.mxu0 }
 0x4fe   : > { %v1462_v16 = vadd.f32 %v1461_v34, %v2716_v63  ;;  %v1474_v21 = vpop.f32.mrf.mxu1 }
 0x4ff   : > { %v1475_v4 = vadd.f32 %v1474_v21, %v3222_v33 }
 0x500   : > { %v1498_v35 = vadd.f32 %v1462_v16, %v1422_v2 }
 0x502   : > { %v1933_v6 = vmul.f32 -1.442695, %v1498_v35 }
 0x503   : > { %v1448_v23 = vpop.f32.mrf.mxu3 }
 0x504   : > { %2072 = vpow2.f32 %v1933_v6  ;;  %v1449_v7 = vadd.f32 %v1448_v23, %v2702_v54 }
 0x505   : > { %v1463_v43 = vpop.f32.mrf.mxu0 }
 0x506   : > { %v1478_v45 = vadd.f32 %v1449_v7, %v1409_v32  ;;  %v1476_v50 = vpop.f32.mrf.mxu1 }
 0x508   : > { %v1932_v3 = vmul.f32 -1.442695, %v1478_v45 }
 0x50a   : > { %v2073_v18 = vpop.eup %2072  ;;  %2074 = vpow2.f32 %v1932_v3 }
 0x50b   : > { %v1502_v46 = vadd.f32 1.0, %v2073_v18  ;;  %v1450_v56 = vpop.f32.mrf.mxu3 }
 0x50d   : > { %2076 = vrcp.f32 %v1502_v46  ;;  %v1514_v29 = vand.u32 2147483648, %v1502_v46  ;;  %vm1508_vm5 = vweird.f32 %v1502_v46  ;;  %v1512_v39 = vand.u32 2147483647, %v1502_v46  ;;  %v1562_v58 = vpop.f32.mrf.mxu0 }
 0x50f   : > { %v1515_v59 = vor.u32 1.1754944e-38, %v1514_v29  ;;  %vm1513_vm7 = vcmp.eq.f32.partialorder %v1512_v39, 8.507059e+37 }
 0x510   : > { %v2075_v8 = vpop.eup %2074 }
 0x511   : > { %v1482_v42 = vadd.f32 1.0, %v2075_v8 }
 0x513   : > { %2078 = vrcp.f32 %v1482_v42  ;;  %v2077_v17 = vpop.eup %2076  ;;  %v1494_v1 = vand.u32 2147483648, %v1482_v42  ;;  %v1492_v5 = vand.u32 2147483647, %v1482_v42  ;;  %vm1488_vm1 = vweird.f32 %v1482_v42  ;;  %v1549_v15 = vpop.f32.mrf.mxu3 }
 0x514   : > { %v1504_v57 = vmul.f32 %v2077_v17, %v1502_v46  ;;  %vm1509_vm4 = vweird.f32 %v2077_v17  ;;  %v1550_v16 = vadd.f32 %v1549_v15, %v2712_v60 }
 0x515   : > { %v1495_v24 = vor.u32 1.1754944e-38, %v1494_v1  ;;  %vm1493_vm3 = vcmp.eq.f32.partialorder %v1492_v5, 8.507059e+37  ;;  %vm1510_vm6 = vmor %vm1508_vm5, %vm1509_vm4  ;;  %v1564_v34 = vpop.f32.mrf.mxu0 }
 0x516   : > { %v1505_v53 = vsub.f32 1.0, %v1504_v57 }
 0x518   : > { %v1506_v62 = vmul.f32 %v2077_v17, %v1505_v53 }
 0x519   : > { %v2079_v52 = vpop.eup %2078 }
 0x51a   : > { %v1484_v12 = vmul.f32 %v2079_v52, %v1482_v42  ;;  %vm1489_vm0 = vweird.f32 %v2079_v52  ;;  %v1507_v22 = vadd.f32 %v2077_v17, %v1506_v62 }
 0x51b   : > { %vm1490_vm2 = vmor %vm1488_vm1, %vm1489_vm0  ;;  %v1551_v0 = vpop.f32.mrf.mxu3 }
 0x51c   : > { %v1485_v37 = vsub.f32 1.0, %v1484_v12  ;;  %v1511_v48 = vsel %vm1510_vm6, %v2077_v17, %v1507_v22 }
 0x51d   : > { %v1516_v30 = vsel %vm1513_vm7, %v1515_v59, %v1511_v48 }
 0x51e   : > { %v1486_v41 = vmul.f32 %v2079_v52, %v1485_v37  ;;  %v1521_v61 = vsub.f32 1.0, %v1516_v30  ;;  %v1523_v28 = vmul.f32 %v1516_v30, %v3057_v10 }
 0x520   : > { %v1487_v36 = vadd.f32 %v2079_v52, %v1486_v41 }
 0x522   : > { %v1491_v11 = vsel %vm1490_vm2, %v2079_v52, %v1487_v36  ;;  %v1563_v52 = vadd.f32 %v1562_v58, %v2739_v14 }
 0x523   : > { %v1496_v19 = vsel %vm1493_vm3, %v1495_v24, %v1491_v11 }
 0x524   : > { %v1518_v38 = vmul.f32 %v1496_v19, %v1475_v4 }
 0x526   : > { %v1519_v47 = vadd.f32 %v1518_v38, %v1435_v27 }
 0x528   : > { %2080 = vtanh.f32 %v1519_v47 }
 0x52e   : > { %v2081_v9 = vpop.eup %2080 }
 0x52f   : > { %v1522_v13 = vmul.f32 %v2081_v9, %v1521_v61 }
 0x531   : > { %v3077_v31 = vadd.f32 %v1523_v28, %v1522_v13 }
 0x533   : > { %v1566_v49 = vpack.c.bf16 %v3077_v31, %v3077_v31 }
 0x535   : > { %1575 = vmatmul.bf16.vlgmr.msrb.gmra.mxu1 %v1566_v49  ;;  %1588 = vmatmul.bf16.vlgmr.msrb.gmra.mxu2 %v1566_v49 }
 0x536   : > { %1601 = vmatmul.bf16.vlgmr.msrb.gmra.mxu3 %v1566_v49 }
 0x5b2   : > { %v1576_v40 = vpop.f32.mrf.mxu1 }
 0x5b3   : > { %v1577_v2 = vadd.f32 %v1576_v40, %v2702_v54 }
 0x5b5   : > { %v1606_v10 = vadd.f32 %v1577_v2, %v1537_v51 }
 0x5b7   : > { %v1935_v21 = vmul.f32 -1.442695, %v1606_v10 }
 0x5b8   : > { %v1589_v35 = vpop.f32.mrf.mxu2 }
 0x5b9   : > { %2082 = vpow2.f32 %v1935_v21  ;;  %v1590_v26 = vadd.f32 %v1589_v35, %v2716_v63  ;;  %v1602_v55 = vpop.f32.mrf.mxu3 }
 0x5ba   : > { %v1578_v6 = vpop.f32.mrf.mxu1  ;;  %v1603_v53 = vadd.f32 %v1602_v55, %v3222_v33 }
 0x5bb   : > { %v1626_v23 = vadd.f32 %v1590_v26, %v1550_v16 }
 0x5bd   : > { %v1936_v32 = vmul.f32 -1.442695, %v1626_v23 }
 0x5bf   : > { %v2083_v7 = vpop.eup %2082  ;;  %2084 = vpow2.f32 %v1936_v32 }
 0x5c0   : > { %v1610_v43 = vadd.f32 1.0, %v2083_v7  ;;  %v1591_v45 = vpop.f32.mrf.mxu2 }
 0x5c1   : > { %v1604_v44 = vpop.f32.mrf.mxu3 }
 0x5c2   : > { %2086 = vrcp.f32 %v1610_v43  ;;  %v1622_v46 = vand.u32 2147483648, %v1610_v43  ;;  %v1620_v63 = vand.u32 2147483647, %v1610_v43  ;;  %vm1616_vm9 = vweird.f32 %v1610_v43 }
 0x5c4   : > { %v1623_v57 = vor.u32 1.1754944e-38, %v1622_v46  ;;  %vm1621_vm11 = vcmp.eq.f32.partialorder %v1620_v63, 8.507059e+37 }
 0x5c5   : > { %v2085_v54 = vpop.eup %2084 }
 0x5c6   : > { %v1630_v50 = vadd.f32 1.0, %v2085_v54 }
 0x5c8   : > { %v2087_v3 = vpop.eup %2086  ;;  %2088 = vrcp.f32 %v1630_v50  ;;  %v1642_v5 = vand.u32 2147483648, %v1630_v50  ;;  %v1640_v36 = vand.u32 2147483647, %v1630_v50  ;;  %vm1636_vm13 = vweird.f32 %v1630_v50 }
 0x5c9   : > { %v1612_v60 = vmul.f32 %v2087_v3, %v1610_v43  ;;  %vm1617_vm8 = vweird.f32 %v2087_v3 }
 0x5ca   : > { %vm1618_vm10 = vmor %vm1616_vm9, %vm1617_vm8  ;;  %v1643_v14 = vor.u32 1.1754944e-38, %v1642_v5  ;;  %vm1641_vm15 = vcmp.eq.f32.partialorder %v1640_v36, 8.507059e+37 }
 0x5cb   : > { %v1613_v18 = vsub.f32 1.0, %v1612_v60 }
 0x5cd   : > { %v1614_v56 = vmul.f32 %v2087_v3, %v1613_v18 }
 0x5ce   : > { %v2089_v8 = vpop.eup %2088 }
 0x5cf   : > { %v1632_v42 = vmul.f32 %v2089_v8, %v1630_v50  ;;  %v1615_v17 = vadd.f32 %v2087_v3, %v1614_v56  ;;  %vm1637_vm12 = vweird.f32 %v2089_v8 }
 0x5d0   : > { %vm1638_vm14 = vmor %vm1636_vm13, %vm1637_vm12 }
 0x5d1   : > { %v1633_v12 = vsub.f32 1.0, %v1632_v42  ;;  %v1619_v37 = vsel %vm1618_vm10, %v2087_v3, %v1615_v17 }
 0x5d2   : > { %v1624_v1 = vsel %vm1621_vm11, %v1623_v57, %v1619_v37 }
 0x5d3   : > { %v1634_v41 = vmul.f32 %v2089_v8, %v1633_v12  ;;  %v1646_v62 = vmul.f32 %v1624_v1, %v1603_v53 }
 0x5d5   : > { %v1635_v24 = vadd.f32 %v2089_v8, %v1634_v41  ;;  %v1647_v4 = vadd.f32 %v1646_v62, %v1563_v52 }
 0x5d7   : > { %v1639_v27 = vsel %vm1638_vm14, %v2089_v8, %v1635_v24  ;;  %2090 = vtanh.f32 %v1647_v4 }
 0x5d8   : > { %v1644_v33 = vsel %vm1641_vm15, %v1643_v14, %v1639_v27 }
 0x5d9   : > { %v1649_v11 = vsub.f32 1.0, %v1644_v33  ;;  %v1651_v29 = vmul.f32 %v1644_v33, %v3077_v31 }
 0x5dd   : > { %v2091_v19 = vpop.eup %2090 }
 0x5de   : > { %v1650_v22 = vmul.f32 %v2091_v19, %v1649_v11 }
 0x5e0   : > { %v1652_v38 = vadd.f32 %v1651_v29, %v1650_v22 }
 0x5e2   : > { %1653 = vst [vmem:[%s293_s16] sm:$0xff] %v1652_v38 }
 0x5e3 PF: > { %p12_p9 = scmp.ge.s32.totalorder %s2164_s22, 4   ;;  %s3226_s18 = smov %s2110_s19 }
 0x5e4   : > { %s3227_s19 = smov %s2173_s25  ;;  %s3228_s20 = smov %s2164_s22 }
 0x5e5   :  { %14 = sbr.rel (!%p12_p9) target bundleno = 2 (0x2), region = 123 }

</bundles_post_ra>
